<compile_context>
chip_gen: v5e
topology: v5e:2x2
jax: 0.10.0
libtpu: 0.0.40
codegen_flags: <defaults>
</compile_context>

<pallas_src>
import functools
import math

import numpy as np
import jax
import jax.numpy as jnp
from jax import lax
from jax.experimental import pallas as pl
from jax.experimental.pallas import tpu as pltpu


def _fused_level_attention_kernel(
    x_ref,      # (1, Cin, H*W)   input, channels-first, flattened spatial
    ws_ref,     # (4, F, 9*F)     conv1..conv4 weights, [out, tap*in]
    bs_ref,     # (4, F, 1)       conv1..conv4 biases
    w5_ref,     # (8, 9*F)        conv5 weights (row 0 real, rows 1..7 zero pad)
    b5_ref,     # (1, 1)          conv5 bias
    mask_ref,   # (1, M)          1.0 where flat column is a valid pixel
    o_ref,      # (1, 1, M)       sigmoid output in flat padded space
    pad_ref,    # scratch (F, LP) padded activation: channels x flat space
    col_ref,    # scratch (9*F, M) im2col matrix
    *, H, W, Cin, F,
):
    P = W + 2           # padded row pitch
    M = H * P           # flat output extent (includes 2 garbage cols per row)
    # flat-space offsets of the 9 conv taps
    offsets = [dy * P + dx for dy in range(3) for dx in range(3)]

    # ---- load input once into the zero-padded activation scratch ----
    pad_ref[...] = jnp.zeros_like(pad_ref)
    xv = x_ref[0]                                   # (Cin, H*W)
    for i in range(H):
        pad_ref[0:Cin, pl.ds((i + 1) * P + 1, W)] = xv[:, i * W:(i + 1) * W]

    mask = mask_ref[...]                            # (1, M), {0., 1.}

    def build_im2col():
        # col[t*F + c, q] = pad[c, q + offset_t]  (contiguous lane windows)
        for t, s in enumerate(offsets):
            col_ref[pl.ds(t * F, F), :] = pad_ref[:, pl.ds(s, M)]

    # ---- conv1..conv4 (+ bias + ReLU); activation stays in VMEM ----
    for l in range(4):
        build_im2col()
        acc = jnp.dot(ws_ref[l], col_ref[...],
                      preferred_element_type=jnp.float32)      # (F, M)
        acc = jnp.maximum(acc + bs_ref[l], 0.0) * mask          # ReLU + zero border
        # write back into the interior of the padded flat space
        pad_ref[:, pl.ds(P + 1, M)] = acc

    # ---- conv5 + bias + sigmoid, lane-dense (1, M) output ----
    build_im2col()
    out5 = jnp.dot(w5_ref[...], col_ref[...],
                   preferred_element_type=jnp.float32)          # (8, M)
    o_ref[0] = jax.nn.sigmoid(out5[0:1, :] + b5_ref[...])       # (1, M)


def _flatten_conv_weight(w_hwio, cin_pad=None):
    """(3,3,Cin,Cout) HWIO -> (Cout, 9*Cin) with K ordered as (tap, cin)."""
    kh, kw, cin, cout = w_hwio.shape
    if cin_pad is not None and cin_pad > cin:
        w_hwio = jnp.pad(w_hwio, ((0, 0), (0, 0), (0, cin_pad - cin), (0, 0)))
        cin = cin_pad
    return jnp.transpose(w_hwio, (3, 0, 1, 2)).reshape(cout, 9 * cin)


def level_attention_forward(params, x_nchw):
    """Forward pass. Input/output in NCHW to match the PyTorch module."""
    N, Cin, H, W = x_nchw.shape
    F = params[0][0].shape[-1]          # feature_size
    P = W + 2
    M = H * P
    # padded-flat scratch length: last tap window ends at M + 2*P + 2
    LP = (-(-(M + 2 * P + 2) // 128)) * 128

    (w1, b1), (w2, b2), (w3, b3), (w4, b4), (w5, b5) = params
    ws = jnp.stack([
        _flatten_conv_weight(w1, cin_pad=F),   # pad Cin -> F (extra rows hit zeros)
        _flatten_conv_weight(w2),
        _flatten_conv_weight(w3),
        _flatten_conv_weight(w4),
    ])                                          # (4, F, 9F)
    bs = jnp.stack([b1, b2, b3, b4]).reshape(4, F, 1)
    w5f = jnp.pad(_flatten_conv_weight(w5), ((0, 7), (0, 0)))   # (8, 9F)
    b5c = b5.reshape(1, 1)

    x_flat = x_nchw.reshape(N, Cin, H * W).astype(jnp.float32)
    mask = jnp.asarray((np.arange(M) % P) < W, jnp.float32).reshape(1, M)

    kern = functools.partial(_fused_level_attention_kernel,
                             H=H, W=W, Cin=Cin, F=F)
    out_flat = pl.pallas_call(
        kern,
        out_shape=jax.ShapeDtypeStruct((N, 1, M), jnp.float32),
        grid_spec=pltpu.PrefetchScalarGridSpec(
            num_scalar_prefetch=0,
            grid=(N,),
            in_specs=[
                pl.BlockSpec((1, Cin, H * W), lambda n: (n, 0, 0)),
                pl.BlockSpec((4, F, 9 * F), lambda n: (0, 0, 0)),
                pl.BlockSpec((4, F, 1), lambda n: (0, 0, 0)),
                pl.BlockSpec((8, 9 * F), lambda n: (0, 0)),
                pl.BlockSpec((1, 1), lambda n: (0, 0)),
                pl.BlockSpec((1, M), lambda n: (0, 0)),
            ],
            out_specs=pl.BlockSpec((1, 1, M), lambda n: (n, 0, 0)),
            scratch_shapes=[
                pltpu.VMEM((F, LP), jnp.float32),       # padded activation
                pltpu.VMEM((9 * F, M), jnp.float32),    # im2col
            ],
        ),
        compiler_params=pltpu.CompilerParams(
            dimension_semantics=("parallel",)),
    )(x_flat, ws, bs, w5f, b5c, mask)

    # crop the 2 garbage columns per row and go back to NCHW
    out = out_flat.reshape(N, H, P)[:, :, :W]
    return out.reshape(N, 1, H, W)


def init_conv_params(key, cin, cout):
    """Deterministic init matching PyTorch Conv2d defaults (+-1/sqrt(fan_in))."""
    fan_in = cin * 3 * 3
    bound = 1.0 / math.sqrt(fan_in)
    kw, kb = jax.random.split(key)
    w = jax.random.uniform(kw, (3, 3, cin, cout), jnp.float32, -bound, bound)
    b = jax.random.uniform(kb, (cout,), jnp.float32, -bound, bound)
    return w, b


def init_level_attention_params(key, num_features_in, feature_size):
    keys = jax.random.split(key, 5)
    chans = [num_features_in, feature_size, feature_size, feature_size,
             feature_size, 1]
    return [init_conv_params(keys[i], chans[i], chans[i + 1]) for i in range(5)]


def _reference_forward(params, x_nchw):
    """Pure-JAX reference (lax.conv) for correctness checking."""
    x = jnp.transpose(x_nchw, (0, 2, 3, 1))
    acts = ["relu", "relu", "relu", "relu", "sigmoid"]
    for (w, b), act in zip(params, acts):
        x = lax.conv_general_dilated(
            x, w, window_strides=(1, 1), padding="SAME",
            dimension_numbers=("NHWC", "HWIO", "NHWC"))
        x = x + b[None, None, None, :]
        x = jnp.maximum(x, 0.0) if act == "relu" else jax.nn.sigmoid(x)
    return jnp.transpose(x, (0, 3, 1, 2))


if __name__ == "__main__":
    # Small shapes consistent with the module: batch=2, in-channels=4,
    # spatial=16x16, feature_size=32.
    N, C_IN, H, W = 2, 4, 16, 16
    FEATURE_SIZE = 32

    key = jax.random.PRNGKey(0)
    k_params, k_x = jax.random.split(key)
    params = init_level_attention_params(k_params, C_IN, FEATURE_SIZE)
    x = jax.random.normal(k_x, (N, C_IN, H, W), jnp.float32)

    fwd = jax.jit(level_attention_forward)
    out = jax.block_until_ready(fwd(params, x))

    ref = jax.block_until_ready(_reference_forward(params, x))
    assert out.shape == (N, 1, H, W), out.shape
    assert jnp.allclose(out, ref, atol=1e-4, rtol=1e-4), "mismatch vs reference"

    print("KERNEL_OK")
</pallas_src>

<mosaic_0001>
module attributes {stable_mosaic.version = 11 : i64} {
  func.func @_fused_level_attention_kernel(%arg0: i32, %arg1: memref<1x4x256xf32, #tpu.memory_space<vmem>>, %arg2: memref<4x32x288xf32, #tpu.memory_space<vmem>>, %arg3: memref<4x32x1xf32, #tpu.memory_space<vmem>>, %arg4: memref<8x288xf32, #tpu.memory_space<vmem>>, %arg5: memref<1x1xf32, #tpu.memory_space<vmem>>, %arg6: memref<1x288xf32, #tpu.memory_space<vmem>>, %arg7: memref<1x1x288xf32, #tpu.memory_space<vmem>>, %arg8: memref<32x384xf32, #tpu.memory_space<vmem>>, %arg9: memref<288x288xf32, #tpu.memory_space<vmem>>) attributes {dimension_semantics = [#tpu.dimension_semantics<parallel>], iteration_bounds = array<i64: 2>, scalar_prefetch = 0 : i64, scratch_operands = 2 : i64, tpu.core_type = #tpu.core_type<tc>, window_params = [{transform_indices = @transform_0, window_bounds = array<i64: 1, 4, 256>}, {pipeline_mode = #tpu.pipeline_mode<synchronous>, transform_indices = @transform_1, window_bounds = array<i64: 4, 32, 288>}, {pipeline_mode = #tpu.pipeline_mode<synchronous>, transform_indices = @transform_2, window_bounds = array<i64: 4, 32, 1>}, {pipeline_mode = #tpu.pipeline_mode<synchronous>, transform_indices = @transform_3, window_bounds = array<i64: 8, 288>}, {pipeline_mode = #tpu.pipeline_mode<synchronous>, transform_indices = @transform_4, window_bounds = array<i64: 1, 1>}, {pipeline_mode = #tpu.pipeline_mode<synchronous>, transform_indices = @transform_5, window_bounds = array<i64: 1, 288>}, {transform_indices = @transform_6, window_bounds = array<i64: 1, 1, 288>}]} {
    %cst = arith.constant 0.000000e+00 : f32
    %0 = vector.broadcast %cst : f32 to vector<32x384xf32>
    %c0 = arith.constant 0 : index
    %c0_0 = arith.constant 0 : index
    %1 = vector.load %arg8[%c0, %c0_0] : memref<32x384xf32, #tpu.memory_space<vmem>>, vector<32x384xf32>
    tpu.vector_store %arg8[%c0, %c0_0], %0 {strides = array<i32>} : memref<32x384xf32, #tpu.memory_space<vmem>>, vector<32x384xf32>,
    %c0_1 = arith.constant 0 : index
    %c0_2 = arith.constant 0 : index
    %c0_3 = arith.constant 0 : index
    %2 = vector.load %arg1[%c0_1, %c0_2, %c0_3] : memref<1x4x256xf32, #tpu.memory_space<vmem>>, vector<1x4x256xf32>
    %3 = vector.shape_cast %2 : vector<1x4x256xf32> to vector<4x256xf32>
    %4 = vector.extract_strided_slice %3 {offsets = [0, 0], sizes = [4, 16], strides = [1, 1]} : vector<4x256xf32> to vector<4x16xf32>
    %c0_4 = arith.constant 0 : index
    %c19 = arith.constant 19 : index
    %5 = vector.load %arg8[%c0_4, %c19] : memref<32x384xf32, #tpu.memory_space<vmem>>, vector<4x16xf32>
    tpu.vector_store %arg8[%c0_4, %c19], %4 {strides = array<i32>} : memref<32x384xf32, #tpu.memory_space<vmem>>, vector<4x16xf32>,
    %6 = vector.extract_strided_slice %3 {offsets = [0, 16], sizes = [4, 16], strides = [1, 1]} : vector<4x256xf32> to vector<4x16xf32>
    %c0_5 = arith.constant 0 : index
    %c37 = arith.constant 37 : index
    %7 = vector.load %arg8[%c0_5, %c37] : memref<32x384xf32, #tpu.memory_space<vmem>>, vector<4x16xf32>
    tpu.vector_store %arg8[%c0_5, %c37], %6 {strides = array<i32>} : memref<32x384xf32, #tpu.memory_space<vmem>>, vector<4x16xf32>,
    %8 = vector.extract_strided_slice %3 {offsets = [0, 32], sizes = [4, 16], strides = [1, 1]} : vector<4x256xf32> to vector<4x16xf32>
    %c0_6 = arith.constant 0 : index
    %c55 = arith.constant 55 : index
    %9 = vector.load %arg8[%c0_6, %c55] : memref<32x384xf32, #tpu.memory_space<vmem>>, vector<4x16xf32>
    tpu.vector_store %arg8[%c0_6, %c55], %8 {strides = array<i32>} : memref<32x384xf32, #tpu.memory_space<vmem>>, vector<4x16xf32>,
    %10 = vector.extract_strided_slice %3 {offsets = [0, 48], sizes = [4, 16], strides = [1, 1]} : vector<4x256xf32> to vector<4x16xf32>
    %c0_7 = arith.constant 0 : index
    %c73 = arith.constant 73 : index
    %11 = vector.load %arg8[%c0_7, %c73] : memref<32x384xf32, #tpu.memory_space<vmem>>, vector<4x16xf32>
    tpu.vector_store %arg8[%c0_7, %c73], %10 {strides = array<i32>} : memref<32x384xf32, #tpu.memory_space<vmem>>, vector<4x16xf32>,
    %12 = vector.extract_strided_slice %3 {offsets = [0, 64], sizes = [4, 16], strides = [1, 1]} : vector<4x256xf32> to vector<4x16xf32>
    %c0_8 = arith.constant 0 : index
    %c91 = arith.constant 91 : index
    %13 = vector.load %arg8[%c0_8, %c91] : memref<32x384xf32, #tpu.memory_space<vmem>>, vector<4x16xf32>
    tpu.vector_store %arg8[%c0_8, %c91], %12 {strides = array<i32>} : memref<32x384xf32, #tpu.memory_space<vmem>>, vector<4x16xf32>,
    %14 = vector.extract_strided_slice %3 {offsets = [0, 80], sizes = [4, 16], strides = [1, 1]} : vector<4x256xf32> to vector<4x16xf32>
    %c0_9 = arith.constant 0 : index
    %c109 = arith.constant 109 : index
    %15 = vector.load %arg8[%c0_9, %c109] : memref<32x384xf32, #tpu.memory_space<vmem>>, vector<4x16xf32>
    tpu.vector_store %arg8[%c0_9, %c109], %14 {strides = array<i32>} : memref<32x384xf32, #tpu.memory_space<vmem>>, vector<4x16xf32>,
    %16 = vector.extract_strided_slice %3 {offsets = [0, 96], sizes = [4, 16], strides = [1, 1]} : vector<4x256xf32> to vector<4x16xf32>
    %c0_10 = arith.constant 0 : index
    %c127 = arith.constant 127 : index
    %17 = vector.load %arg8[%c0_10, %c127] : memref<32x384xf32, #tpu.memory_space<vmem>>, vector<4x16xf32>
    tpu.vector_store %arg8[%c0_10, %c127], %16 {strides = array<i32>} : memref<32x384xf32, #tpu.memory_space<vmem>>, vector<4x16xf32>,
    %18 = vector.extract_strided_slice %3 {offsets = [0, 112], sizes = [4, 16], strides = [1, 1]} : vector<4x256xf32> to vector<4x16xf32>
    %c0_11 = arith.constant 0 : index
    %c145 = arith.constant 145 : index
    %19 = vector.load %arg8[%c0_11, %c145] : memref<32x384xf32, #tpu.memory_space<vmem>>, vector<4x16xf32>
    tpu.vector_store %arg8[%c0_11, %c145], %18 {strides = array<i32>} : memref<32x384xf32, #tpu.memory_space<vmem>>, vector<4x16xf32>,
    %20 = vector.extract_strided_slice %3 {offsets = [0, 128], sizes = [4, 16], strides = [1, 1]} : vector<4x256xf32> to vector<4x16xf32>
    %c0_12 = arith.constant 0 : index
    %c163 = arith.constant 163 : index
    %21 = vector.load %arg8[%c0_12, %c163] : memref<32x384xf32, #tpu.memory_space<vmem>>, vector<4x16xf32>
    tpu.vector_store %arg8[%c0_12, %c163], %20 {strides = array<i32>} : memref<32x384xf32, #tpu.memory_space<vmem>>, vector<4x16xf32>,
    %22 = vector.extract_strided_slice %3 {offsets = [0, 144], sizes = [4, 16], strides = [1, 1]} : vector<4x256xf32> to vector<4x16xf32>
    %c0_13 = arith.constant 0 : index
    %c181 = arith.constant 181 : index
    %23 = vector.load %arg8[%c0_13, %c181] : memref<32x384xf32, #tpu.memory_space<vmem>>, vector<4x16xf32>
    tpu.vector_store %arg8[%c0_13, %c181], %22 {strides = array<i32>} : memref<32x384xf32, #tpu.memory_space<vmem>>, vector<4x16xf32>,
    %24 = vector.extract_strided_slice %3 {offsets = [0, 160], sizes = [4, 16], strides = [1, 1]} : vector<4x256xf32> to vector<4x16xf32>
    %c0_14 = arith.constant 0 : index
    %c199 = arith.constant 199 : index
    %25 = vector.load %arg8[%c0_14, %c199] : memref<32x384xf32, #tpu.memory_space<vmem>>, vector<4x16xf32>
    tpu.vector_store %arg8[%c0_14, %c199], %24 {strides = array<i32>} : memref<32x384xf32, #tpu.memory_space<vmem>>, vector<4x16xf32>,
    %26 = vector.extract_strided_slice %3 {offsets = [0, 176], sizes = [4, 16], strides = [1, 1]} : vector<4x256xf32> to vector<4x16xf32>
    %c0_15 = arith.constant 0 : index
    %c217 = arith.constant 217 : index
    %27 = vector.load %arg8[%c0_15, %c217] : memref<32x384xf32, #tpu.memory_space<vmem>>, vector<4x16xf32>
    tpu.vector_store %arg8[%c0_15, %c217], %26 {strides = array<i32>} : memref<32x384xf32, #tpu.memory_space<vmem>>, vector<4x16xf32>,
    %28 = vector.extract_strided_slice %3 {offsets = [0, 192], sizes = [4, 16], strides = [1, 1]} : vector<4x256xf32> to vector<4x16xf32>
    %c0_16 = arith.constant 0 : index
    %c235 = arith.constant 235 : index
    %29 = vector.load %arg8[%c0_16, %c235] : memref<32x384xf32, #tpu.memory_space<vmem>>, vector<4x16xf32>
    tpu.vector_store %arg8[%c0_16, %c235], %28 {strides = array<i32>} : memref<32x384xf32, #tpu.memory_space<vmem>>, vector<4x16xf32>,
    %30 = vector.extract_strided_slice %3 {offsets = [0, 208], sizes = [4, 16], strides = [1, 1]} : vector<4x256xf32> to vector<4x16xf32>
    %c0_17 = arith.constant 0 : index
    %c253 = arith.constant 253 : index
    %31 = vector.load %arg8[%c0_17, %c253] : memref<32x384xf32, #tpu.memory_space<vmem>>, vector<4x16xf32>
    tpu.vector_store %arg8[%c0_17, %c253], %30 {strides = array<i32>} : memref<32x384xf32, #tpu.memory_space<vmem>>, vector<4x16xf32>,
    %32 = vector.extract_strided_slice %3 {offsets = [0, 224], sizes = [4, 16], strides = [1, 1]} : vector<4x256xf32> to vector<4x16xf32>
    %c0_18 = arith.constant 0 : index
    %c271 = arith.constant 271 : index
    %33 = vector.load %arg8[%c0_18, %c271] : memref<32x384xf32, #tpu.memory_space<vmem>>, vector<4x16xf32>
    tpu.vector_store %arg8[%c0_18, %c271], %32 {strides = array<i32>} : memref<32x384xf32, #tpu.memory_space<vmem>>, vector<4x16xf32>,
    %34 = vector.extract_strided_slice %3 {offsets = [0, 240], sizes = [4, 16], strides = [1, 1]} : vector<4x256xf32> to vector<4x16xf32>
    %c0_19 = arith.constant 0 : index
    %c289 = arith.constant 289 : index
    %35 = vector.load %arg8[%c0_19, %c289] : memref<32x384xf32, #tpu.memory_space<vmem>>, vector<4x16xf32>
    tpu.vector_store %arg8[%c0_19, %c289], %34 {strides = array<i32>} : memref<32x384xf32, #tpu.memory_space<vmem>>, vector<4x16xf32>,
    %c0_20 = arith.constant 0 : index
    %c0_21 = arith.constant 0 : index
    %36 = vector.load %arg6[%c0_20, %c0_21] : memref<1x288xf32, #tpu.memory_space<vmem>>, vector<1x288xf32>
    %c0_22 = arith.constant 0 : index
    %c0_23 = arith.constant 0 : index
    %37 = vector.load %arg8[%c0_22, %c0_23] : memref<32x384xf32, #tpu.memory_space<vmem>>, vector<32x288xf32>
    %c0_24 = arith.constant 0 : index
    %c0_25 = arith.constant 0 : index
    %38 = vector.load %arg9[%c0_24, %c0_25] : memref<288x288xf32, #tpu.memory_space<vmem>>, vector<32x288xf32>
    tpu.vector_store %arg9[%c0_24, %c0_25], %37 {strides = array<i32>} : memref<288x288xf32, #tpu.memory_space<vmem>>, vector<32x288xf32>,
    %c0_26 = arith.constant 0 : index
    %c1 = arith.constant 1 : index
    %39 = vector.load %arg8[%c0_26, %c1] : memref<32x384xf32, #tpu.memory_space<vmem>>, vector<32x288xf32>
    %c32 = arith.constant 32 : index
    %c0_27 = arith.constant 0 : index
    %40 = vector.load %arg9[%c32, %c0_27] : memref<288x288xf32, #tpu.memory_space<vmem>>, vector<32x288xf32>
    tpu.vector_store %arg9[%c32, %c0_27], %39 {strides = array<i32>} : memref<288x288xf32, #tpu.memory_space<vmem>>, vector<32x288xf32>,
    %c0_28 = arith.constant 0 : index
    %c2 = arith.constant 2 : index
    %41 = vector.load %arg8[%c0_28, %c2] : memref<32x384xf32, #tpu.memory_space<vmem>>, vector<32x288xf32>
    %c64 = arith.constant 64 : index
    %c0_29 = arith.constant 0 : index
    %42 = vector.load %arg9[%c64, %c0_29] : memref<288x288xf32, #tpu.memory_space<vmem>>, vector<32x288xf32>
    tpu.vector_store %arg9[%c64, %c0_29], %41 {strides = array<i32>} : memref<288x288xf32, #tpu.memory_space<vmem>>, vector<32x288xf32>,
    %c0_30 = arith.constant 0 : index
    %c18 = arith.constant 18 : index
    %43 = vector.load %arg8[%c0_30, %c18] : memref<32x384xf32, #tpu.memory_space<vmem>>, vector<32x288xf32>
    %c96 = arith.constant 96 : index
    %c0_31 = arith.constant 0 : index
    %44 = vector.load %arg9[%c96, %c0_31] : memref<288x288xf32, #tpu.memory_space<vmem>>, vector<32x288xf32>
    tpu.vector_store %arg9[%c96, %c0_31], %43 {strides = array<i32>} : memref<288x288xf32, #tpu.memory_space<vmem>>, vector<32x288xf32>,
    %c0_32 = arith.constant 0 : index
    %c19_33 = arith.constant 19 : index
    %45 = vector.load %arg8[%c0_32, %c19_33] : memref<32x384xf32, #tpu.memory_space<vmem>>, vector<32x288xf32>
    %c128 = arith.constant 128 : index
    %c0_34 = arith.constant 0 : index
    %46 = vector.load %arg9[%c128, %c0_34] : memref<288x288xf32, #tpu.memory_space<vmem>>, vector<32x288xf32>
    tpu.vector_store %arg9[%c128, %c0_34], %45 {strides = array<i32>} : memref<288x288xf32, #tpu.memory_space<vmem>>, vector<32x288xf32>,
    %c0_35 = arith.constant 0 : index
    %c20 = arith.constant 20 : index
    %47 = vector.load %arg8[%c0_35, %c20] : memref<32x384xf32, #tpu.memory_space<vmem>>, vector<32x288xf32>
    %c160 = arith.constant 160 : index
    %c0_36 = arith.constant 0 : index
    %48 = vector.load %arg9[%c160, %c0_36] : memref<288x288xf32, #tpu.memory_space<vmem>>, vector<32x288xf32>
    tpu.vector_store %arg9[%c160, %c0_36], %47 {strides = array<i32>} : memref<288x288xf32, #tpu.memory_space<vmem>>, vector<32x288xf32>,
    %c0_37 = arith.constant 0 : index
    %c36 = arith.constant 36 : index
    %49 = vector.load %arg8[%c0_37, %c36] : memref<32x384xf32, #tpu.memory_space<vmem>>, vector<32x288xf32>
    %c192 = arith.constant 192 : index
    %c0_38 = arith.constant 0 : index
    %50 = vector.load %arg9[%c192, %c0_38] : memref<288x288xf32, #tpu.memory_space<vmem>>, vector<32x288xf32>
    tpu.vector_store %arg9[%c192, %c0_38], %49 {strides = array<i32>} : memref<288x288xf32, #tpu.memory_space<vmem>>, vector<32x288xf32>,
    %c0_39 = arith.constant 0 : index
    %c37_40 = arith.constant 37 : index
    %51 = vector.load %arg8[%c0_39, %c37_40] : memref<32x384xf32, #tpu.memory_space<vmem>>, vector<32x288xf32>
    %c224 = arith.constant 224 : index
    %c0_41 = arith.constant 0 : index
    %52 = vector.load %arg9[%c224, %c0_41] : memref<288x288xf32, #tpu.memory_space<vmem>>, vector<32x288xf32>
    tpu.vector_store %arg9[%c224, %c0_41], %51 {strides = array<i32>} : memref<288x288xf32, #tpu.memory_space<vmem>>, vector<32x288xf32>,
    %c0_42 = arith.constant 0 : index
    %c38 = arith.constant 38 : index
    %53 = vector.load %arg8[%c0_42, %c38] : memref<32x384xf32, #tpu.memory_space<vmem>>, vector<32x288xf32>
    %c256 = arith.constant 256 : index
    %c0_43 = arith.constant 0 : index
    %54 = vector.load %arg9[%c256, %c0_43] : memref<288x288xf32, #tpu.memory_space<vmem>>, vector<32x288xf32>
    tpu.vector_store %arg9[%c256, %c0_43], %53 {strides = array<i32>} : memref<288x288xf32, #tpu.memory_space<vmem>>, vector<32x288xf32>,
    %c0_44 = arith.constant 0 : index
    %c0_45 = arith.constant 0 : index
    %c0_46 = arith.constant 0 : index
    %55 = vector.load %arg2[%c0_44, %c0_45, %c0_46] : memref<4x32x288xf32, #tpu.memory_space<vmem>>, vector<1x32x288xf32>
    %56 = vector.shape_cast %55 : vector<1x32x288xf32> to vector<32x288xf32>
    %c0_47 = arith.constant 0 : index
    %c0_48 = arith.constant 0 : index
    %57 = vector.load %arg9[%c0_47, %c0_48] : memref<288x288xf32, #tpu.memory_space<vmem>>, vector<288x288xf32>
    %cst_49 = arith.constant dense<0.000000e+00> : vector<32x288xf32>
    %58 = tpu.matmul %56, %57, %cst_49 {dimension_numbers = #tpu.dot_dimension_numbers<[1], [0], [0], [1], [0, 0, 1, 1], [], []>} : vector<32x288xf32>, vector<288x288xf32>, vector<32x288xf32> -> vector<32x288xf32>
    %c0_50 = arith.constant 0 : index
    %c0_51 = arith.constant 0 : index
    %c0_52 = arith.constant 0 : index
    %59 = vector.load %arg3[%c0_50, %c0_51, %c0_52] : memref<4x32x1xf32, #tpu.memory_space<vmem>>, vector<1x32x1xf32>
    %60 = vector.shape_cast %59 : vector<1x32x1xf32> to vector<32x1xf32>
    %61 = vector.broadcast %60 : vector<32x1xf32> to vector<32x288xf32>
    %62 = arith.addf %58, %61 : vector<32x288xf32>
    %cst_53 = arith.constant 0.000000e+00 : f32
    %63 = vector.broadcast %cst_53 : f32 to vector<32x288xf32>
    %64 = arith.maximumf %62, %63 : vector<32x288xf32>
    %65 = vector.broadcast %36 : vector<1x288xf32> to vector<32x288xf32>
    %66 = arith.mulf %64, %65 : vector<32x288xf32>
    %c0_54 = arith.constant 0 : index
    %c19_55 = arith.constant 19 : index
    %67 = vector.load %arg8[%c0_54, %c19_55] : memref<32x384xf32, #tpu.memory_space<vmem>>, vector<32x288xf32>
    tpu.vector_store %arg8[%c0_54, %c19_55], %66 {strides = array<i32>} : memref<32x384xf32, #tpu.memory_space<vmem>>, vector<32x288xf32>,
    %c0_56 = arith.constant 0 : index
    %c0_57 = arith.constant 0 : index
    %68 = vector.load %arg8[%c0_56, %c0_57] : memref<32x384xf32, #tpu.memory_space<vmem>>, vector<32x288xf32>
    %c0_58 = arith.constant 0 : index
    %c0_59 = arith.constant 0 : index
    %69 = vector.load %arg9[%c0_58, %c0_59] : memref<288x288xf32, #tpu.memory_space<vmem>>, vector<32x288xf32>
    tpu.vector_store %arg9[%c0_58, %c0_59], %68 {strides = array<i32>} : memref<288x288xf32, #tpu.memory_space<vmem>>, vector<32x288xf32>,
    %c0_60 = arith.constant 0 : index
    %c1_61 = arith.constant 1 : index
    %70 = vector.load %arg8[%c0_60, %c1_61] : memref<32x384xf32, #tpu.memory_space<vmem>>, vector<32x288xf32>
    %c32_62 = arith.constant 32 : index
    %c0_63 = arith.constant 0 : index
    %71 = vector.load %arg9[%c32_62, %c0_63] : memref<288x288xf32, #tpu.memory_space<vmem>>, vector<32x288xf32>
    tpu.vector_store %arg9[%c32_62, %c0_63], %70 {strides = array<i32>} : memref<288x288xf32, #tpu.memory_space<vmem>>, vector<32x288xf32>,
    %c0_64 = arith.constant 0 : index
    %c2_65 = arith.constant 2 : index
    %72 = vector.load %arg8[%c0_64, %c2_65] : memref<32x384xf32, #tpu.memory_space<vmem>>, vector<32x288xf32>
    %c64_66 = arith.constant 64 : index
    %c0_67 = arith.constant 0 : index
    %73 = vector.load %arg9[%c64_66, %c0_67] : memref<288x288xf32, #tpu.memory_space<vmem>>, vector<32x288xf32>
    tpu.vector_store %arg9[%c64_66, %c0_67], %72 {strides = array<i32>} : memref<288x288xf32, #tpu.memory_space<vmem>>, vector<32x288xf32>,
    %c0_68 = arith.constant 0 : index
    %c18_69 = arith.constant 18 : index
    %74 = vector.load %arg8[%c0_68, %c18_69] : memref<32x384xf32, #tpu.memory_space<vmem>>, vector<32x288xf32>
    %c96_70 = arith.constant 96 : index
    %c0_71 = arith.constant 0 : index
    %75 = vector.load %arg9[%c96_70, %c0_71] : memref<288x288xf32, #tpu.memory_space<vmem>>, vector<32x288xf32>
    tpu.vector_store %arg9[%c96_70, %c0_71], %74 {strides = array<i32>} : memref<288x288xf32, #tpu.memory_space<vmem>>, vector<32x288xf32>,
    %c0_72 = arith.constant 0 : index
    %c19_73 = arith.constant 19 : index
    %76 = vector.load %arg8[%c0_72, %c19_73] : memref<32x384xf32, #tpu.memory_space<vmem>>, vector<32x288xf32>
    %c128_74 = arith.constant 128 : index
    %c0_75 = arith.constant 0 : index
    %77 = vector.load %arg9[%c128_74, %c0_75] : memref<288x288xf32, #tpu.memory_space<vmem>>, vector<32x288xf32>
    tpu.vector_store %arg9[%c128_74, %c0_75], %76 {strides = array<i32>} : memref<288x288xf32, #tpu.memory_space<vmem>>, vector<32x288xf32>,
    %c0_76 = arith.constant 0 : index
    %c20_77 = arith.constant 20 : index
    %78 = vector.load %arg8[%c0_76, %c20_77] : memref<32x384xf32, #tpu.memory_space<vmem>>, vector<32x288xf32>
    %c160_78 = arith.constant 160 : index
    %c0_79 = arith.constant 0 : index
    %79 = vector.load %arg9[%c160_78, %c0_79] : memref<288x288xf32, #tpu.memory_space<vmem>>, vector<32x288xf32>
    tpu.vector_store %arg9[%c160_78, %c0_79], %78 {strides = array<i32>} : memref<288x288xf32, #tpu.memory_space<vmem>>, vector<32x288xf32>,
    %c0_80 = arith.constant 0 : index
    %c36_81 = arith.constant 36 : index
    %80 = vector.load %arg8[%c0_80, %c36_81] : memref<32x384xf32, #tpu.memory_space<vmem>>, vector<32x288xf32>
    %c192_82 = arith.constant 192 : index
    %c0_83 = arith.constant 0 : index
    %81 = vector.load %arg9[%c192_82, %c0_83] : memref<288x288xf32, #tpu.memory_space<vmem>>, vector<32x288xf32>
    tpu.vector_store %arg9[%c192_82, %c0_83], %80 {strides = array<i32>} : memref<288x288xf32, #tpu.memory_space<vmem>>, vector<32x288xf32>,
    %c0_84 = arith.constant 0 : index
    %c37_85 = arith.constant 37 : index
    %82 = vector.load %arg8[%c0_84, %c37_85] : memref<32x384xf32, #tpu.memory_space<vmem>>, vector<32x288xf32>
    %c224_86 = arith.constant 224 : index
    %c0_87 = arith.constant 0 : index
    %83 = vector.load %arg9[%c224_86, %c0_87] : memref<288x288xf32, #tpu.memory_space<vmem>>, vector<32x288xf32>
    tpu.vector_store %arg9[%c224_86, %c0_87], %82 {strides = array<i32>} : memref<288x288xf32, #tpu.memory_space<vmem>>, vector<32x288xf32>,
    %c0_88 = arith.constant 0 : index
    %c38_89 = arith.constant 38 : index
    %84 = vector.load %arg8[%c0_88, %c38_89] : memref<32x384xf32, #tpu.memory_space<vmem>>, vector<32x288xf32>
    %c256_90 = arith.constant 256 : index
    %c0_91 = arith.constant 0 : index
    %85 = vector.load %arg9[%c256_90, %c0_91] : memref<288x288xf32, #tpu.memory_space<vmem>>, vector<32x288xf32>
    tpu.vector_store %arg9[%c256_90, %c0_91], %84 {strides = array<i32>} : memref<288x288xf32, #tpu.memory_space<vmem>>, vector<32x288xf32>,
    %c1_92 = arith.constant 1 : index
    %c0_93 = arith.constant 0 : index
    %c0_94 = arith.constant 0 : index
    %86 = vector.load %arg2[%c1_92, %c0_93, %c0_94] : memref<4x32x288xf32, #tpu.memory_space<vmem>>, vector<1x32x288xf32>
    %87 = vector.shape_cast %86 : vector<1x32x288xf32> to vector<32x288xf32>
    %c0_95 = arith.constant 0 : index
    %c0_96 = arith.constant 0 : index
    %88 = vector.load %arg9[%c0_95, %c0_96] : memref<288x288xf32, #tpu.memory_space<vmem>>, vector<288x288xf32>
    %cst_97 = arith.constant dense<0.000000e+00> : vector<32x288xf32>
    %89 = tpu.matmul %87, %88, %cst_97 {dimension_numbers = #tpu.dot_dimension_numbers<[1], [0], [0], [1], [0, 0, 1, 1], [], []>} : vector<32x288xf32>, vector<288x288xf32>, vector<32x288xf32> -> vector<32x288xf32>
    %c1_98 = arith.constant 1 : index
    %c0_99 = arith.constant 0 : index
    %c0_100 = arith.constant 0 : index
    %90 = vector.load %arg3[%c1_98, %c0_99, %c0_100] : memref<4x32x1xf32, #tpu.memory_space<vmem>>, vector<1x32x1xf32>
    %91 = vector.shape_cast %90 : vector<1x32x1xf32> to vector<32x1xf32>
    %92 = vector.broadcast %91 : vector<32x1xf32> to vector<32x288xf32>
    %93 = arith.addf %89, %92 : vector<32x288xf32>
    %cst_101 = arith.constant 0.000000e+00 : f32
    %94 = vector.broadcast %cst_101 : f32 to vector<32x288xf32>
    %95 = arith.maximumf %93, %94 : vector<32x288xf32>
    %96 = vector.broadcast %36 : vector<1x288xf32> to vector<32x288xf32>
    %97 = arith.mulf %95, %96 : vector<32x288xf32>
    %c0_102 = arith.constant 0 : index
    %c19_103 = arith.constant 19 : index
    %98 = vector.load %arg8[%c0_102, %c19_103] : memref<32x384xf32, #tpu.memory_space<vmem>>, vector<32x288xf32>
    tpu.vector_store %arg8[%c0_102, %c19_103], %97 {strides = array<i32>} : memref<32x384xf32, #tpu.memory_space<vmem>>, vector<32x288xf32>,
    %c0_104 = arith.constant 0 : index
    %c0_105 = arith.constant 0 : index
    %99 = vector.load %arg8[%c0_104, %c0_105] : memref<32x384xf32, #tpu.memory_space<vmem>>, vector<32x288xf32>
    %c0_106 = arith.constant 0 : index
    %c0_107 = arith.constant 0 : index
    %100 = vector.load %arg9[%c0_106, %c0_107] : memref<288x288xf32, #tpu.memory_space<vmem>>, vector<32x288xf32>
    tpu.vector_store %arg9[%c0_106, %c0_107], %99 {strides = array<i32>} : memref<288x288xf32, #tpu.memory_space<vmem>>, vector<32x288xf32>,
    %c0_108 = arith.constant 0 : index
    %c1_109 = arith.constant 1 : index
    %101 = vector.load %arg8[%c0_108, %c1_109] : memref<32x384xf32, #tpu.memory_space<vmem>>, vector<32x288xf32>
    %c32_110 = arith.constant 32 : index
    %c0_111 = arith.constant 0 : index
    %102 = vector.load %arg9[%c32_110, %c0_111] : memref<288x288xf32, #tpu.memory_space<vmem>>, vector<32x288xf32>
    tpu.vector_store %arg9[%c32_110, %c0_111], %101 {strides = array<i32>} : memref<288x288xf32, #tpu.memory_space<vmem>>, vector<32x288xf32>,
    %c0_112 = arith.constant 0 : index
    %c2_113 = arith.constant 2 : index
    %103 = vector.load %arg8[%c0_112, %c2_113] : memref<32x384xf32, #tpu.memory_space<vmem>>, vector<32x288xf32>
    %c64_114 = arith.constant 64 : index
    %c0_115 = arith.constant 0 : index
    %104 = vector.load %arg9[%c64_114, %c0_115] : memref<288x288xf32, #tpu.memory_space<vmem>>, vector<32x288xf32>
    tpu.vector_store %arg9[%c64_114, %c0_115], %103 {strides = array<i32>} : memref<288x288xf32, #tpu.memory_space<vmem>>, vector<32x288xf32>,
    %c0_116 = arith.constant 0 : index
    %c18_117 = arith.constant 18 : index
    %105 = vector.load %arg8[%c0_116, %c18_117] : memref<32x384xf32, #tpu.memory_space<vmem>>, vector<32x288xf32>
    %c96_118 = arith.constant 96 : index
    %c0_119 = arith.constant 0 : index
    %106 = vector.load %arg9[%c96_118, %c0_119] : memref<288x288xf32, #tpu.memory_space<vmem>>, vector<32x288xf32>
    tpu.vector_store %arg9[%c96_118, %c0_119], %105 {strides = array<i32>} : memref<288x288xf32, #tpu.memory_space<vmem>>, vector<32x288xf32>,
    %c0_120 = arith.constant 0 : index
    %c19_121 = arith.constant 19 : index
    %107 = vector.load %arg8[%c0_120, %c19_121] : memref<32x384xf32, #tpu.memory_space<vmem>>, vector<32x288xf32>
    %c128_122 = arith.constant 128 : index
    %c0_123 = arith.constant 0 : index
    %108 = vector.load %arg9[%c128_122, %c0_123] : memref<288x288xf32, #tpu.memory_space<vmem>>, vector<32x288xf32>
    tpu.vector_store %arg9[%c128_122, %c0_123], %107 {strides = array<i32>} : memref<288x288xf32, #tpu.memory_space<vmem>>, vector<32x288xf32>,
    %c0_124 = arith.constant 0 : index
    %c20_125 = arith.constant 20 : index
    %109 = vector.load %arg8[%c0_124, %c20_125] : memref<32x384xf32, #tpu.memory_space<vmem>>, vector<32x288xf32>
    %c160_126 = arith.constant 160 : index
    %c0_127 = arith.constant 0 : index
    %110 = vector.load %arg9[%c160_126, %c0_127] : memref<288x288xf32, #tpu.memory_space<vmem>>, vector<32x288xf32>
    tpu.vector_store %arg9[%c160_126, %c0_127], %109 {strides = array<i32>} : memref<288x288xf32, #tpu.memory_space<vmem>>, vector<32x288xf32>,
    %c0_128 = arith.constant 0 : index
    %c36_129 = arith.constant 36 : index
    %111 = vector.load %arg8[%c0_128, %c36_129] : memref<32x384xf32, #tpu.memory_space<vmem>>, vector<32x288xf32>
    %c192_130 = arith.constant 192 : index
    %c0_131 = arith.constant 0 : index
    %112 = vector.load %arg9[%c192_130, %c0_131] : memref<288x288xf32, #tpu.memory_space<vmem>>, vector<32x288xf32>
    tpu.vector_store %arg9[%c192_130, %c0_131], %111 {strides = array<i32>} : memref<288x288xf32, #tpu.memory_space<vmem>>, vector<32x288xf32>,
    %c0_132 = arith.constant 0 : index
    %c37_133 = arith.constant 37 : index
    %113 = vector.load %arg8[%c0_132, %c37_133] : memref<32x384xf32, #tpu.memory_space<vmem>>, vector<32x288xf32>
    %c224_134 = arith.constant 224 : index
    %c0_135 = arith.constant 0 : index
    %114 = vector.load %arg9[%c224_134, %c0_135] : memref<288x288xf32, #tpu.memory_space<vmem>>, vector<32x288xf32>
    tpu.vector_store %arg9[%c224_134, %c0_135], %113 {strides = array<i32>} : memref<288x288xf32, #tpu.memory_space<vmem>>, vector<32x288xf32>,
    %c0_136 = arith.constant 0 : index
    %c38_137 = arith.constant 38 : index
    %115 = vector.load %arg8[%c0_136, %c38_137] : memref<32x384xf32, #tpu.memory_space<vmem>>, vector<32x288xf32>
    %c256_138 = arith.constant 256 : index
    %c0_139 = arith.constant 0 : index
    %116 = vector.load %arg9[%c256_138, %c0_139] : memref<288x288xf32, #tpu.memory_space<vmem>>, vector<32x288xf32>
    tpu.vector_store %arg9[%c256_138, %c0_139], %115 {strides = array<i32>} : memref<288x288xf32, #tpu.memory_space<vmem>>, vector<32x288xf32>,
    %c2_140 = arith.constant 2 : index
    %c0_141 = arith.constant 0 : index
    %c0_142 = arith.constant 0 : index
    %117 = vector.load %arg2[%c2_140, %c0_141, %c0_142] : memref<4x32x288xf32, #tpu.memory_space<vmem>>, vector<1x32x288xf32>
    %118 = vector.shape_cast %117 : vector<1x32x288xf32> to vector<32x288xf32>
    %c0_143 = arith.constant 0 : index
    %c0_144 = arith.constant 0 : index
    %119 = vector.load %arg9[%c0_143, %c0_144] : memref<288x288xf32, #tpu.memory_space<vmem>>, vector<288x288xf32>
    %cst_145 = arith.constant dense<0.000000e+00> : vector<32x288xf32>
    %120 = tpu.matmul %118, %119, %cst_145 {dimension_numbers = #tpu.dot_dimension_numbers<[1], [0], [0], [1], [0, 0, 1, 1], [], []>} : vector<32x288xf32>, vector<288x288xf32>, vector<32x288xf32> -> vector<32x288xf32>
    %c2_146 = arith.constant 2 : index
    %c0_147 = arith.constant 0 : index
    %c0_148 = arith.constant 0 : index
    %121 = vector.load %arg3[%c2_146, %c0_147, %c0_148] : memref<4x32x1xf32, #tpu.memory_space<vmem>>, vector<1x32x1xf32>
    %122 = vector.shape_cast %121 : vector<1x32x1xf32> to vector<32x1xf32>
    %123 = vector.broadcast %122 : vector<32x1xf32> to vector<32x288xf32>
    %124 = arith.addf %120, %123 : vector<32x288xf32>
    %cst_149 = arith.constant 0.000000e+00 : f32
    %125 = vector.broadcast %cst_149 : f32 to vector<32x288xf32>
    %126 = arith.maximumf %124, %125 : vector<32x288xf32>
    %127 = vector.broadcast %36 : vector<1x288xf32> to vector<32x288xf32>
    %128 = arith.mulf %126, %127 : vector<32x288xf32>
    %c0_150 = arith.constant 0 : index
    %c19_151 = arith.constant 19 : index
    %129 = vector.load %arg8[%c0_150, %c19_151] : memref<32x384xf32, #tpu.memory_space<vmem>>, vector<32x288xf32>
    tpu.vector_store %arg8[%c0_150, %c19_151], %128 {strides = array<i32>} : memref<32x384xf32, #tpu.memory_space<vmem>>, vector<32x288xf32>,
    %c0_152 = arith.constant 0 : index
    %c0_153 = arith.constant 0 : index
    %130 = vector.load %arg8[%c0_152, %c0_153] : memref<32x384xf32, #tpu.memory_space<vmem>>, vector<32x288xf32>
    %c0_154 = arith.constant 0 : index
    %c0_155 = arith.constant 0 : index
    %131 = vector.load %arg9[%c0_154, %c0_155] : memref<288x288xf32, #tpu.memory_space<vmem>>, vector<32x288xf32>
    tpu.vector_store %arg9[%c0_154, %c0_155], %130 {strides = array<i32>} : memref<288x288xf32, #tpu.memory_space<vmem>>, vector<32x288xf32>,
    %c0_156 = arith.constant 0 : index
    %c1_157 = arith.constant 1 : index
    %132 = vector.load %arg8[%c0_156, %c1_157] : memref<32x384xf32, #tpu.memory_space<vmem>>, vector<32x288xf32>
    %c32_158 = arith.constant 32 : index
    %c0_159 = arith.constant 0 : index
    %133 = vector.load %arg9[%c32_158, %c0_159] : memref<288x288xf32, #tpu.memory_space<vmem>>, vector<32x288xf32>
    tpu.vector_store %arg9[%c32_158, %c0_159], %132 {strides = array<i32>} : memref<288x288xf32, #tpu.memory_space<vmem>>, vector<32x288xf32>,
    %c0_160 = arith.constant 0 : index
    %c2_161 = arith.constant 2 : index
    %134 = vector.load %arg8[%c0_160, %c2_161] : memref<32x384xf32, #tpu.memory_space<vmem>>, vector<32x288xf32>
    %c64_162 = arith.constant 64 : index
    %c0_163 = arith.constant 0 : index
    %135 = vector.load %arg9[%c64_162, %c0_163] : memref<288x288xf32, #tpu.memory_space<vmem>>, vector<32x288xf32>
    tpu.vector_store %arg9[%c64_162, %c0_163], %134 {strides = array<i32>} : memref<288x288xf32, #tpu.memory_space<vmem>>, vector<32x288xf32>,
    %c0_164 = arith.constant 0 : index
    %c18_165 = arith.constant 18 : index
    %136 = vector.load %arg8[%c0_164, %c18_165] : memref<32x384xf32, #tpu.memory_space<vmem>>, vector<32x288xf32>
    %c96_166 = arith.constant 96 : index
    %c0_167 = arith.constant 0 : index
    %137 = vector.load %arg9[%c96_166, %c0_167] : memref<288x288xf32, #tpu.memory_space<vmem>>, vector<32x288xf32>
    tpu.vector_store %arg9[%c96_166, %c0_167], %136 {strides = array<i32>} : memref<288x288xf32, #tpu.memory_space<vmem>>, vector<32x288xf32>,
    %c0_168 = arith.constant 0 : index
    %c19_169 = arith.constant 19 : index
    %138 = vector.load %arg8[%c0_168, %c19_169] : memref<32x384xf32, #tpu.memory_space<vmem>>, vector<32x288xf32>
    %c128_170 = arith.constant 128 : index
    %c0_171 = arith.constant 0 : index
    %139 = vector.load %arg9[%c128_170, %c0_171] : memref<288x288xf32, #tpu.memory_space<vmem>>, vector<32x288xf32>
    tpu.vector_store %arg9[%c128_170, %c0_171], %138 {strides = array<i32>} : memref<288x288xf32, #tpu.memory_space<vmem>>, vector<32x288xf32>,
    %c0_172 = arith.constant 0 : index
    %c20_173 = arith.constant 20 : index
    %140 = vector.load %arg8[%c0_172, %c20_173] : memref<32x384xf32, #tpu.memory_space<vmem>>, vector<32x288xf32>
    %c160_174 = arith.constant 160 : index
    %c0_175 = arith.constant 0 : index
    %141 = vector.load %arg9[%c160_174, %c0_175] : memref<288x288xf32, #tpu.memory_space<vmem>>, vector<32x288xf32>
    tpu.vector_store %arg9[%c160_174, %c0_175], %140 {strides = array<i32>} : memref<288x288xf32, #tpu.memory_space<vmem>>, vector<32x288xf32>,
    %c0_176 = arith.constant 0 : index
    %c36_177 = arith.constant 36 : index
    %142 = vector.load %arg8[%c0_176, %c36_177] : memref<32x384xf32, #tpu.memory_space<vmem>>, vector<32x288xf32>
    %c192_178 = arith.constant 192 : index
    %c0_179 = arith.constant 0 : index
    %143 = vector.load %arg9[%c192_178, %c0_179] : memref<288x288xf32, #tpu.memory_space<vmem>>, vector<32x288xf32>
    tpu.vector_store %arg9[%c192_178, %c0_179], %142 {strides = array<i32>} : memref<288x288xf32, #tpu.memory_space<vmem>>, vector<32x288xf32>,
    %c0_180 = arith.constant 0 : index
    %c37_181 = arith.constant 37 : index
    %144 = vector.load %arg8[%c0_180, %c37_181] : memref<32x384xf32, #tpu.memory_space<vmem>>, vector<32x288xf32>
    %c224_182 = arith.constant 224 : index
    %c0_183 = arith.constant 0 : index
    %145 = vector.load %arg9[%c224_182, %c0_183] : memref<288x288xf32, #tpu.memory_space<vmem>>, vector<32x288xf32>
    tpu.vector_store %arg9[%c224_182, %c0_183], %144 {strides = array<i32>} : memref<288x288xf32, #tpu.memory_space<vmem>>, vector<32x288xf32>,
    %c0_184 = arith.constant 0 : index
    %c38_185 = arith.constant 38 : index
    %146 = vector.load %arg8[%c0_184, %c38_185] : memref<32x384xf32, #tpu.memory_space<vmem>>, vector<32x288xf32>
    %c256_186 = arith.constant 256 : index
    %c0_187 = arith.constant 0 : index
    %147 = vector.load %arg9[%c256_186, %c0_187] : memref<288x288xf32, #tpu.memory_space<vmem>>, vector<32x288xf32>
    tpu.vector_store %arg9[%c256_186, %c0_187], %146 {strides = array<i32>} : memref<288x288xf32, #tpu.memory_space<vmem>>, vector<32x288xf32>,
    %c3 = arith.constant 3 : index
    %c0_188 = arith.constant 0 : index
    %c0_189 = arith.constant 0 : index
    %148 = vector.load %arg2[%c3, %c0_188, %c0_189] : memref<4x32x288xf32, #tpu.memory_space<vmem>>, vector<1x32x288xf32>
    %149 = vector.shape_cast %148 : vector<1x32x288xf32> to vector<32x288xf32>
    %c0_190 = arith.constant 0 : index
    %c0_191 = arith.constant 0 : index
    %150 = vector.load %arg9[%c0_190, %c0_191] : memref<288x288xf32, #tpu.memory_space<vmem>>, vector<288x288xf32>
    %cst_192 = arith.constant dense<0.000000e+00> : vector<32x288xf32>
    %151 = tpu.matmul %149, %150, %cst_192 {dimension_numbers = #tpu.dot_dimension_numbers<[1], [0], [0], [1], [0, 0, 1, 1], [], []>} : vector<32x288xf32>, vector<288x288xf32>, vector<32x288xf32> -> vector<32x288xf32>
    %c3_193 = arith.constant 3 : index
    %c0_194 = arith.constant 0 : index
    %c0_195 = arith.constant 0 : index
    %152 = vector.load %arg3[%c3_193, %c0_194, %c0_195] : memref<4x32x1xf32, #tpu.memory_space<vmem>>, vector<1x32x1xf32>
    %153 = vector.shape_cast %152 : vector<1x32x1xf32> to vector<32x1xf32>
    %154 = vector.broadcast %153 : vector<32x1xf32> to vector<32x288xf32>
    %155 = arith.addf %151, %154 : vector<32x288xf32>
    %cst_196 = arith.constant 0.000000e+00 : f32
    %156 = vector.broadcast %cst_196 : f32 to vector<32x288xf32>
    %157 = arith.maximumf %155, %156 : vector<32x288xf32>
    %158 = vector.broadcast %36 : vector<1x288xf32> to vector<32x288xf32>
    %159 = arith.mulf %157, %158 : vector<32x288xf32>
    %c0_197 = arith.constant 0 : index
    %c19_198 = arith.constant 19 : index
    %160 = vector.load %arg8[%c0_197, %c19_198] : memref<32x384xf32, #tpu.memory_space<vmem>>, vector<32x288xf32>
    tpu.vector_store %arg8[%c0_197, %c19_198], %159 {strides = array<i32>} : memref<32x384xf32, #tpu.memory_space<vmem>>, vector<32x288xf32>,
    %c0_199 = arith.constant 0 : index
    %c0_200 = arith.constant 0 : index
    %161 = vector.load %arg8[%c0_199, %c0_200] : memref<32x384xf32, #tpu.memory_space<vmem>>, vector<32x288xf32>
    %c0_201 = arith.constant 0 : index
    %c0_202 = arith.constant 0 : index
    %162 = vector.load %arg9[%c0_201, %c0_202] : memref<288x288xf32, #tpu.memory_space<vmem>>, vector<32x288xf32>
    tpu.vector_store %arg9[%c0_201, %c0_202], %161 {strides = array<i32>} : memref<288x288xf32, #tpu.memory_space<vmem>>, vector<32x288xf32>,
    %c0_203 = arith.constant 0 : index
    %c1_204 = arith.constant 1 : index
    %163 = vector.load %arg8[%c0_203, %c1_204] : memref<32x384xf32, #tpu.memory_space<vmem>>, vector<32x288xf32>
    %c32_205 = arith.constant 32 : index
    %c0_206 = arith.constant 0 : index
    %164 = vector.load %arg9[%c32_205, %c0_206] : memref<288x288xf32, #tpu.memory_space<vmem>>, vector<32x288xf32>
    tpu.vector_store %arg9[%c32_205, %c0_206], %163 {strides = array<i32>} : memref<288x288xf32, #tpu.memory_space<vmem>>, vector<32x288xf32>,
    %c0_207 = arith.constant 0 : index
    %c2_208 = arith.constant 2 : index
    %165 = vector.load %arg8[%c0_207, %c2_208] : memref<32x384xf32, #tpu.memory_space<vmem>>, vector<32x288xf32>
    %c64_209 = arith.constant 64 : index
    %c0_210 = arith.constant 0 : index
    %166 = vector.load %arg9[%c64_209, %c0_210] : memref<288x288xf32, #tpu.memory_space<vmem>>, vector<32x288xf32>
    tpu.vector_store %arg9[%c64_209, %c0_210], %165 {strides = array<i32>} : memref<288x288xf32, #tpu.memory_space<vmem>>, vector<32x288xf32>,
    %c0_211 = arith.constant 0 : index
    %c18_212 = arith.constant 18 : index
    %167 = vector.load %arg8[%c0_211, %c18_212] : memref<32x384xf32, #tpu.memory_space<vmem>>, vector<32x288xf32>
    %c96_213 = arith.constant 96 : index
    %c0_214 = arith.constant 0 : index
    %168 = vector.load %arg9[%c96_213, %c0_214] : memref<288x288xf32, #tpu.memory_space<vmem>>, vector<32x288xf32>
    tpu.vector_store %arg9[%c96_213, %c0_214], %167 {strides = array<i32>} : memref<288x288xf32, #tpu.memory_space<vmem>>, vector<32x288xf32>,
    %c0_215 = arith.constant 0 : index
    %c19_216 = arith.constant 19 : index
    %169 = vector.load %arg8[%c0_215, %c19_216] : memref<32x384xf32, #tpu.memory_space<vmem>>, vector<32x288xf32>
    %c128_217 = arith.constant 128 : index
    %c0_218 = arith.constant 0 : index
    %170 = vector.load %arg9[%c128_217, %c0_218] : memref<288x288xf32, #tpu.memory_space<vmem>>, vector<32x288xf32>
    tpu.vector_store %arg9[%c128_217, %c0_218], %169 {strides = array<i32>} : memref<288x288xf32, #tpu.memory_space<vmem>>, vector<32x288xf32>,
    %c0_219 = arith.constant 0 : index
    %c20_220 = arith.constant 20 : index
    %171 = vector.load %arg8[%c0_219, %c20_220] : memref<32x384xf32, #tpu.memory_space<vmem>>, vector<32x288xf32>
    %c160_221 = arith.constant 160 : index
    %c0_222 = arith.constant 0 : index
    %172 = vector.load %arg9[%c160_221, %c0_222] : memref<288x288xf32, #tpu.memory_space<vmem>>, vector<32x288xf32>
    tpu.vector_store %arg9[%c160_221, %c0_222], %171 {strides = array<i32>} : memref<288x288xf32, #tpu.memory_space<vmem>>, vector<32x288xf32>,
    %c0_223 = arith.constant 0 : index
    %c36_224 = arith.constant 36 : index
    %173 = vector.load %arg8[%c0_223, %c36_224] : memref<32x384xf32, #tpu.memory_space<vmem>>, vector<32x288xf32>
    %c192_225 = arith.constant 192 : index
    %c0_226 = arith.constant 0 : index
    %174 = vector.load %arg9[%c192_225, %c0_226] : memref<288x288xf32, #tpu.memory_space<vmem>>, vector<32x288xf32>
    tpu.vector_store %arg9[%c192_225, %c0_226], %173 {strides = array<i32>} : memref<288x288xf32, #tpu.memory_space<vmem>>, vector<32x288xf32>,
    %c0_227 = arith.constant 0 : index
    %c37_228 = arith.constant 37 : index
    %175 = vector.load %arg8[%c0_227, %c37_228] : memref<32x384xf32, #tpu.memory_space<vmem>>, vector<32x288xf32>
    %c224_229 = arith.constant 224 : index
    %c0_230 = arith.constant 0 : index
    %176 = vector.load %arg9[%c224_229, %c0_230] : memref<288x288xf32, #tpu.memory_space<vmem>>, vector<32x288xf32>
    tpu.vector_store %arg9[%c224_229, %c0_230], %175 {strides = array<i32>} : memref<288x288xf32, #tpu.memory_space<vmem>>, vector<32x288xf32>,
    %c0_231 = arith.constant 0 : index
    %c38_232 = arith.constant 38 : index
    %177 = vector.load %arg8[%c0_231, %c38_232] : memref<32x384xf32, #tpu.memory_space<vmem>>, vector<32x288xf32>
    %c256_233 = arith.constant 256 : index
    %c0_234 = arith.constant 0 : index
    %178 = vector.load %arg9[%c256_233, %c0_234] : memref<288x288xf32, #tpu.memory_space<vmem>>, vector<32x288xf32>
    tpu.vector_store %arg9[%c256_233, %c0_234], %177 {strides = array<i32>} : memref<288x288xf32, #tpu.memory_space<vmem>>, vector<32x288xf32>,
    %c0_235 = arith.constant 0 : index
    %c0_236 = arith.constant 0 : index
    %179 = vector.load %arg4[%c0_235, %c0_236] : memref<8x288xf32, #tpu.memory_space<vmem>>, vector<8x288xf32>
    %c0_237 = arith.constant 0 : index
    %c0_238 = arith.constant 0 : index
    %180 = vector.load %arg9[%c0_237, %c0_238] : memref<288x288xf32, #tpu.memory_space<vmem>>, vector<288x288xf32>
    %cst_239 = arith.constant dense<0.000000e+00> : vector<8x288xf32>
    %181 = tpu.matmul %179, %180, %cst_239 {dimension_numbers = #tpu.dot_dimension_numbers<[1], [0], [0], [1], [0, 0, 1, 1], [], []>} : vector<8x288xf32>, vector<288x288xf32>, vector<8x288xf32> -> vector<8x288xf32>
    %182 = vector.extract_strided_slice %181 {offsets = [0, 0], sizes = [1, 288], strides = [1, 1]} : vector<8x288xf32> to vector<1x288xf32>
    %c0_240 = arith.constant 0 : index
    %c0_241 = arith.constant 0 : index
    %183 = vector.load %arg5[%c0_240, %c0_241] : memref<1x1xf32, #tpu.memory_space<vmem>>, vector<1x1xf32>
    %184 = vector.broadcast %183 : vector<1x1xf32> to vector<1x288xf32>
    %185 = arith.addf %182, %184 : vector<1x288xf32>
    %186 = arith.negf %185 : vector<1x288xf32>
    %187 = math.exp %186 : vector<1x288xf32>
    %cst_242 = arith.constant 1.000000e+00 : f32
    %188 = vector.broadcast %cst_242 : f32 to vector<1x288xf32>
    %189 = arith.addf %188, %187 : vector<1x288xf32>
    %190 = arith.divf %188, %189 : vector<1x288xf32>
    %c0_243 = arith.constant 0 : index
    %c0_244 = arith.constant 0 : index
    %c0_245 = arith.constant 0 : index
    %191 = vector.load %arg7[%c0_243, %c0_244, %c0_245] : memref<1x1x288xf32, #tpu.memory_space<vmem>>, vector<1x1x288xf32>
    %192 = vector.shape_cast %191 : vector<1x1x288xf32> to vector<1x288xf32>
    %193 = vector.shape_cast %190 : vector<1x288xf32> to vector<1x1x288xf32>
    tpu.vector_store %arg7[%c0_243, %c0_244, %c0_245], %193 {strides = array<i32>} : memref<1x1x288xf32, #tpu.memory_space<vmem>>, vector<1x1x288xf32>,
    return
  }
  func.func @transform_0(%arg0: i32) -> (i32, i32, i32) {
    %c0_i32 = arith.constant 0 : i32
    %c0_i32_0 = arith.constant 0 : i32
    %c0_i32_1 = arith.constant 0 : i32
    return %arg0, %c0_i32, %c0_i32_0 : i32, i32, i32
  }
  func.func @transform_1(%arg0: i32) -> (i32, i32, i32) {
    %c0_i32 = arith.constant 0 : i32
    %c0_i32_0 = arith.constant 0 : i32
    %c0_i32_1 = arith.constant 0 : i32
    %c0_i32_2 = arith.constant 0 : i32
    return %c0_i32, %c0_i32_0, %c0_i32_1 : i32, i32, i32
  }
  func.func @transform_2(%arg0: i32) -> (i32, i32, i32) {
    %c0_i32 = arith.constant 0 : i32
    %c0_i32_0 = arith.constant 0 : i32
    %c0_i32_1 = arith.constant 0 : i32
    %c0_i32_2 = arith.constant 0 : i32
    return %c0_i32, %c0_i32_0, %c0_i32_1 : i32, i32, i32
  }
  func.func @transform_3(%arg0: i32) -> (i32, i32) {
    %c0_i32 = arith.constant 0 : i32
    %c0_i32_0 = arith.constant 0 : i32
    %c0_i32_1 = arith.constant 0 : i32
    return %c0_i32, %c0_i32_0 : i32, i32
  }
  func.func @transform_4(%arg0: i32) -> (i32, i32) {
    %c0_i32 = arith.constant 0 : i32
    %c0_i32_0 = arith.constant 0 : i32
    %c0_i32_1 = arith.constant 0 : i32
    return %c0_i32, %c0_i32_0 : i32, i32
  }
  func.func @transform_5(%arg0: i32) -> (i32, i32) {
    %c0_i32 = arith.constant 0 : i32
    %c0_i32_0 = arith.constant 0 : i32
    %c0_i32_1 = arith.constant 0 : i32
    return %c0_i32, %c0_i32_0 : i32, i32
  }
  func.func @transform_6(%arg0: i32) -> (i32, i32, i32) {
    %c0_i32 = arith.constant 0 : i32
    %c0_i32_0 = arith.constant 0 : i32
    %c0_i32_1 = arith.constant 0 : i32
    return %arg0, %c0_i32, %c0_i32_0 : i32, i32, i32
  }
}

</mosaic_0001>

<bundles_post_ra>
// kernel: level_attention_forward.1
= control target key start
LH: loop header
LB: loop body
LE: loop exit
PB: predicated region body
PF: predicated region fallthrough
CT: control target
= control target key end

     0   :  { %s6587_s23 = smov 0   ;;  %s10266_s0 = inlined_call_operand.vmem [shape: f32[2,4,256], index: 0, kind: input, shape index: {}]   ;;  %s10267_s1 = inlined_call_operand.vmem [shape: f32[4,32,288], index: 1, kind: input, shape index: {}]   ;;  %s10268_s2 = inlined_call_operand.vmem [shape: f32[4,32,1], index: 2, kind: input, shape index: {}]   ;;  %s10269_s3 = inlined_call_operand.vmem [shape: f32[8,288], index: 3, kind: input, shape index: {}]   ;;  %s10270_s4 = inlined_call_operand.<no memory space> [shape: f32[1,1], index: 4, kind: input, shape index: {}]   ;;  %s10271_s5 = inlined_call_operand.vmem [shape: f32[1,288], index: 5, kind: input, shape index: {}]   ;;  %s10272_s6 = inlined_call_operand.vmem [shape: f32[2,1,288], index: 6, kind: output, shape index: {}]  }
   0x1   :  { %v11_v0 = vstv %s10270_s4 }
   0x2   :  { %12 = vst [vmem:[#allocation4] sm:$0x1] %v11_v0 }
   0x3 LB: > { %s6193_s24 = sadd.s32 4294967295, %s6521_s23   ;;  %p6197_p0 = scmp.ge.s32.totalorder %s6521_s23, 1  ;;  %s6521_s23 = sphi %s6587_s23, %s18_s23  }
   0x4   : > { %p214_p1 = scmp.lt.s32.totalorder %s6521_s23, 3 }
   0x6   : > { %p215_p2 = pnand %p6197_p0, %p214_p1 }
   0x8   : > { %218 = sbr.rel (%p215_p2) target bundleno = 3060 (0xbf4), region = 44 }
   0xd   : > { %p243_p3 = scmp.lt.s32.totalorder %s6193_s24, 1  ;;  %v6523_v1 = vmov 0.0   ;;  %s6524_s4 = smov 127   ;;  %vm397_vm0 = vcmask 261120   ;;  %vm456_vm1 = vcmask 1039360   ;;  %vm618_vm2 = vcmask 900096  }
   0xe   : > { %260 = vst [vmem:[#allocation2 + $0x40] sm:$0xff] %v6523_v1  ;;  %6351 = vrot.lane.b32.xlu0 %v6523_v1, %s6524_s4  ;;  %6341 = vrot.lane.b32.xlu1 %v6523_v1, %s6524_s4  ;;  %s6525_s29 = smov 19   ;;  %s6526_s30 = smov 126   ;;  %vm271_vm3 = vcmask 281752   ;;  %vm278_vm4 = vcmask 429352   ;;  %vm285_vm5 = vcmask 576952  }
   0xf   : > { %252 = vst [vmem:[#allocation2] sm:$0xff] %v6523_v1  ;;  %s10378_s24 = smov (!%p243_p3, %s6193_s24), 1  ;;  %6346 = vrot.lane.b32.xlu2 %v6523_v1, %s6524_s4  ;;  %s6527_s7 = smov 21   ;;  %vm292_vm6 = vcmask 724552   ;;  %vm299_vm7 = vcmask 872152   ;;  %vm306_vm8 = vcmask 1019752  }
  0x10   : > { %253 = vst [vmem:[#allocation2 + $0x8] sm:$0xff] %v6523_v1  ;;  %s6304_s25 = sshll.u32 %s10378_s24, 3  ;;  %s6528_s8 = smov 110   ;;  %vm313_vm9 = vcmask 1044472   ;;  %vm315_vm10 = vcmask 117760   ;;  %vm322_vm11 = vcmask 265352  }
  0x11   : > { %254 = vst [vmem:[#allocation2 + $0x10] sm:$0xff] %v6523_v1  ;;  %s247_s28 = scalar_lea.vmem %s10266_s0, %s6304_s25  ;;  %s6529_s9 = smov 23   ;;  %vm329_vm12 = vcmask 412952   ;;  %vm1023_vm13 = vcmask 736256   ;;  %vm336_vm14 = vcmask 560552   ;;  %vm942_vm15 = vcmask 744448  }
  0x12   : > { %255 = vst [vmem:[#allocation2 + $0x18] sm:$0xff] %v6523_v1  ;;  %v6614_v2 = vld [vmem:[%s247_s28] sm:$0xff]  ;;  %s6530_s10 = smov 25   ;;  %s6531_s11 = smov 27  }
  0x13   : > { %257 = vst [vmem:[#allocation2 + $0x28] sm:$0xff] %v6523_v1  ;;  %s6532_s12 = smov 29   ;;  %s6533_s13 = smov 109  }
  0x14   : > { %258 = vst [vmem:[#allocation2 + $0x30] sm:$0xff] %v6523_v1  ;;  %s6534_s14 = smov 31   ;;  %s6535_s15 = smov 33  }
  0x15   : > { %261 = vst [vmem:[#allocation2 + $0x48] sm:$0xff] %v6523_v1  ;;  %s6536_s16 = smov 90   ;;  %s6537_s17 = smov 35  }
  0x16   : > { %263 = vst [vmem:[#allocation2 + $0x58] sm:$0xff] %v6523_v1  ;;  %6356 = vrot.lane.b32.xlu1 %v6523_v1, %s6524_s4  ;;  %s6538_s18 = smov 91   ;;  %s6539_s19 = smov 37  }
  0x17   : > { %266 = vst [vmem:[#allocation1] ss:$2 sm:$0xff] %v6614_v2  ;;  %454 = vrot.lane.b32.xlu2 %v6523_v1, %s6524_s4  ;;  %s6540_s20 = smov 39   ;;  %s6541_s21 = smov 92  }
  0x18   : > { %407 = vst.msk [vmem:[#allocation3 + $0x58] sm:$0xff] %vm397_vm0, %v6523_v1  ;;  %s6542_s22 = smov 41   ;;  %s6543_s25 = smov 43  }
  0x19   : > { %404 = vst.msk [vmem:[#allocation3 + $0x40] sm:$0xff] %vm397_vm0, %v6523_v1  ;;  %s6544_s26 = smov 45   ;;  %s6545_s27 = smov 47  }
  0x1a   : > { %401 = vst.msk [vmem:[#allocation3 + $0x28] sm:$0xff] %vm397_vm0, %v6523_v1  ;;  %s6546_s28 = smov 49  }
  0x1e   : > { %v267_v3 = vld.sshfl [vmem:[#allocation1] sm:$0xff pattern:$0x75316420]  ;;  %6366 = vrot.lane.b32.xlu1 %v6523_v1, %s6526_s30 }
  0x1f   : > { %268 = vrot.lane.b32.xlu0 %v267_v3, %s6525_s29  ;;  %273 = vst [vmem:[#allocation1] ss:$2 sm:$0xff] %v6614_v2  ;;  %6371 = vrot.lane.b32.xlu2 %v6523_v1, %s6526_s30 }
  0x26   : > { %v274_v4 = vld.sshfl [vmem:[#allocation1] sm:$0xff pattern:$0x75316420] }
  0x27   : > { %275 = vrot.lane.b32.xlu0 %v274_v4, %s6527_s7  ;;  %280 = vst [vmem:[#allocation1] ss:$2 sm:$0xff] %v6614_v2  ;;  %6381 = vrot.lane.b32.xlu2 %v6523_v1, %s6528_s8  ;;  %s6547_s7 = smov 108  }
  0x2e   : > { %v281_v5 = vld.sshfl [vmem:[#allocation1] sm:$0xff pattern:$0x75316420] }
  0x2f   : > { %6361 = vrot.lane.b32.xlu0 %v6523_v1, %s6526_s30  ;;  %282 = vrot.lane.b32.xlu1 %v281_v5, %s6529_s9  ;;  %287 = vst [vmem:[#allocation1] ss:$2 sm:$0xff] %v6614_v2 }
  0x30   : > { %6396 = vrot.lane.b32.xlu2 %v6523_v1, %s6528_s8 }
  0x36   : > { %v288_v6 = vld.sshfl [vmem:[#allocation1] sm:$0xff pattern:$0x75316420] }
  0x37   : > { %6376 = vrot.lane.b32.xlu0 %v6523_v1, %s6526_s30  ;;  %289 = vrot.lane.b32.xlu1 %v288_v6, %s6530_s10  ;;  %294 = vst [vmem:[#allocation1] ss:$2 sm:$0xff] %v6614_v2 }
  0x3e   : > { %v295_v7 = vld.sshfl [vmem:[#allocation1] sm:$0xff pattern:$0x75316420] }
  0x3f   : > { %6386 = vrot.lane.b32.xlu0 %v6523_v1, %s6528_s8  ;;  %535 = vrot.lane.b32.xlu1 %v6523_v1, %s6526_s30  ;;  %301 = vst [vmem:[#allocation1] ss:$2 sm:$0xff] %v6614_v2 }
  0x40   : > { %296 = vrot.lane.b32.xlu2 %v295_v7, %s6531_s11 }
  0x46   : > { %v302_v8 = vld.sshfl [vmem:[#allocation1] sm:$0xff pattern:$0x75316420] }
  0x47   : > { %616 = vrot.lane.b32.xlu0 %v6523_v1, %s6528_s8  ;;  %6391 = vrot.lane.b32.xlu1 %v6523_v1, %s6528_s8  ;;  %308 = vst [vmem:[#allocation1] ss:$2 sm:$0xff] %v6614_v2 }
  0x48   : > { %303 = vrot.lane.b32.xlu2 %v302_v8, %s6532_s12 }
  0x4e   : > { %v309_v9 = vld.sshfl [vmem:[#allocation1] sm:$0xff pattern:$0x75316420] }
  0x4f   : > { %6401 = vrot.lane.b32.xlu1 %v6523_v1, %s6533_s13  ;;  %310 = vrot.lane.b32.xlu0 %v309_v9, %s6534_s14  ;;  %317 = vst [vmem:[#allocation1] ss:$2 sm:$0xff] %v6614_v2 }
  0x50   : > { %6406 = vrot.lane.b32.xlu2 %v6523_v1, %s6533_s13 }
  0x56   : > { %v318_v10 = vld.sshfl [vmem:[#allocation1] sm:$0xff pattern:$0x75316420] }
  0x57   : > { %6411 = vrot.lane.b32.xlu0 %v6523_v1, %s6533_s13  ;;  %319 = vrot.lane.b32.xlu1 %v318_v10, %s6535_s15  ;;  %324 = vst [vmem:[#allocation1] ss:$2 sm:$0xff] %v6614_v2 }
  0x58   : > { %6421 = vrot.lane.b32.xlu2 %v6523_v1, %s6536_s16 }
  0x5e   : > { %v325_v11 = vld.sshfl [vmem:[#allocation1 + $0x8] sm:$0xff pattern:$0x75316420] }
  0x5f   : > { %6426 = vrot.lane.b32.xlu0 %v6523_v1, %s6536_s16  ;;  %6416 = vrot.lane.b32.xlu1 %v6523_v1, %s6536_s16  ;;  %331 = vst [vmem:[#allocation1] ss:$2 sm:$0xff] %v6614_v2 }
  0x60   : > { %326 = vrot.lane.b32.xlu2 %v325_v11, %s6537_s17 }
  0x66   : > { %v332_v12 = vld.sshfl [vmem:[#allocation1 + $0x8] sm:$0xff pattern:$0x75316420] }
  0x67   : > { %6436 = vrot.lane.b32.xlu1 %v6523_v1, %s6538_s18  ;;  %333 = vrot.lane.b32.xlu0 %v332_v12, %s6539_s19  ;;  %338 = vst [vmem:[#allocation1] ss:$2 sm:$0xff] %v6614_v2 }
  0x68   : > { %6441 = vrot.lane.b32.xlu2 %v6523_v1, %s6538_s18 }
  0x69   : > { %v6670_v13 = vpop.permute.xlu2 %6346 }
  0x6a   : > { %v6348_v14 = vunpack.i.l.bf16 %v6670_v13 }
  0x6c   : > { %482 = vst.msk [vmem:[#allocation3 + $0x88] sm:$0xff] %vm397_vm0, %v6348_v14 }
  0x6e   : > { %v339_v15 = vld.sshfl [vmem:[#allocation1 + $0x8] sm:$0xff pattern:$0x75316420] }
  0x6f   : > { %6431 = vrot.lane.b32.xlu0 %v6523_v1, %s6538_s18  ;;  %340 = vrot.lane.b32.xlu1 %v339_v15, %s6540_s20  ;;  %345 = vst [vmem:[#allocation1] ss:$2 sm:$0xff] %v6614_v2 }
  0x71   : > { %v6683_v16 = vpop.permute.xlu2 %454 }
  0x72   : > { %488 = vst.msk [vmem:[#allocation3 + $0xb8] sm:$0xff] %vm397_vm0, %v6683_v16 }
  0x76   : > { %v346_v17 = vld.sshfl [vmem:[#allocation1 + $0x8] sm:$0xff pattern:$0x75316420] }
  0x77   : > { %352 = vst [vmem:[#allocation1] ss:$2 sm:$0xff] %v6614_v2  ;;  %6446 = vrot.lane.b32.xlu0 %v6523_v1, %s6538_s18  ;;  %6451 = vrot.lane.b32.xlu1 %v6523_v1, %s6541_s21 }
  0x78   : > { %347 = vrot.lane.b32.xlu2 %v346_v17, %s6542_s22 }
  0x79   : > { %v6692_v18 = vpop.permute.xlu2 %6371 }
  0x7a   : > { %v6374_v19 = vunpack.i.h.bf16 %v6692_v18 }
  0x7c   : > { %566 = vst.msk [vmem:[#allocation3 + $0x100] sm:$0xff] %vm397_vm0, %v6374_v19 }
  0x7e   : > { %v353_v20 = vld.sshfl [vmem:[#allocation1 + $0x8] sm:$0xff pattern:$0x75316420] }
  0x7f   : > { %6461 = vrot.lane.b32.xlu1 %v6523_v1, %s6541_s21  ;;  %354 = vrot.lane.b32.xlu0 %v353_v20, %s6543_s25  ;;  %359 = vst [vmem:[#allocation1] ss:$2 sm:$0xff] %v6614_v2 }
  0x80   : > { %6466 = vrot.lane.b32.xlu2 %v6523_v1, %s6541_s21  ;;  %v6703_v21 = vpop.permute.xlu0 %6351  ;;  %v6705_v22 = vpop.permute.xlu1 %6341 }
  0x81   : > { %v6354_v23 = vunpack.i.h.bf16 %v6703_v21  ;;  %v6344_v24 = vunpack.i.h.bf16 %v6705_v22  ;;  %v6709_v25 = vpop.permute.xlu2 %6381 }
  0x82   : > { %v6384_v51 = vunpack.i.h.bf16 %v6709_v25  ;;  %v6383_v52 = vunpack.i.l.bf16 %v6709_v25 }
  0x83   : > { %485 = vst.msk [vmem:[#allocation3 + $0xa0] sm:$0xff] %vm397_vm0, %v6354_v23  ;;  %v460_v26 = vsel %vm456_vm1, %v6344_v24, %v6348_v14 }
  0x84   : > { %481 = vst [vmem:[#allocation3 + $0x80] sm:$0xff] %v460_v26  ;;  %v621_v61 = vsel %vm618_vm2, %v6383_v52, %v6384_v51 }
  0x86   : > { %v360_v27 = vld.sshfl [vmem:[#allocation1 + $0x8] sm:$0xff pattern:$0x75316420] }
  0x87   : > { %924 = vrot.lane.b32.xlu0 %v6523_v1, %s6538_s18  ;;  %361 = vrot.lane.b32.xlu1 %v360_v27, %s6544_s26  ;;  %368 = vst [vmem:[#allocation1] ss:$2 sm:$0xff] %v6614_v2 }
  0x88   : > { %843 = vrot.lane.b32.xlu2 %v6523_v1, %s6541_s21  ;;  %v6722_v28 = vpop.permute.xlu1 %6356 }
  0x8a   : > { %v6397_v29 = vpop.permute.xlu2 %6396 }
  0x8b   : > { %v6399_v30 = vunpack.i.h.bf16 %v6397_v29  ;;  %v6398_v31 = vunpack.i.l.bf16 %v6397_v29 }
  0x8d   : > { %v625_v33 = vsel %vm618_vm2, %v6398_v31, %v6399_v30 }
  0x8e   : > { %v369_v32 = vld.sshfl [vmem:[#allocation1 + $0x8] sm:$0xff pattern:$0x75316420]  ;;  %1212 = vmatpush.msra.mxu0 %v625_v33 }
  0x8f   : > { %375 = vst [vmem:[#allocation1] ss:$2 sm:$0xff] %v6614_v2  ;;  %6456 = vrot.lane.b32.xlu0 %v6523_v1, %s6541_s21 }
  0x90   : > { %370 = vrot.lane.b32.xlu2 %v369_v32, %s6545_s27  ;;  %v6728_v35 = vpop.permute.xlu1 %6366 }
  0x91   : > { %v269_v34 = vpop.permute.xlu0 %268  ;;  %v6368_v36 = vunpack.i.l.bf16 %v6728_v35 }
  0x92   : > { %272 = vst.msk [vmem:[#allocation2] sm:$0xf] %vm271_vm3, %v269_v34  ;;  %vm343_vm3 = vcmask 708152  }
  0x93   : > { %563 = vst.msk [vmem:[#allocation3 + $0xe8] sm:$0xff] %vm397_vm0, %v6368_v36 }
  0x96   : > { %v376_v37 = vld.sshfl [vmem:[#allocation1 + $0x8] sm:$0xff pattern:$0x75316420] }
  0x97   : > { %377 = vrot.lane.b32.xlu0 %v376_v37, %s6546_s28 }
  0x99   : > { %v276_v38 = vpop.permute.xlu0 %275 }
  0x9a   : > { %279 = vst.msk [vmem:[#allocation2] sm:$0xf] %vm278_vm4, %v276_v38  ;;  %v297_v39 = vpop.permute.xlu2 %296  ;;  %vm350_vm4 = vcmask 855752  }
  0x9f   : > { %6471 = vrot.lane.b32.xlu0 %v6523_v1, %s6547_s7 }
  0xa1   : > { %v6736_v40 = vpop.permute.xlu0 %6361  ;;  %v283_v41 = vpop.permute.xlu1 %282 }
  0xa2   : > { %286 = vst.msk [vmem:[#allocation2] sm:$0xf] %vm285_vm5, %v283_v41  ;;  %v304_v42 = vpop.permute.xlu2 %303  ;;  %vm357_vm5 = vcmask 1003352  }
  0xa9   : > { %v6738_v43 = vpop.permute.xlu0 %6376  ;;  %v290_v44 = vpop.permute.xlu1 %289 }
  0xaa   : > { %293 = vst.msk [vmem:[#allocation2] sm:$0xf] %vm292_vm6, %v290_v44  ;;  %v6740_v45 = vpop.permute.xlu2 %6406  ;;  %vm364_vm6 = vcmask 1044456  }
  0xab   : > { %300 = vst.msk [vmem:[#allocation2] sm:$0xf] %vm299_vm7, %v297_v39  ;;  %v10274_v46 = vunpack.i.l.bf16 %v6740_v45  ;;  %vm366_vm7 = vcmask 101376  }
  0xac   : > { %307 = vst.msk [vmem:[#allocation2] sm:$0xf] %vm306_vm8, %v304_v42  ;;  %vm373_vm8 = vcmask 248952  }
  0xad   : > { %725 = vst.msk [vmem:[#allocation3 + $0x1a8] sm:$0xff] %vm397_vm0, %v10274_v46 }
  0xb1   : > { %v6387_v47 = vpop.permute.xlu0 %6386  ;;  %v6746_v48 = vpop.permute.xlu1 %535 }
  0xb2   : > { %v6388_v49 = vunpack.i.l.bf16 %v6387_v47  ;;  %569 = vst.msk [vmem:[#allocation3 + $0x118] sm:$0xff] %vm397_vm0, %v6746_v48  ;;  %v6751_v50 = vpop.permute.xlu2 %6421  ;;  %v6389_v55 = vunpack.i.h.bf16 %v6387_v47 }
  0xb3   : > { %v10276_v8 = vunpack.i.h.bf16 %v6751_v50  ;;  %v6423_v9 = vunpack.i.l.bf16 %v6751_v50 }
  0xb4   : > { %644 = vst.msk [vmem:[#allocation3 + $0x148] sm:$0xff] %vm397_vm0, %v6388_v49  ;;  %v622_v62 = vsel %vm618_vm2, %v6384_v51, %v6388_v49 }
  0xb5   : > { %v1028_v17 = vsel %vm1023_vm13, %v6423_v9, %v10276_v8  ;;  %v6349_v8 = vunpack.i.h.bf16 %v6670_v13 }
  0xb9   : > { %v617_v53 = vpop.permute.xlu0 %616  ;;  %v6392_v54 = vpop.permute.xlu1 %6391 }
  0xba   : > { %v626_v56 = vsel %vm618_vm2, %v6399_v30, %v617_v53  ;;  %650 = vst.msk [vmem:[#allocation3 + $0x178] sm:$0xff] %vm397_vm0, %v617_v53  ;;  %v6394_v57 = vunpack.i.h.bf16 %v6392_v54  ;;  %v6393_v58 = vunpack.i.l.bf16 %v6392_v54  ;;  %v327_v63 = vpop.permute.xlu2 %326 }
  0xbb   : > { %1299 = vmatpush.msra.mxu3 %v626_v56 }
  0xbc   : > { %647 = vst.msk [vmem:[#allocation3 + $0x160] sm:$0xff] %vm397_vm0, %v6394_v57  ;;  %v623_v59 = vsel %vm618_vm2, %v6389_v55, %v6393_v58  ;;  %v624_v60 = vsel %vm618_vm2, %v6393_v58, %v6394_v57 }
  0xbd   : > { %1213 = vmatpush.msra.mxu0 %v623_v59  ;;  %1300 = vmatpush.msra.mxu3 %v624_v60 }
  0xbf   : > { %1214 = vmatpush.msra.mxu0 %v621_v61  ;;  %1301 = vmatpush.msra.mxu3 %v622_v62 }
  0xc1   : > { %v6762_v0 = vpop.permute.xlu1 %6401  ;;  %v311_v2 = vpop.permute.xlu0 %310 }
  0xc2   : > { %314 = vst.msk [vmem:[#allocation2] sm:$0xf] %vm313_vm9, %v311_v2  ;;  %v6764_v3 = vpop.permute.xlu2 %6441  ;;  %vm380_vm9 = vcmask 396552  }
  0xc3   : > { %316 = vst.msk [vmem:[#allocation2 + $0x8] sm:$0xf] %vm315_vm10, %v311_v2  ;;  %v6443_v38 = vunpack.i.l.bf16 %v6764_v3  ;;  %v6444_v51 = vunpack.i.h.bf16 %v6764_v3  ;;  %vm537_vm10 = vcmask 1031168  }
  0xc9   : > { %v6766_v4 = vpop.permute.xlu0 %6411  ;;  %v320_v5 = vpop.permute.xlu1 %319  ;;  %v6768_v6 = vld [vmem:[#allocation2] sm:$0xff] }
  0xca   : > { %v10275_v7 = vunpack.i.h.bf16 %v6766_v4  ;;  %323 = vst.msk [vmem:[#allocation2 + $0x8] sm:$0xf] %vm322_vm11, %v320_v5  ;;  %432 = vrot.lane.b32.xlu1 %v6768_v6, %s6524_s4  ;;  %594 = vrot.lane.b32.xlu2 %v6768_v6, %s6528_s8  ;;  %vm861_vm11 = vcmask 752640  }
  0xcb   : > { %513 = vrot.lane.b32.xlu0 %v6768_v6, %s6526_s30  ;;  %330 = vst.msk [vmem:[#allocation2 + $0x8] sm:$0xf] %vm329_vm12, %v327_v63  ;;  %vm780_vm12 = vcmask 883712  }
  0xcc   : > { %728 = vst.msk [vmem:[#allocation3 + $0x1c0] sm:$0xff] %vm397_vm0, %v10275_v7  ;;  %v6353_v7 = vunpack.i.l.bf16 %v6703_v21 }
  0xd1   : > { %v6782_v10 = vpop.permute.xlu0 %6426  ;;  %v6784_v11 = vpop.permute.xlu1 %6416 }
  0xd2   : > { %v6419_v12 = vunpack.i.h.bf16 %v6784_v11  ;;  %v6418_v14 = vunpack.i.l.bf16 %v6784_v11  ;;  %675 = vrot.lane.b32.xlu1 %v6768_v6, %s6533_s13  ;;  %918 = vrot.lane.b32.xlu2 %v6768_v6, %s6538_s18  ;;  %v348_v15 = vpop.permute.xlu2 %347  ;;  %v10273_v20 = vunpack.i.h.bf16 %v6782_v10  ;;  %v6428_v25 = vunpack.i.l.bf16 %v6782_v10 }
  0xd4   : > { %v1030_v26 = vsel %vm1023_vm13, %v6418_v14, %v6419_v12  ;;  %v1026_v27 = vsel %vm1023_vm13, %v6428_v25, %v10273_v20 }
  0xd5   : > { %1282 = vmatpush.msra.mxu2 %v1030_v26 }
  0xd7   : > { %1283 = vmatpush.msra.mxu2 %v1028_v17 }
  0xd9   : > { %v6437_v29 = vpop.permute.xlu1 %6436  ;;  %v334_v30 = vpop.permute.xlu0 %333  ;;  %1284 = vmatpush.msra.mxu2 %v1026_v27 }
  0xda   : > { %v6439_v31 = vunpack.i.h.bf16 %v6437_v29  ;;  %v6438_v32 = vunpack.i.l.bf16 %v6437_v29  ;;  %337 = vst.msk [vmem:[#allocation2 + $0x8] sm:$0xf] %vm336_vm14, %v334_v30  ;;  %999 = vrot.lane.b32.xlu1 %v6768_v6, %s6536_s16  ;;  %v6805_v33 = vpop.permute.xlu2 %6466  ;;  %vm699_vm14 = vcmask 891904  }
  0xdb   : > { %v6468_v34 = vunpack.i.l.bf16 %v6805_v33 }
  0xdc   : > { %971 = vst.msk [vmem:[#allocation3 + $0x2e0] sm:$0xff] %vm397_vm0, %v6439_v31  ;;  %v6810_v37 = vsel %vm942_vm15, %v6438_v32, %v6439_v31 }
  0xdd   : > { %887 = vst.msk [vmem:[#allocation3 + $0x268] sm:$0xff] %vm397_vm0, %v6468_v34 }
  0xe1   : > { %v6432_v39 = vpop.permute.xlu0 %6431  ;;  %v341_v41 = vpop.permute.xlu1 %340 }
  0xe2   : > { %v6434_v42 = vunpack.i.h.bf16 %v6432_v39  ;;  %v6433_v44 = vunpack.i.l.bf16 %v6432_v39  ;;  %344 = vst.msk [vmem:[#allocation2 + $0x8] sm:$0xf] %vm343_vm3, %v341_v41  ;;  %837 = vrot.lane.b32.xlu1 %v6768_v6, %s6541_s21  ;;  %v6835_v59 = vpop.permute.xlu2 %843  ;;  %vm1540_vm3 = vcmask 154624  }
  0xe3   : > { %351 = vst.msk [vmem:[#allocation2 + $0x8] sm:$0xf] %vm350_vm4, %v348_v15  ;;  %v1160_v11 = vld [vmem:[#allocation3 + $0x2e0] sm:$0xff]  ;;  %vm1561_vm4 = vcmask 1047704  }
  0xe4   : > { %974 = vst.msk [vmem:[#allocation3 + $0x2f8] sm:$0xff] %vm397_vm0, %v6434_v42  ;;  %v949_v47 = vsel %vm942_vm15, %v6443_v38, %v6433_v44  ;;  %v6821_v49 = vsel %vm942_vm15, %v6433_v44, %v6434_v42 }
  0xe5   : > { %1241 = vmatpush.msra.mxu1 %v949_v47 }
  0xe9   : > { %v6447_v52 = vpop.permute.xlu0 %6446  ;;  %v6824_v53 = vpop.permute.xlu1 %6451 }
  0xea   : > { %v6449_v54 = vunpack.i.h.bf16 %v6447_v52  ;;  %v6448_v55 = vunpack.i.l.bf16 %v6447_v52  ;;  %v6454_v56 = vunpack.i.h.bf16 %v6824_v53  ;;  %v371_v62 = vpop.permute.xlu2 %370  ;;  %v6379_v52 = vunpack.i.h.bf16 %v6738_v43 }
  0xec   : > { %v947_v57 = vsel %vm942_vm15, %v6449_v54, %v6438_v32  ;;  %v6829_v58 = vsel %vm942_vm15, %v6444_v51, %v6448_v55  ;;  %968 = vst.msk [vmem:[#allocation3 + $0x2c8] sm:$0xff] %vm397_vm0, %v6448_v55  ;;  %v6378_v54 = vunpack.i.l.bf16 %v6738_v43 }
  0xed   : > { %893 = vst.msk [vmem:[#allocation3 + $0x298] sm:$0xff] %vm397_vm0, %v6454_v56  ;;  %1242 = vmatpush.msra.mxu1 %v947_v57 }
  0xf1   : > { %v6837_v60 = vpop.permute.xlu1 %6461  ;;  %v355_v61 = vpop.permute.xlu0 %354 }
  0xf2   : > { %358 = vst.msk [vmem:[#allocation2 + $0x8] sm:$0xf] %vm357_vm5, %v355_v61  ;;  %vm1564_vm5 = vcmask 416768  }
  0xf9   : > { %v925_v63 = vpop.permute.xlu0 %924  ;;  %v362_v2 = vpop.permute.xlu1 %361 }
  0xfa   : > { %v945_v3 = vsel %vm942_vm15, %v925_v63, %v6444_v51  ;;  %365 = vst.msk [vmem:[#allocation2 + $0x8] sm:$0xf] %vm364_vm6, %v362_v2  ;;  %v6914_v51 = vld [vmem:[%s10267_s1 + $0x10] sm:$0xff]  ;;  %v6364_v63 = vunpack.i.h.bf16 %v6736_v40 }
  0xfb   : > { %367 = vst.msk [vmem:[#allocation2 + $0x10] sm:$0xf] %vm366_vm7, %v362_v2  ;;  %1243 = vmatpush.msra.mxu1 %v945_v3  ;;  %v6363_v2 = vunpack.i.l.bf16 %v6736_v40  ;;  %v544_v3 = vsel %vm537_vm10, %v6378_v54, %v6379_v52  ;;  %v462_v40 = vsel %vm456_vm1, %v6353_v7, %v6354_v23 }
  0xfc   : > { %374 = vst.msk [vmem:[#allocation2 + $0x10] sm:$0xf] %vm373_vm8, %v371_v62  ;;  %v541_v43 = vsel %vm537_vm10, %v6364_v63, %v6368_v36 }
  0xfd   : > { %v540_v54 = vsel %vm537_vm10, %v6363_v2, %v6364_v63 }
 0x101   : > { %v6840_v5 = vpop.permute.xlu0 %6456  ;;  %v6842_v9 = vld [vmem:[#allocation2 + $0x8] sm:$0xff] }
 0x102   : > { %v6459_v14 = vunpack.i.h.bf16 %v6840_v5  ;;  %515 = vrot.lane.b32.xlu1 %v6842_v9, %s6526_s30  ;;  %434 = vrot.lane.b32.xlu2 %v6842_v9, %s6524_s4  ;;  %v6458_v20 = vunpack.i.l.bf16 %v6840_v5 }
 0x103   : > { %596 = vrot.lane.b32.xlu0 %v6842_v9, %s6528_s8 }
 0x104   : > { %890 = vst.msk [vmem:[#allocation3 + $0x280] sm:$0xff] %vm397_vm0, %v6459_v14 }
 0x109   : > { %v378_v15 = vpop.permute.xlu0 %377 }
 0x10a   : > { %381 = vst.msk [vmem:[#allocation2 + $0x10] sm:$0xf] %vm380_vm9, %v378_v15  ;;  %920 = vrot.lane.b32.xlu1 %v6842_v9, %s6538_s18  ;;  %677 = vrot.lane.b32.xlu2 %v6842_v9, %s6533_s13 }
 0x10b   : > { %839 = vrot.lane.b32.xlu0 %v6842_v9, %s6541_s21 }
 0x111   : > { %v572_v17 = vld [vmem:[#allocation2 + $0x10] sm:$0xff]  ;;  %v6865_v25 = vpop.permute.xlu0 %6471 }
 0x112   : > { %1001 = vrot.lane.b32.xlu2 %v6842_v9, %s6536_s16  ;;  %598 = vrot.lane.b32.xlu1 %v572_v17, %s6528_s8  ;;  %398 = vst.msk [vmem:[#allocation3 + $0x10] sm:$0xff] %vm397_vm0, %v572_v17  ;;  %v6474_v26 = vunpack.i.h.bf16 %v6865_v25 }
 0x113   : > { %436 = vrot.lane.b32.xlu0 %v572_v17, %s6524_s4 }
 0x114   : > { %812 = vst.msk [vmem:[#allocation3 + $0x238] sm:$0xff] %vm397_vm0, %v6474_v26 }
 0x11a   : > { %6486 = vrot.lane.b32.xlu1 %v6523_v1, %s6547_s7  ;;  %517 = vrot.lane.b32.xlu2 %v572_v17, %s6526_s30 }
 0x11b   : > { %679 = vrot.lane.b32.xlu0 %v572_v17, %s6533_s13 }
 0x122   : > { %841 = vrot.lane.b32.xlu1 %v572_v17, %s6541_s21  ;;  %922 = vrot.lane.b32.xlu2 %v572_v17, %s6538_s18 }
 0x123   : > { %6481 = vrot.lane.b32.xlu0 %v6523_v1, %s6547_s7 }
 0x124   : > { %v595_v27 = vpop.permute.xlu2 %594 }
 0x12a   : > { %762 = vrot.lane.b32.xlu1 %v6523_v1, %s6547_s7  ;;  %6476 = vrot.lane.b32.xlu2 %v6523_v1, %s6547_s7 }
 0x12b   : > { %760 = vrot.lane.b32.xlu0 %v572_v17, %s6547_s7 }
 0x12c   : > { %v919_v30 = vpop.permute.xlu2 %918 }
 0x132   : > { %693 = vrot.lane.b32.xlu1 %v6523_v1, %s6533_s13  ;;  %758 = vrot.lane.b32.xlu2 %v6842_v9, %s6547_s7 }
 0x133   : > { %756 = vrot.lane.b32.xlu0 %v6768_v6, %s6547_s7 }
 0x13a   : > { %1003 = vrot.lane.b32.xlu1 %v572_v17, %s6536_s16  ;;  %6491 = vrot.lane.b32.xlu2 %v6523_v1, %s6533_s13  ;;  %v6453_v17 = vunpack.i.l.bf16 %v6824_v53  ;;  %v867_v53 = vsel %vm861_vm11, %v6458_v20, %v6459_v14 }
 0x13b   : > { %1009 = vrot.lane.b32.xlu0 %v6523_v1, %s6536_s16 }
 0x13c   : > { %v6897_v29 = vpop.permute.xlu1 %432 }
 0x13d   : > { %v514_v44 = vpop.permute.xlu0 %513 }
 0x142   : > { %6496 = vrot.lane.b32.xlu2 %v6523_v1, %s6536_s16 }
 0x144   : > { %v6899_v31 = vpop.permute.xlu1 %675 }
 0x14c   : > { %v1000_v38 = vpop.permute.xlu1 %999 }
 0x154   : > { %v6905_v41 = vpop.permute.xlu1 %837 }
 0x15c   : > { %v6901_v32 = vpop.permute.xlu2 %434 }
 0x164   : > { %v6903_v39 = vpop.permute.xlu2 %677 }
 0x16c   : > { %v6907_v42 = vpop.permute.xlu2 %1001 }
 0x16d   : > { %v1024_v47 = vsel %vm1023_vm13, %v1000_v38, %v6907_v42  ;;  %v6359_v38 = vunpack.i.h.bf16 %v6722_v28 }
 0x16e   : > { %1285 = vmatpush.msra.mxu2 %v1024_v47  ;;  %v6358_v47 = vunpack.i.l.bf16 %v6722_v28 }
 0x16f   : > { %6200 = vmatmul.msk.f32.vlgmr.msra.gmra.mxu2 %vm397_vm0, %v6914_v51  ;;  %v464_v36 = vsel %vm456_vm1, %v6359_v38, %v6683_v16 }
 0x170   : > { %1328 = vmatpush.msrb.mxu2 %v6821_v49  ;;  %v6932_v49 = vld [vmem:[%s10267_s1 + $0x28] sm:$0xff] }
 0x172   : > { %1329 = vmatpush.msrb.mxu2 %v6810_v37  ;;  %v6373_v37 = vunpack.i.l.bf16 %v6692_v18 }
 0x174   : > { %1330 = vmatpush.msrb.mxu2 %v6829_v58  ;;  %v6923_v55 = vpop.permute.xlu1 %515  ;;  %v6925_v57 = vpop.permute.xlu2 %517  ;;  %v6369_v58 = vunpack.i.h.bf16 %v6728_v35  ;;  %v7043_v35 = vld [vmem:[%s10267_s1] sm:$0xff] }
 0x175   : > { %560 = vst.msk [vmem:[#allocation3 + $0xd0] sm:$0xff] %vm397_vm0, %v6925_v57  ;;  %v597_v61 = vpop.permute.xlu0 %596  ;;  %v538_v2 = vsel %vm537_vm10, %v514_v44, %v6923_v55  ;;  %v6343_v44 = vunpack.i.l.bf16 %v6705_v22  ;;  %v457_v22 = vsel %vm456_vm1, %v6897_v29, %v6901_v32  ;;  %v543_v29 = vsel %vm537_vm10, %v6373_v37, %v6374_v19 }
 0x176   : > { %v619_v62 = vsel %vm618_vm2, %v595_v27, %v597_v61  ;;  %v542_v15 = vsel %vm537_vm10, %v6369_v58, %v6373_v37  ;;  %v6463_v27 = vunpack.i.l.bf16 %v6837_v60  ;;  %v539_v18 = vsel %vm537_vm10, %v6923_v55, %v6925_v57  ;;  %v1084_v57 = vld [vmem:[#allocation3 + $0x80] sm:$0xff] }
 0x177   : > { %1215 = vmatpush.msra.mxu0 %v619_v62  ;;  %6201 = vmatmul.msk.f32.gmra.mxu2 %vm397_vm0, %v6932_v49  ;;  %v6473_v55 = vunpack.i.l.bf16 %v6865_v25 }
 0x178   : > { %v868_v13 = vsel %vm861_vm11, %v6463_v27, %v6453_v17 }
 0x179   : > { %1216 = vmatpush.msra.mxu0 %v544_v3 }
 0x17b   : > { %1217 = vmatpush.msra.mxu0 %v542_v15 }
 0x17c   : > { %v921_v62 = vpop.permute.xlu1 %920  ;;  %v923_v3 = vpop.permute.xlu2 %922 }
 0x17d   : > { %v943_v58 = vsel %vm942_vm15, %v919_v30, %v921_v62  ;;  %v944_v46 = vsel %vm942_vm15, %v921_v62, %v923_v3  ;;  %965 = vst.msk [vmem:[#allocation3 + $0x2b0] sm:$0xff] %vm397_vm0, %v923_v3  ;;  %v6958_v15 = vpop.permute.xlu0 %839  ;;  %1218 = vmatpush.msra.mxu0 %v540_v54  ;;  %v6967_v30 = vld [vmem:[%s10267_s1 + $0x40] sm:$0xff]  ;;  %v869_v62 = vsel %vm861_vm11, %v6453_v17, %v6454_v56  ;;  %v6469_v54 = vunpack.i.h.bf16 %v6805_v33 }
 0x17e   : > { %1244 = vmatpush.msra.mxu1 %v943_v58  ;;  %1331 = vmatpush.msrb.mxu2 %v944_v46  ;;  %v6464_v3 = vunpack.i.h.bf16 %v6837_v60  ;;  %v463_v46 = vsel %vm456_vm1, %v6358_v47, %v6359_v38  ;;  %v461_v56 = vsel %vm456_vm1, %v6349_v8, %v6353_v7  ;;  %v862_v8 = vsel %vm861_vm11, %v6905_v41, %v6958_v15  ;;  %v7072_v38 = vld [vmem:[%s10267_s1 + $0x18] sm:$0xff] }
 0x17f   : > { %1219 = vmatpush.msra.mxu0 %v538_v2  ;;  %v866_v58 = vsel %vm861_vm11, %v6469_v54, %v6458_v20  ;;  %6202 = vmatmul.msk.f32.gmra.mxu2 %vm397_vm0, %v6967_v30  ;;  %v459_v20 = vsel %vm456_vm1, %v6343_v44, %v6344_v24  ;;  %v7011_v24 = vld [vmem:[%s10267_s1 + $0x58] sm:$0xff]  ;;  %v545_v41 = vsel %vm537_vm10, %v6379_v52, %v6746_v48 }
 0x180   : > { %1245 = vmatpush.msra.mxu1 %v868_v13  ;;  %1332 = vmatpush.msrb.mxu2 %v869_v62  ;;  %v865_v60 = vsel %vm861_vm11, %v6464_v3, %v6468_v34  ;;  %v864_v17 = vsel %vm861_vm11, %v6835_v59, %v6464_v3 }
 0x181   : > { %1220 = vmatpush.msra.mxu0 %v463_v46 }
 0x182   : > { %1246 = vmatpush.msra.mxu1 %v866_v58  ;;  %1333 = vmatpush.msrb.mxu2 %v867_v53  ;;  %v6413_v53 = vunpack.i.l.bf16 %v6766_v4 }
 0x183   : > { %1221 = vmatpush.msra.mxu0 %v461_v56 }
 0x184   : > { %v599_v5 = vpop.permute.xlu1 %598  ;;  %v6996_v14 = vpop.permute.xlu2 %6476  ;;  %1247 = vmatpush.msra.mxu1 %v864_v17  ;;  %1334 = vmatpush.msrb.mxu2 %v865_v60 }
 0x185   : > { %v620_v33 = vsel %vm618_vm2, %v597_v61, %v599_v5  ;;  %641 = vst.msk [vmem:[#allocation3 + $0x130] sm:$0xff] %vm397_vm0, %v599_v5  ;;  %v6479_v34 = vunpack.i.h.bf16 %v6996_v14  ;;  %v437_v59 = vpop.permute.xlu0 %436  ;;  %1222 = vmatpush.msra.mxu0 %v459_v20  ;;  %v6478_v7 = vunpack.i.l.bf16 %v6996_v14  ;;  %v1163_v20 = vld [vmem:[#allocation3 + $0x2f8] sm:$0xff]  ;;  %v6404_v5 = vunpack.i.h.bf16 %v6762_v0 }
 0x186   : > { %479 = vst.msk [vmem:[#allocation3 + $0x70] sm:$0xff] %vm397_vm0, %v437_v59  ;;  %1248 = vmatpush.msra.mxu1 %v862_v8  ;;  %1302 = vmatpush.msra.mxu3 %v620_v33  ;;  %v1157_v33 = vld [vmem:[#allocation3 + $0x2c8] sm:$0xff] }
 0x187   : > { %809 = vst.msk [vmem:[#allocation3 + $0x220] sm:$0xff] %vm397_vm0, %v6479_v34  ;;  %1223 = vmatpush.msra.mxu0 %v457_v22  ;;  %6203 = vmatmul.msk.f32.gmra.mxu2 %vm397_vm0, %v7011_v24  ;;  %v786_v2 = vsel %vm780_vm12, %v6478_v7, %v6479_v34  ;;  %v6548_v34 = vmov 0  }
 0x188   : > { %1303 = vmatpush.msra.mxu3 %v545_v41  ;;  %6501 = vset.pattern.permute.xlu0 %v6548_v34 }
 0x189   : > { %1224 = vmatpush.msra.mxu0 %v6523_v1  ;;  %6502 = vset.pattern.permute.xlu1 %v6548_v34 }
 0x18a   : > { %1304 = vmatpush.msra.mxu3 %v543_v29  ;;  %v1154_v29 = vld [vmem:[#allocation3 + $0x2b0] sm:$0xff]  ;;  %6500 = vset.pattern.permute.xlu2 %v6548_v34  ;;  %v1076_v34 = vld [vmem:[#allocation3 + $0x40] sm:$0xff] }
 0x18b   : > { %1225 = vmatpush.msra.mxu0 %v6523_v1 }
 0x18c   : > { %v6487_v48 = vpop.permute.xlu1 %6486  ;;  %v7032_v52 = vpop.permute.xlu2 %758  ;;  %1305 = vmatpush.msra.mxu3 %v541_v43  ;;  %v7122_v43 = vld [vmem:[%s10267_s1 + $0x8] sm:$0xff] }
 0x18d   : > { %v6488_v19 = vunpack.i.l.bf16 %v6487_v48  ;;  %v7037_v61 = vpop.permute.xlu0 %679  ;;  %1226 = vmatpush.msra.mxu0 %v6523_v1  ;;  %v6489_v63 = vunpack.i.h.bf16 %v6487_v48  ;;  %v6409_v48 = vunpack.i.h.bf16 %v6740_v45 }
 0x18e   : > { %722 = vst.msk [vmem:[#allocation3 + $0x190] sm:$0xff] %vm397_vm0, %v7037_v61  ;;  %1306 = vmatpush.msra.mxu3 %v539_v18  ;;  %v701_v18 = vsel %vm699_vm14, %v6903_v39, %v7037_v61  ;;  %v1151_v61 = vld [vmem:[#allocation3 + $0x298] sm:$0xff] }
 0x18f   : > { %806 = vst.msk [vmem:[#allocation3 + $0x208] sm:$0xff] %vm397_vm0, %v6488_v19  ;;  %1227 = vmatpush.msra.mxu0 %v6768_v6  ;;  %v458_v6 = vsel %vm456_vm1, %v6901_v32, %v437_v59  ;;  %v788_v32 = vsel %vm780_vm12, %v6473_v55, %v6474_v26  ;;  %v785_v62 = vsel %vm780_vm12, %v6489_v63, %v6478_v7  ;;  %v10311_v59 = vunpack.i.l.bf16 %v6740_v45 }
 0x190   : > { %1307 = vmatpush.msra.mxu3 %v464_v36  ;;  %1228 = vmatmul.f32.vlgmr.msra.gmra.mxu0 %v7043_v35  ;;  %v6403_v45 = vunpack.i.l.bf16 %v6762_v0  ;;  %v1178_v0 = vld [vmem:[%s10268_s2 + $0x10] sm:$0xff]  ;;  %v700_v7 = vsel %vm699_vm14, %v6899_v31, %v6903_v39  ;;  %v10312_v63 = vunpack.i.h.bf16 %v6782_v10  ;;  %v1115_v10 = vld [vmem:[#allocation3 + $0x178] sm:$0xff] }
 0x191   : > { %v703_v22 = vsel %vm699_vm14, %v6404_v5, %v10311_v59  ;;  %1192 = vperm.xlu1 %6502, %v1178_v0   ;;  %v1139_v31 = vld [vmem:[#allocation3 + $0x238] sm:$0xff]  ;;  %v1070_v59 = vld [vmem:[#allocation3 + $0x10] sm:$0xff] }
 0x192   : > { %1308 = vmatpush.msra.mxu3 %v462_v40  ;;  %v7134_v40 = vld [vmem:[%s10267_s1 + $0x48] sm:$0xff] }
 0x194   : > { %v842_v28 = vpop.permute.xlu1 %841  ;;  %v7060_v16 = vpop.permute.xlu2 %6491  ;;  %1309 = vmatpush.msra.mxu3 %v1084_v57  ;;  %v704_v57 = vsel %vm699_vm14, %v6409_v48, %v6413_v53 }
 0x195   : > { %v863_v37 = vsel %vm861_vm11, %v6958_v15, %v842_v28  ;;  %884 = vst.msk [vmem:[#allocation3 + $0x250] sm:$0xff] %vm397_vm0, %v842_v28  ;;  %v6494_v21 = vunpack.i.h.bf16 %v7060_v16  ;;  %v6482_v23 = vpop.permute.xlu0 %6481  ;;  %v6493_v54 = vunpack.i.l.bf16 %v7060_v16  ;;  %v1148_v28 = vld [vmem:[#allocation3 + $0x280] sm:$0xff]  ;;  %v1176_v16 = vld [vmem:[%s10268_s2] sm:$0xff] }
 0x196   : > { %v6483_v27 = vunpack.i.l.bf16 %v6482_v23  ;;  %1310 = vmatpush.msra.mxu3 %v458_v6  ;;  %1335 = vmatpush.msrb.mxu2 %v863_v37  ;;  %v6484_v47 = vunpack.i.h.bf16 %v6482_v23  ;;  %v702_v6 = vsel %vm699_vm14, %v6403_v45, %v6404_v5  ;;  %v1094_v5 = vld [vmem:[#allocation3 + $0xd0] sm:$0xff] }
 0x197   : > { %731 = vst.msk [vmem:[#allocation3 + $0x1d8] sm:$0xff] %vm397_vm0, %v6494_v21  ;;  %v707_v56 = vsel %vm699_vm14, %v6493_v54, %v6494_v21  ;;  %v1145_v21 = vld [vmem:[#allocation3 + $0x268] sm:$0xff]  ;;  %1182 = vperm.xlu2 %6500, %v1176_v16  }
 0x198   : > { %v787_v15 = vsel %vm780_vm12, %v6483_v27, %v6473_v55  ;;  %1311 = vmatpush.msra.mxu3 %v6523_v1  ;;  %1336 = vmatpush.msrb.mxu2 %v788_v32  ;;  %v784_v25 = vsel %vm780_vm12, %v6484_v47, %v6488_v19 }
 0x199   : > { %1249 = vmatpush.msra.mxu1 %v787_v15  ;;  %1231 = vmatmul.f32.gmra.mxu0 %v7072_v38  ;;  %v1112_v15 = vld [vmem:[#allocation3 + $0x160] sm:$0xff] }
 0x19a   : > { %1312 = vmatpush.msra.mxu3 %v6523_v1  ;;  %1337 = vmatpush.msrb.mxu2 %v786_v2  ;;  %v1136_v2 = vld [vmem:[#allocation3 + $0x220] sm:$0xff] }
 0x19b   : > { %1250 = vmatpush.msra.mxu1 %v785_v62  ;;  %v1179_v62 = vld [vmem:[%s10268_s2 + $0x18] sm:$0xff] }
 0x19c   : > { %v763_v26 = vpop.permute.xlu1 %762  ;;  %v6497_v3 = vpop.permute.xlu2 %6496  ;;  %1313 = vmatpush.msra.mxu3 %v6523_v1  ;;  %1338 = vmatpush.msrb.mxu2 %v784_v25  ;;  %v7097_v1 = vld [vmem:[%s10267_s1 + $0x30] sm:$0xff]  ;;  %v1142_v32 = vld [vmem:[#allocation3 + $0x250] sm:$0xff] }
 0x19d   : > { %v783_v13 = vsel %vm780_vm12, %v763_v26, %v6484_v47  ;;  %v6499_v44 = vunpack.i.h.bf16 %v6497_v3  ;;  %v6498_v46 = vunpack.i.l.bf16 %v6497_v3  ;;  %v761_v58 = vpop.permute.xlu0 %760  ;;  %v7159_v47 = vld [vmem:[%s10267_s1 + $0x20] sm:$0xff]  ;;  %v1109_v25 = vld [vmem:[#allocation3 + $0x148] sm:$0xff]  ;;  %v1106_v3 = vld [vmem:[#allocation3 + $0x130] sm:$0xff] }
 0x19e   : > { %v782_v60 = vsel %vm780_vm12, %v7032_v52, %v761_v58  ;;  %803 = vst.msk [vmem:[#allocation3 + $0x1f0] sm:$0xff] %vm397_vm0, %v761_v58  ;;  %1251 = vmatpush.msra.mxu1 %v783_v13  ;;  %1314 = vmatpush.msra.mxu3 %v6842_v9  ;;  %v10309_v9 = vunpack.i.h.bf16 %v6751_v50  ;;  %v1177_v50 = vld [vmem:[%s10268_s2 + $0x8] sm:$0xff]  ;;  %v1133_v26 = vld [vmem:[#allocation3 + $0x208] sm:$0xff]  ;;  %v1063_v13 = vld [vmem:[%s10267_s1 + $0x38] sm:$0xff] }
 0x19f   : > { %1052 = vst.msk [vmem:[#allocation3 + $0x340] sm:$0xff] %vm397_vm0, %v6499_v44  ;;  %v1031_v17 = vsel %vm1023_vm13, %v6419_v12, %v6498_v46  ;;  %1339 = vmatpush.msrb.mxu2 %v782_v60  ;;  %1315 = vmatmul.f32.vlgmr.msra.gmra.mxu3 %v7043_v35  ;;  %v10310_v12 = vunpack.i.h.bf16 %v6766_v4  ;;  %v1127_v58 = vld [vmem:[#allocation3 + $0x1d8] sm:$0xff]  ;;  %v1097_v60 = vld [vmem:[#allocation3 + $0xe8] sm:$0xff] }
 0x1a0   : > { %1055 = vst.msk [vmem:[#allocation3 + $0x358] sm:$0xff] %vm397_vm0, %v6498_v46  ;;  %1415 = vmatpush.msrb.mxu3 %v1163_v20  ;;  %1369 = vmatpush.msrb.mxu0 %v1031_v17  ;;  %v1029_v14 = vsel %vm1023_vm13, %v10309_v9, %v6499_v44  ;;  %v1103_v46 = vld [vmem:[#allocation3 + $0x118] sm:$0xff]  ;;  %v1121_v17 = vld [vmem:[#allocation3 + $0x1a8] sm:$0xff]  ;;  %v1118_v9 = vld [vmem:[#allocation3 + $0x190] sm:$0xff] }
 0x1a1   : > { %1340 = vmatpush.msrb.mxu2 %v707_v56  ;;  %1234 = vmatmul.f32.gmra.mxu0 %v7097_v1  ;;  %v705_v8 = vsel %vm699_vm14, %v6413_v53, %v10310_v12  ;;  %v1100_v53 = vld [vmem:[#allocation3 + $0x100] sm:$0xff]  ;;  %v1066_v20 = vld [vmem:[%s10267_s1 + $0x50] sm:$0xff] }
 0x1a2   : > { %1416 = vmatpush.msrb.mxu3 %v1160_v11  ;;  %1370 = vmatpush.msrb.mxu0 %v1029_v14  ;;  %v1124_v56 = vld [vmem:[#allocation3 + $0x1c0] sm:$0xff]  ;;  %v1091_v14 = vld [vmem:[#allocation3 + $0xb8] sm:$0xff]  ;;  %v1085_v12 = vld [vmem:[#allocation3 + $0x88] sm:$0xff] }
 0x1a3   : > { %1341 = vmatpush.msrb.mxu2 %v705_v8  ;;  %1187 = vperm.xlu0 %6501, %v1177_v50   ;;  %v1088_v11 = vld [vmem:[#allocation3 + $0xa0] sm:$0xff]  ;;  %v1082_v8 = vld [vmem:[#allocation3 + $0x70] sm:$0xff]  ;;  %v1073_v50 = vld [vmem:[#allocation3 + $0x28] sm:$0xff] }
 0x1a4   : > { %v694_v41 = vpop.permute.xlu1 %693  ;;  %1417 = vmatpush.msrb.mxu3 %v1157_v33  ;;  %1197 = vperm.xlu2 %6500, %v1179_v62   ;;  %v1079_v33 = vld [vmem:[#allocation3 + $0x58] sm:$0xff] }
 0x1a5   : > { %v757_v4 = vpop.permute.xlu0 %756  ;;  %1342 = vmatpush.msrb.mxu2 %v703_v22  ;;  %v706_v19 = vsel %vm699_vm14, %v694_v41, %v6493_v54  ;;  %v1130_v44 = vld [vmem:[#allocation3 + $0x1f0] sm:$0xff] }
 0x1a6   : > { %v781_v36 = vsel %vm780_vm12, %v757_v4, %v7032_v52  ;;  %1418 = vmatpush.msrb.mxu3 %v1154_v29  ;;  %v1172_v52 = vld [vmem:[#allocation3 + $0x340] sm:$0xff] }
 0x1a7   : > { %1252 = vmatpush.msra.mxu1 %v781_v36  ;;  %1343 = vmatpush.msrb.mxu2 %v701_v18  ;;  %v1175_v55 = vld [vmem:[#allocation3 + $0x358] sm:$0xff] }
 0x1a8   : > { %1318 = vmatmul.f32.gmra.mxu3 %v7072_v38  ;;  %1344 = vmatmul.f32.vlgmr.msrb.gmra.mxu2 %v7122_v43  ;;  %v7208_v36 = vld [vmem:[%s10271_s5] sm:$0x7] }
 0x1a9   : > { %1419 = vmatpush.msrb.mxu3 %v1151_v61  ;;  %1253 = vmatpush.msra.mxu1 %v706_v19 }
 0x1aa   : > { %1237 = vmatmul.f32.gmra.mxu0 %v7134_v40  ;;  %1456 = vmatpush.msra.mxu2 %v1175_v55 }
 0x1ab   : > { %1420 = vmatpush.msrb.mxu3 %v1148_v28  ;;  %1254 = vmatpush.msra.mxu1 %v704_v57 }
 0x1ac   : > { %v1004_v37 = vpop.permute.xlu1 %1003  ;;  %1457 = vmatpush.msra.mxu2 %v1172_v52  ;;  %v7213_v52 = vperm.slane %v7208_v36, 0 }
 0x1ad   : > { %1046 = vst.msk [vmem:[#allocation3 + $0x310] sm:$0xff] %vm397_vm0, %v1004_v37  ;;  %v1010_v23 = vpop.permute.xlu0 %1009  ;;  %1421 = vmatpush.msrb.mxu3 %v1145_v21  ;;  %1255 = vmatpush.msra.mxu1 %v702_v6  ;;  %v1025_v39 = vsel %vm1023_vm13, %v6907_v42, %v1004_v37  ;;  %v7217_v6 = vperm.slane %v7208_v36, 1 }
 0x1ae   : > { %v1027_v27 = vsel %vm1023_vm13, %v10312_v63, %v1010_v23  ;;  %1049 = vst.msk [vmem:[#allocation3 + $0x328] sm:$0xff] %vm397_vm0, %v1010_v23 }
 0x1af   : > { %1422 = vmatpush.msrb.mxu3 %v1142_v32  ;;  %1256 = vmatpush.msra.mxu1 %v700_v7  ;;  %10313 = vst [vmem:[#allocation5_spill] sm:$0xff] %v7213_v52 }
 0x1b0   : > { %1371 = vmatpush.msrb.mxu0 %v1027_v27  ;;  %1257 = vmatmul.f32.vlgmr.msra.gmra.mxu1 %v7122_v43  ;;  %10314 = vst [vmem:[#allocation6_spill] sm:$0xff] %v7217_v6 }
 0x1b1   : > { %1321 = vmatmul.f32.gmra.mxu3 %v7097_v1  ;;  %1347 = vmatmul.f32.gmra.mxu2 %v7159_v47 }
 0x1b2   : > { %1386 = vmatpush.msrb.mxu1 %v1115_v10  ;;  %1423 = vmatpush.msrb.mxu3 %v1139_v31 }
 0x1b3   : > { %1372 = vmatpush.msrb.mxu0 %v1025_v39 }
 0x1b4   : > { %6204 = vmatmul.msk.f32.vlgmr.msrb.gmra.mxu0 %vm397_vm0, %v6914_v51  ;;  %1387 = vmatpush.msrb.mxu1 %v1112_v15  ;;  %v1166_v42 = vld [vmem:[#allocation3 + $0x310] sm:$0xff] }
 0x1b5   : > { %v1169_v54 = vld [vmem:[#allocation3 + $0x328] sm:$0xff]  ;;  %1424 = vmatpush.msrb.mxu3 %v1136_v2 }
 0x1b6   : > { %1458 = vmatpush.msra.mxu2 %v1169_v54  ;;  %1388 = vmatpush.msrb.mxu1 %v1109_v25 }
 0x1b7   : > { %1425 = vmatpush.msrb.mxu3 %v1133_v26 }
 0x1b8   : > { %1459 = vmatpush.msra.mxu2 %v1166_v42  ;;  %1389 = vmatpush.msrb.mxu1 %v1106_v3 }
 0x1b9   : > { %1426 = vmatpush.msrb.mxu3 %v1130_v44  ;;  %1260 = vmatmul.f32.gmra.mxu1 %v7159_v47 }
 0x1ba   : > { %1324 = vmatmul.f32.gmra.mxu3 %v7134_v40  ;;  %1350 = vmatmul.f32.gmra.mxu2 %v1063_v13 }
 0x1bb   : > { %1390 = vmatpush.msrb.mxu1 %v1103_v46  ;;  %1427 = vmatpush.msrb.mxu3 %v1127_v58 }
 0x1bc   : > { %6205 = vmatmul.msk.f32.gmra.mxu0 %vm397_vm0, %v6932_v49 }
 0x1bd   : > { %1391 = vmatpush.msrb.mxu1 %v1100_v53  ;;  %1428 = vmatpush.msrb.mxu3 %v1124_v56 }
 0x1bf   : > { %1392 = vmatpush.msrb.mxu1 %v1097_v60  ;;  %1429 = vmatpush.msrb.mxu3 %v1121_v17 }
 0x1c1   : > { %1393 = vmatpush.msrb.mxu1 %v1094_v5  ;;  %1430 = vmatpush.msrb.mxu3 %v1118_v9 }
 0x1c2   : > { %1263 = vmatmul.f32.gmra.mxu1 %v1063_v13  ;;  %1353 = vmatmul.f32.gmra.mxu2 %v1066_v20 }
 0x1c3   : > { %1394 = vmatpush.msrb.mxu1 %v1091_v14  ;;  %1431 = vmatmul.f32.vlgmr.msrb.gmra.mxu3 %v7122_v43 }
 0x1c4   : > { %6206 = vmatmul.msk.f32.gmra.mxu0 %vm397_vm0, %v6967_v30 }
 0x1c5   : > { %1395 = vmatpush.msrb.mxu1 %v1088_v11 }
 0x1c7   : > { %1396 = vmatpush.msrb.mxu1 %v1085_v12 }
 0x1c9   : > { %1397 = vmatpush.msrb.mxu1 %v1082_v8 }
 0x1ca   : > { %1266 = vmatmul.f32.gmra.mxu1 %v1066_v20  ;;  %6208 = vmatmul.msk.f32.vlgmr.msra.gmra.mxu2 %vm397_vm0, %v6914_v51 }
 0x1cb   : > { %1398 = vmatpush.msrb.mxu1 %v1079_v33  ;;  %1434 = vmatmul.f32.gmra.mxu3 %v7159_v47 }
 0x1cc   : > { %6207 = vmatmul.msk.f32.gmra.mxu0 %vm397_vm0, %v7011_v24 }
 0x1cd   : > { %1399 = vmatpush.msrb.mxu1 %v1076_v34 }
 0x1cf   : > { %1400 = vmatpush.msrb.mxu1 %v1073_v50 }
 0x1d1   : > { %1401 = vmatpush.msrb.mxu1 %v1070_v59 }
 0x1d2   : > { %1402 = vmatmul.f32.vlgmr.msrb.gmra.mxu1 %v7043_v35  ;;  %6209 = vmatmul.msk.f32.gmra.mxu2 %vm397_vm0, %v6932_v49 }
 0x1d3   : > { %1437 = vmatmul.f32.gmra.mxu3 %v1063_v13 }
 0x1da   : > { %1405 = vmatmul.f32.gmra.mxu1 %v7072_v38  ;;  %6210 = vmatmul.msk.f32.gmra.mxu2 %vm397_vm0, %v6967_v30 }
 0x1db   : > { %1440 = vmatmul.f32.gmra.mxu3 %v1066_v20 }
 0x1e2   : > { %1408 = vmatmul.f32.gmra.mxu1 %v7097_v1  ;;  %6211 = vmatmul.msk.f32.gmra.mxu2 %vm397_vm0, %v7011_v24 }
 0x1ea   : > { %1411 = vmatmul.f32.gmra.mxu1 %v7134_v40 }
 0x1f1   : > { %v7201_v48 = vpop.permute.xlu2 %1182 }
 0x1f2   : > { %v1287_v51 = vpop.f32.mrf.mxu2 }
 0x1fa   : > { %v1290_v35 = vpop.f32.mrf.mxu2 }
 0x1fe   : > { %v1198_v20 = vpop.permute.xlu2 %1197 }
 0x202   : > { %v1293_v4 = vpop.f32.mrf.mxu2 }
 0x203   : > { %v7223_v31 = vpop.permute.xlu1 %1192 }
 0x20a   : > { %v7199_v29 = vpop.f32.mrf.mxu2 }
 0x20d   : > { %v1229_v22 = vpop.f32.mrf.mxu0 }
 0x20e   : > { %v1230_v1 = vadd.f32 %v1229_v22, %v7201_v48 }
 0x215   : > { %v7210_v45 = vpop.permute.xlu0 %1187 }
 0x216   : > { %v1232_v41 = vpop.f32.mrf.mxu0 }
 0x217   : > { %v1233_v37 = vadd.f32 %v1232_v41, %v7210_v45 }
 0x21e   : > { %v1235_v49 = vpop.f32.mrf.mxu0 }
 0x21f   : > { %v1236_v26 = vadd.f32 %v1235_v49, %v7223_v31 }
 0x222   : > { %v1316_v38 = vpop.f32.mrf.mxu3 }
 0x223   : > { %v1317_v30 = vadd.f32 %v1316_v38, %v7201_v48 }
 0x227   : > { %v1238_v43 = vpop.f32.mrf.mxu0 }
 0x228   : > { %v1239_v12 = vadd.f32 %v1238_v43, %v1198_v20 }
 0x22b   : > { %v1345_v18 = vpop.f32.mrf.mxu2  ;;  %v1319_v24 = vpop.f32.mrf.mxu3 }
 0x22c   : > { %v1346_v40 = vadd.f32 %v1345_v18, %v1317_v30  ;;  %v1320_v16 = vadd.f32 %v1319_v24, %v7210_v45 }
 0x22d   : > { %v1258_v19 = vpop.f32.mrf.mxu1 }
 0x22e   : > { %v1259_v55 = vadd.f32 %v1258_v19, %v1230_v1 }
 0x230   : > { %v1288_v61 = vadd.f32 %v1287_v51, %v1259_v55 }
 0x231   : > { %v1374_v57 = vpop.f32.mrf.mxu0 }
 0x232   : > { %v1473_v28 = vmax.f32 %v1288_v61, 0.0  ;;  %v1375_v0 = vadd.f32 %v1374_v57, %v1346_v40 }
 0x234   : > { %v1474_v21 = vmax.f32 %v1375_v0, 0.0  ;;  %v1348_v23 = vpop.f32.mrf.mxu2  ;;  %v1492_v7 = vmul.f32 %v7213_v52, %v1473_v28  ;;  %v1322_v47 = vpop.f32.mrf.mxu3 }
 0x235   : > { %v1349_v63 = vadd.f32 %v1348_v23, %v1320_v16  ;;  %v1323_v62 = vadd.f32 %v1322_v47, %v7223_v31 }
 0x236   : > { %v1261_v27 = vpop.f32.mrf.mxu1  ;;  %v1493_v32 = vmul.f32 %v7217_v6, %v1474_v21  ;;  %1516 = vrot.lane.b32.xlu1 %v1492_v7, %s6525_s29 }
 0x237   : > { %v1262_v10 = vadd.f32 %v1261_v27, %v1233_v37 }
 0x238   : > { %1518 = vrot.lane.b32.xlu2 %v1493_v32, %s6525_s29 }
 0x239   : > { %v1291_v39 = vadd.f32 %v1290_v35, %v1262_v10  ;;  %v1377_v15 = vpop.f32.mrf.mxu0 }
 0x23a   : > { %v1378_v2 = vadd.f32 %v1377_v15, %v1349_v63 }
 0x23b   : > { %v1476_v54 = vmax.f32 %v1291_v39, 0.0 }
 0x23c   : > { %v1477_v25 = vmax.f32 %v1378_v2, 0.0 }
 0x23d   : > { %v1351_v42 = vpop.f32.mrf.mxu2  ;;  %v1495_v3 = vmul.f32 %v7213_v52, %v1476_v54  ;;  %v1325_v53 = vpop.f32.mrf.mxu3 }
 0x23e   : > { %v1352_v13 = vadd.f32 %v1351_v42, %v1323_v62  ;;  %v1496_v44 = vmul.f32 %v7217_v6, %v1477_v25  ;;  %v1326_v11 = vadd.f32 %v1325_v53, %v1198_v20 }
 0x23f   : > { %v1264_v46 = vpop.f32.mrf.mxu1  ;;  %1522 = vrot.lane.b32.xlu1 %v1495_v3, %s6525_s29 }
 0x240   : > { %v1265_v58 = vadd.f32 %v1264_v46, %v1236_v26  ;;  %1524 = vrot.lane.b32.xlu2 %v1496_v44, %s6525_s29 }
 0x241   : > { %v1380_v56 = vpop.f32.mrf.mxu0 }
 0x242   : > { %v1294_v60 = vadd.f32 %v1293_v4, %v1265_v58  ;;  %v1381_v17 = vadd.f32 %v1380_v56, %v1352_v13 }
 0x244   : > { %v1479_v5 = vmax.f32 %v1294_v60, 0.0  ;;  %v1480_v9 = vmax.f32 %v1381_v17, 0.0 }
 0x245   : > { %v1354_v14 = vpop.f32.mrf.mxu2 }
 0x246   : > { %v1499_v8 = vmul.f32 %v7217_v6, %v1480_v9  ;;  %v1498_v33 = vmul.f32 %v7213_v52, %v1479_v5  ;;  %v1355_v50 = vadd.f32 %v1354_v14, %v1326_v11  ;;  %v1432_v22 = vpop.f32.mrf.mxu3 }
 0x247   : > { %v1267_v34 = vpop.f32.mrf.mxu1 }
 0x248   : > { %v1268_v59 = vadd.f32 %v1267_v34, %v1239_v12  ;;  %1530 = vrot.lane.b32.xlu2 %v1499_v8, %s6525_s29  ;;  %1528 = vrot.lane.b32.xlu1 %v1498_v33, %s6525_s29 }
 0x249   : > { %v1383_v51 = vpop.f32.mrf.mxu0 }
 0x24a   : > { %v1297_v35 = vadd.f32 %v7199_v29, %v1268_v59  ;;  %v1384_v41 = vadd.f32 %v1383_v51, %v1355_v50  ;;  %v7243_v29 = vperm.slane %v7208_v36, 2 }
 0x24c   : > { %v1482_v4 = vmax.f32 %v1297_v35, 0.0  ;;  %v1483_v49 = vmax.f32 %v1384_v41, 0.0  ;;  %10315 = vst [vmem:[#allocation7_spill] sm:$0xff] %v7243_v29 }
 0x24d   : > { %v1461_v38 = vpop.f32.mrf.mxu2 }
 0x24e   : > { %v1502_v43 = vmul.f32 %v7217_v6, %v1483_v49  ;;  %v1501_v30 = vmul.f32 %v7213_v52, %v1482_v4  ;;  %v1435_v19 = vpop.f32.mrf.mxu3  ;;  %v6225_v6 = vld [vmem:[%s10268_s2 + $0x28] sm:$0xff] }
 0x24f   : > { %v1403_v1 = vpop.f32.mrf.mxu1 }
 0x250   : > { %v1404_v18 = vadd.f32 %v1403_v1, %v7201_v48  ;;  %1536 = vrot.lane.b32.xlu2 %v1502_v43, %s6525_s29  ;;  %1534 = vrot.lane.b32.xlu1 %v1501_v30, %s6525_s29 }
 0x252   : > { %v1433_v24 = vadd.f32 %v1432_v22, %v1404_v18 }
 0x254   : > { %v1462_v40 = vadd.f32 %v1461_v38, %v1433_v24 }
 0x255   : > { %v1464_v55 = vpop.f32.mrf.mxu2 }
 0x256   : > { %v1475_v61 = vmax.f32 %v1462_v40, 0.0  ;;  %v1438_v37 = vpop.f32.mrf.mxu3 }
 0x257   : > { %v1406_v57 = vpop.f32.mrf.mxu1 }
 0x258   : > { %v1407_v28 = vadd.f32 %v1406_v57, %v7210_v45  ;;  %v1494_v0 = vmul.f32 %v7243_v29, %v1475_v61 }
 0x25a   : > { %v1436_v16 = vadd.f32 %v1435_v19, %v1407_v28  ;;  %1520 = vrot.lane.b32.xlu0 %v1494_v0, %s6525_s29 }
 0x25c   : > { %v1465_v48 = vadd.f32 %v1464_v55, %v1436_v16 }
 0x25d   : > { %v1467_v7 = vpop.f32.mrf.mxu2 }
 0x25e   : > { %v1478_v21 = vmax.f32 %v1465_v48, 0.0  ;;  %v1441_v10 = vpop.f32.mrf.mxu3 }
 0x25f   : > { %v1409_v23 = vpop.f32.mrf.mxu1 }
 0x260   : > { %v1410_v63 = vadd.f32 %v1409_v23, %v7223_v31  ;;  %v1497_v36 = vmul.f32 %v7243_v29, %v1478_v21 }
 0x262   : > { %v1439_v27 = vadd.f32 %v1438_v37, %v1410_v63  ;;  %1526 = vrot.lane.b32.xlu0 %v1497_v36, %s6525_s29 }
 0x264   : > { %v1468_v32 = vadd.f32 %v1467_v7, %v1439_v27 }
 0x265   : > { %v1470_v2 = vpop.f32.mrf.mxu2 }
 0x266   : > { %v1481_v47 = vmax.f32 %v1468_v32, 0.0 }
 0x267   : > { %v1412_v45 = vpop.f32.mrf.mxu1 }
 0x268   : > { %v1413_v39 = vadd.f32 %v1412_v45, %v1198_v20  ;;  %v1500_v15 = vmul.f32 %v7243_v29, %v1481_v47 }
 0x26a   : > { %v1442_v62 = vadd.f32 %v1441_v10, %v1413_v39  ;;  %1532 = vrot.lane.b32.xlu0 %v1500_v15, %s6525_s29 }
 0x26c   : > { %v1471_v54 = vadd.f32 %v1470_v2, %v1442_v62 }
 0x26e   : > { %v1484_v25 = vmax.f32 %v1471_v54, 0.0 }
 0x270   : > { %v1503_v31 = vmul.f32 %v7243_v29, %v1484_v25  ;;  %v6224_v29 = vld [vmem:[%s10268_s2 + $0x20] sm:$0xff] }
 0x272   : > { %1538 = vrot.lane.b32.xlu0 %v1503_v31, %s6525_s29 }
 0x292   : > { %v1519_v26 = vpop.permute.xlu2 %1518 }
 0x29a   : > { %v1525_v13 = vpop.permute.xlu2 %1524 }
 0x2a2   : > { %v1531_v53 = vpop.permute.xlu2 %1530 }
 0x2a8   : > { %v1517_v42 = vpop.permute.xlu1 %1516 }
 0x2a9   : > { %v7256_v3 = vsel %vm1540_vm3, %v1517_v42, %v1519_v26  ;;  %1562 = vst.msk [vmem:[#allocation2] sm:$0xff] %vm1561_vm4, %v1517_v42 }
 0x2aa   : > { %1563 = vst [vmem:[#allocation2 + $0x8] sm:$0xff] %v7256_v3  ;;  %v1537_v20 = vpop.permute.xlu2 %1536 }
 0x2b0   : > { %v7260_v44 = vld [vmem:[#allocation2] sm:$0xff] }
 0x2b1   : > { %v1523_v46 = vpop.permute.xlu1 %1522  ;;  %2103 = vrot.lane.b32.xlu2 %v7260_v44, %s6538_s18  ;;  %1623 = vrot.lane.b32.xlu1 %v7260_v44, %s6524_s4 }
 0x2b2   : > { %v7267_v58 = vsel %vm1540_vm3, %v1523_v46, %v1525_v13  ;;  %1566 = vst.msk [vmem:[#allocation2 + $0x18] sm:$0xff] %vm1561_vm4, %v1523_v46 }
 0x2b3   : > { %1567 = vst [vmem:[#allocation2 + $0x20] sm:$0xff] %v7267_v58 }
 0x2b9   : > { %1703 = vrot.lane.b32.xlu1 %v7260_v44, %s6526_s30  ;;  %v7273_v56 = vld [vmem:[#allocation2 + $0x18] sm:$0xff] }
 0x2ba   : > { %v1529_v60 = vpop.permute.xlu1 %1528  ;;  %2109 = vrot.lane.b32.xlu0 %v7273_v56, %s6538_s18  ;;  %2029 = vrot.lane.b32.xlu2 %v7273_v56, %s6541_s21 }
 0x2bb   : > { %v7280_v17 = vsel %vm1540_vm3, %v1529_v60, %v1531_v53  ;;  %1569 = vst.msk [vmem:[#allocation2 + $0x30] sm:$0xff] %vm1561_vm4, %v1529_v60 }
 0x2bc   : > { %1570 = vst [vmem:[#allocation2 + $0x38] sm:$0xff] %v7280_v17 }
 0x2c1   : > { %1783 = vrot.lane.b32.xlu1 %v7260_v44, %s6528_s8 }
 0x2c2   : > { %v1535_v5 = vpop.permute.xlu1 %1534  ;;  %1869 = vrot.lane.b32.xlu2 %v7273_v56, %s6533_s13  ;;  %v7288_v9 = vld [vmem:[#allocation2 + $0x30] sm:$0xff] }
 0x2c3   : > { %v7291_v14 = vsel %vm1540_vm3, %v1535_v5, %v1537_v20  ;;  %1572 = vst.msk [vmem:[#allocation2 + $0x48] sm:$0xff] %vm1561_vm4, %v1535_v5  ;;  %1795 = vrot.lane.b32.xlu0 %v7288_v9, %s6528_s8 }
 0x2c4   : > { %1573 = vst [vmem:[#allocation2 + $0x50] sm:$0xff] %v7291_v14 }
 0x2c9   : > { %2023 = vrot.lane.b32.xlu1 %v7260_v44, %s6541_s21 }
 0x2ca   : > { %1955 = vrot.lane.b32.xlu2 %v7288_v9, %s6547_s7  ;;  %v7307_v8 = vld [vmem:[#allocation2 + $0x48] sm:$0xff] }
 0x2cb   : > { %2035 = vrot.lane.b32.xlu0 %v7288_v9, %s6541_s21 }
 0x2cc   : > { %v1521_v11 = vpop.permute.xlu0 %1520 }
 0x2cd   : > { %v1542_v12 = vsel %vm1540_vm3, %v1519_v26, %v1521_v11 }
 0x2ce   : > { %1565 = vst.msk [vmem:[#allocation2 + $0x10] sm:$0xff] %vm1564_vm5, %v1542_v12 }
 0x2d1   : > { %1943 = vrot.lane.b32.xlu1 %v7260_v44, %s6547_s7 }
 0x2d2   : > { %2121 = vrot.lane.b32.xlu2 %v7307_v8, %s6538_s18 }
 0x2d3   : > { %1875 = vrot.lane.b32.xlu0 %v7288_v9, %s6533_s13 }
 0x2d4   : > { %v1527_v33 = vpop.permute.xlu0 %1526 }
 0x2d5   : > { %v1544_v34 = vsel %vm1540_vm3, %v1525_v13, %v1527_v33  ;;  %v1577_v50 = vld [vmem:[#allocation2 + $0x10] sm:$0xff] }
 0x2d6   : > { %1568 = vst.msk [vmem:[#allocation2 + $0x28] sm:$0xff] %vm1564_vm5, %v1544_v34  ;;  %v7360_v38 = vld [vmem:[#allocation2 + $0x10] sm:$0xff] }
 0x2d7   : > { %1589 = vst.msk [vmem:[#allocation3 + $0x10] sm:$0xff] %vm397_vm0, %v1577_v50 }
 0x2d9   : > { %1863 = vrot.lane.b32.xlu1 %v7260_v44, %s6533_s13 }
 0x2da   : > { %1625 = vrot.lane.b32.xlu2 %v7256_v3, %s6524_s4 }
 0x2db   : > { %1961 = vrot.lane.b32.xlu0 %v7307_v8, %s6547_s7 }
 0x2dc   : > { %v1533_v59 = vpop.permute.xlu0 %1532 }
 0x2dd   : > { %v1546_v51 = vsel %vm1540_vm3, %v1531_v53, %v1533_v59  ;;  %v1580_v22 = vld [vmem:[#allocation2 + $0x28] sm:$0xff] }
 0x2de   : > { %1571 = vst.msk [vmem:[#allocation2 + $0x40] sm:$0xff] %vm1564_vm5, %v1546_v51  ;;  %v7414_v61 = vld [vmem:[#allocation2 + $0x28] sm:$0xff] }
 0x2df   : > { %1592 = vst.msk [vmem:[#allocation3 + $0x28] sm:$0xff] %vm397_vm0, %v1580_v22 }
 0x2e1   : > { %1629 = vrot.lane.b32.xlu1 %v7273_v56, %s6524_s4 }
 0x2e2   : > { %1705 = vrot.lane.b32.xlu2 %v7256_v3, %s6526_s30 }
 0x2e3   : > { %2105 = vrot.lane.b32.xlu0 %v7256_v3, %s6538_s18 }
 0x2e4   : > { %v1539_v35 = vpop.permute.xlu0 %1538 }
 0x2e5   : > { %v1548_v41 = vsel %vm1540_vm3, %v1537_v20, %v1539_v35  ;;  %v1583_v4 = vld [vmem:[#allocation2 + $0x40] sm:$0xff] }
 0x2e6   : > { %1574 = vst.msk [vmem:[#allocation2 + $0x58] sm:$0xff] %vm1564_vm5, %v1548_v41  ;;  %v7474_v10 = vld [vmem:[#allocation2 + $0x40] sm:$0xff] }
 0x2e7   : > { %1595 = vst.msk [vmem:[#allocation3 + $0x40] sm:$0xff] %vm397_vm0, %v1583_v4 }
 0x2e9   : > { %1709 = vrot.lane.b32.xlu1 %v7273_v56, %s6526_s30 }
 0x2ea   : > { %1785 = vrot.lane.b32.xlu2 %v7256_v3, %s6528_s8 }
 0x2eb   : > { %2031 = vrot.lane.b32.xlu0 %v7267_v58, %s6541_s21 }
 0x2ed   : > { %v7340_v49 = vld [vmem:[#allocation2 + $0x58] sm:$0xff] }
 0x2ee   : > { %1598 = vst.msk [vmem:[#allocation3 + $0x58] sm:$0xff] %vm397_vm0, %v7340_v49 }
 0x2f1   : > { %1789 = vrot.lane.b32.xlu1 %v7273_v56, %s6528_s8 }
 0x2f2   : > { %2025 = vrot.lane.b32.xlu2 %v7256_v3, %s6541_s21 }
 0x2f3   : > { %1871 = vrot.lane.b32.xlu0 %v7267_v58, %s6533_s13 }
 0x2f9   : > { %1949 = vrot.lane.b32.xlu1 %v7273_v56, %s6547_s7 }
 0x2fa   : > { %1945 = vrot.lane.b32.xlu2 %v7256_v3, %s6547_s7 }
 0x2fb   : > { %1957 = vrot.lane.b32.xlu0 %v7280_v17, %s6547_s7 }
 0x301   : > { %2189 = vrot.lane.b32.xlu1 %v7273_v56, %s6536_s16 }
 0x302   : > { %1865 = vrot.lane.b32.xlu2 %v7256_v3, %s6533_s13 }
 0x303   : > { %1627 = vrot.lane.b32.xlu0 %v7360_v38, %s6524_s4 }
 0x309   : > { %1635 = vrot.lane.b32.xlu1 %v7288_v9, %s6524_s4 }
 0x30a   : > { %1631 = vrot.lane.b32.xlu2 %v7267_v58, %s6524_s4 }
 0x30b   : > { %1707 = vrot.lane.b32.xlu0 %v7360_v38, %s6526_s30  ;;  %v7370_v43 = vpop.permute.xlu2 %2103 }
 0x311   : > { %1715 = vrot.lane.b32.xlu1 %v7288_v9, %s6526_s30 }
 0x312   : > { %1711 = vrot.lane.b32.xlu2 %v7267_v58, %s6526_s30 }
 0x313   : > { %1787 = vrot.lane.b32.xlu0 %v7360_v38, %s6528_s8 }
 0x314   : > { %v7378_v30 = vpop.permute.xlu2 %2029 }
 0x319   : > { %2115 = vrot.lane.b32.xlu1 %v7288_v9, %s6538_s18 }
 0x31a   : > { %1791 = vrot.lane.b32.xlu2 %v7267_v58, %s6528_s8 }
 0x31b   : > { %2123 = vrot.lane.b32.xlu0 %v7291_v14, %s6538_s18 }
 0x31c   : > { %v7386_v1 = vpop.permute.xlu2 %1869 }
 0x321   : > { %2195 = vrot.lane.b32.xlu1 %v7288_v9, %s6536_s16 }
 0x322   : > { %1951 = vrot.lane.b32.xlu2 %v7267_v58, %s6547_s7 }
 0x323   : > { %2107 = vrot.lane.b32.xlu0 %v7360_v38, %s6538_s18  ;;  %v7394_v18 = vpop.permute.xlu1 %1623 }
 0x324   : > { %v7396_v24 = vpop.permute.xlu2 %1955 }
 0x329   : > { %1641 = vrot.lane.b32.xlu1 %v7307_v8, %s6524_s4 }
 0x32a   : > { %2191 = vrot.lane.b32.xlu2 %v7267_v58, %s6536_s16 }
 0x32b   : > { %1947 = vrot.lane.b32.xlu0 %v7360_v38, %s6547_s7  ;;  %v7404_v19 = vpop.permute.xlu1 %1703 }
 0x32c   : > { %v7406_v40 = vpop.permute.xlu0 %2109  ;;  %v7408_v55 = vpop.permute.xlu2 %2121 }
 0x331   : > { %1721 = vrot.lane.b32.xlu1 %v7307_v8, %s6526_s30 }
 0x332   : > { %1637 = vrot.lane.b32.xlu2 %v7280_v17, %s6524_s4 }
 0x333   : > { %1633 = vrot.lane.b32.xlu0 %v7414_v61, %s6524_s4  ;;  %v7418_v57 = vpop.permute.xlu1 %1783 }
 0x334   : > { %v7420_v28 = vpop.permute.xlu2 %1625 }
 0x335   : > { %v7422_v0 = vpop.permute.xlu0 %1795 }
 0x339   : > { %1801 = vrot.lane.b32.xlu1 %v7307_v8, %s6528_s8 }
 0x33a   : > { %1717 = vrot.lane.b32.xlu2 %v7280_v17, %s6526_s30 }
 0x33b   : > { %1713 = vrot.lane.b32.xlu0 %v7414_v61, %s6526_s30  ;;  %v7430_v16 = vpop.permute.xlu1 %2023 }
 0x33c   : > { %v7432_v48 = vpop.permute.xlu2 %1705 }
 0x33d   : > { %v7434_v37 = vpop.permute.xlu0 %2035 }
 0x341   : > { %2041 = vrot.lane.b32.xlu1 %v7307_v8, %s6541_s21 }
 0x342   : > { %2117 = vrot.lane.b32.xlu2 %v7280_v17, %s6538_s18 }
 0x343   : > { %1793 = vrot.lane.b32.xlu0 %v7414_v61, %s6528_s8  ;;  %v7442_v21 = vpop.permute.xlu1 %1943 }
 0x344   : > { %v7444_v23 = vpop.permute.xlu2 %1785 }
 0x345   : > { %v7446_v7 = vpop.permute.xlu0 %1875 }
 0x349   : > { %1881 = vrot.lane.b32.xlu1 %v7307_v8, %s6533_s13 }
 0x34a   : > { %2197 = vrot.lane.b32.xlu2 %v7280_v17, %s6536_s16 }
 0x34b   : > { %2033 = vrot.lane.b32.xlu0 %v7414_v61, %s6541_s21  ;;  %v7454_v63 = vpop.permute.xlu1 %1863 }
 0x34c   : > { %v7456_v36 = vpop.permute.xlu2 %2025 }
 0x34d   : > { %v7458_v27 = vpop.permute.xlu0 %1961 }
 0x351   : > { %2201 = vrot.lane.b32.xlu1 %v7307_v8, %s6536_s16 }
 0x352   : > { %1643 = vrot.lane.b32.xlu2 %v7291_v14, %s6524_s4 }
 0x353   : > { %1953 = vrot.lane.b32.xlu0 %v7414_v61, %s6547_s7  ;;  %v7466_v32 = vpop.permute.xlu1 %1629 }
 0x354   : > { %v7468_v47 = vpop.permute.xlu2 %1945 }
 0x355   : > { %v7470_v45 = vpop.permute.xlu0 %2105 }
 0x359   : > { %2111 = vrot.lane.b32.xlu1 %v7267_v58, %s6538_s18 }
 0x35a   : > { %1723 = vrot.lane.b32.xlu2 %v7291_v14, %s6526_s30 }
 0x35b   : > { %1639 = vrot.lane.b32.xlu0 %v7474_v10, %s6524_s4  ;;  %v7480_v39 = vpop.permute.xlu1 %1709 }
 0x35c   : > { %v7482_v15 = vpop.permute.xlu2 %1865 }
 0x35d   : > { %v7484_v2 = vpop.permute.xlu0 %2031 }
 0x361   : > { %1797 = vrot.lane.b32.xlu1 %v7280_v17, %s6528_s8 }
 0x362   : > { %1803 = vrot.lane.b32.xlu2 %v7291_v14, %s6528_s8 }
 0x363   : > { %1719 = vrot.lane.b32.xlu0 %v7474_v10, %s6526_s30  ;;  %v7492_v62 = vpop.permute.xlu1 %1789 }
 0x364   : > { %v7494_v54 = vpop.permute.xlu2 %1631 }
 0x365   : > { %v7496_v25 = vpop.permute.xlu0 %1871 }
 0x369   : > { %2037 = vrot.lane.b32.xlu1 %v7280_v17, %s6541_s21 }
 0x36a   : > { %2043 = vrot.lane.b32.xlu2 %v7291_v14, %s6541_s21 }
 0x36b   : > { %1799 = vrot.lane.b32.xlu0 %v7474_v10, %s6528_s8  ;;  %v7504_v31 = vpop.permute.xlu1 %1949 }
 0x36c   : > { %v7506_v26 = vpop.permute.xlu2 %1711 }
 0x36d   : > { %v7508_v42 = vpop.permute.xlu0 %1957 }
 0x371   : > { %1877 = vrot.lane.b32.xlu1 %v7280_v17, %s6533_s13 }
 0x372   : > { %1883 = vrot.lane.b32.xlu2 %v7291_v14, %s6533_s13 }
 0x373   : > { %1959 = vrot.lane.b32.xlu0 %v7474_v10, %s6547_s7  ;;  %v7516_v13 = vpop.permute.xlu1 %2189 }
 0x374   : > { %v7518_v46 = vpop.permute.xlu2 %1791 }
 0x375   : > { %v7520_v58 = vpop.permute.xlu0 %1627 }
 0x376   : > { %10316 = vst [vmem:[#allocation8_spill] sm:$0xff] %v7520_v58 }
 0x377   : > { %1669 = vst.msk [vmem:[#allocation3 + $0x70] sm:$0xff] %vm397_vm0, %v7520_v58 }
 0x379   : > { %1963 = vrot.lane.b32.xlu1 %v7291_v14, %s6547_s7 }
 0x37a   : > { %2203 = vrot.lane.b32.xlu2 %v7291_v14, %s6536_s16 }
 0x37b   : > { %1645 = vrot.lane.b32.xlu0 %v7340_v49, %s6524_s4  ;;  %v7530_v53 = vpop.permute.xlu1 %1635 }
 0x37c   : > { %v7532_v60 = vpop.permute.xlu2 %1951 }
 0x37d   : > { %v7534_v17 = vpop.permute.xlu0 %1707 }
 0x37e   : > { %10317 = vst [vmem:[#allocation9_spill] sm:$0xff] %v7534_v17 }
 0x37f   : > { %1749 = vst.msk [vmem:[#allocation3 + $0xd0] sm:$0xff] %vm397_vm0, %v7534_v17 }
 0x381   : > { %2027 = vrot.lane.b32.xlu1 %v7360_v38, %s6541_s21 }
 0x382   : > { %2113 = vrot.lane.b32.xlu2 %v7414_v61, %s6538_s18 }
 0x383   : > { %1725 = vrot.lane.b32.xlu0 %v7340_v49, %s6526_s30  ;;  %v7544_v20 = vpop.permute.xlu1 %1715 }
 0x384   : > { %v7546_v5 = vpop.permute.xlu2 %2191 }
 0x385   : > { %v7548_v14 = vpop.permute.xlu0 %1787 }
 0x386   : > { %1829 = vst.msk [vmem:[#allocation3 + $0x130] sm:$0xff] %vm397_vm0, %v7548_v14 }
 0x389   : > { %2119 = vrot.lane.b32.xlu1 %v7474_v10, %s6538_s18 }
 0x38a   : > { %2039 = vrot.lane.b32.xlu2 %v7474_v10, %s6541_s21 }
 0x38b   : > { %1805 = vrot.lane.b32.xlu0 %v7340_v49, %s6528_s8  ;;  %v2116_v11 = vpop.permute.xlu1 %2115 }
 0x38c   : > { %v7558_v12 = vpop.permute.xlu2 %1637 }
 0x38d   : > { %v7560_v33 = vpop.permute.xlu0 %2123 }
 0x38e   : > { %10318 = vst [vmem:[#allocation10_spill] sm:$0xff] %v7560_v33  ;;  %v2133_v34 = vsel %vm942_vm15, %v7408_v55, %v7560_v33 }
 0x38f   : > { %2426 = vmatpush.msra.mxu1 %v2133_v34 }
 0x391   : > { %2045 = vrot.lane.b32.xlu1 %v7340_v49, %s6541_s21 }
 0x392   : > { %2185 = vrot.lane.b32.xlu2 %v7256_v3, %s6536_s16 }
 0x393   : > { %2125 = vrot.lane.b32.xlu0 %v7340_v49, %s6538_s18  ;;  %v7571_v50 = vpop.permute.xlu1 %2195 }
 0x394   : > { %v7573_v59 = vpop.permute.xlu2 %1717 }
 0x395   : > { %v7575_v51 = vpop.permute.xlu0 %2107 }
 0x396   : > { %10319 = vst [vmem:[#allocation11_spill] sm:$0xff] %v7575_v51 }
 0x397   : > { %2149 = vst.msk [vmem:[#allocation3 + $0x2b0] sm:$0xff] %vm397_vm0, %v7575_v51 }
 0x399   : > { %2183 = vrot.lane.b32.xlu1 %v7260_v44, %s6536_s16 }
 0x39a   : > { %1965 = vrot.lane.b32.xlu2 %v7340_v49, %s6547_s7 }
 0x39b   : > { %1879 = vrot.lane.b32.xlu0 %v7474_v10, %s6533_s13  ;;  %v7585_v3 = vpop.permute.xlu1 %1641 }
 0x39c   : > { %v7587_v22 = vpop.permute.xlu2 %2117 }
 0x39d   : > { %10320 = vst [vmem:[#allocation12_spill] sm:$0xff] %v7587_v22  ;;  %v2131_v35 = vsel %vm942_vm15, %v2116_v11, %v7587_v22  ;;  %v7591_v41 = vpop.permute.xlu0 %1947 }
 0x39e   : > { %10321 = vst [vmem:[#allocation13_spill] sm:$0xff] %v7591_v41  ;;  %2427 = vmatpush.msra.mxu1 %v2131_v35 }
 0x39f   : > { %1989 = vst.msk [vmem:[#allocation3 + $0x1f0] sm:$0xff] %vm397_vm0, %v7591_v41  ;;  %v6227_v41 = vld [vmem:[%s10268_s2 + $0x38] sm:$0xff] }
 0x3a1   : > { %2205 = vrot.lane.b32.xlu1 %v7340_v49, %s6536_s16 }
 0x3a2   : > { %1873 = vrot.lane.b32.xlu2 %v7414_v61, %s6533_s13 }
 0x3a3   : > { %2199 = vrot.lane.b32.xlu0 %v7474_v10, %s6536_s16  ;;  %v1722_v4 = vpop.permute.xlu1 %1721 }
 0x3a4   : > { %v7601_v55 = vpop.permute.xlu2 %2197 }
 0x3a5   : > { %v7603_v34 = vpop.permute.xlu0 %1633 }
 0x3a6   : > { %10322 = vst [vmem:[#allocation14_spill] sm:$0xff] %v7603_v34 }
 0x3a7   : > { %1672 = vst.msk [vmem:[#allocation3 + $0x88] sm:$0xff] %vm397_vm0, %v7603_v34 }
 0x3a9   : > { %1867 = vrot.lane.b32.xlu1 %v7360_v38, %s6533_s13 }
 0x3aa   : > { %2193 = vrot.lane.b32.xlu2 %v7414_v61, %s6536_s16 }
 0x3ab   : > { %1885 = vrot.lane.b32.xlu0 %v7340_v49, %s6533_s13  ;;  %v1802_v11 = vpop.permute.xlu1 %1801 }
 0x3ac   : > { %v7613_v35 = vpop.permute.xlu2 %1643 }
 0x3ad   : > { %v7615_v10 = vpop.permute.xlu0 %1713 }
 0x3ae   : > { %10323 = vst [vmem:[#allocation15_spill] sm:$0xff] %v7615_v10 }
 0x3af   : > { %1752 = vst.msk [vmem:[#allocation3 + $0xe8] sm:$0xff] %vm397_vm0, %v7615_v10 }
 0x3b1   : > { %2367 = vperm.xlu1 %6502, %v6224_v29   ;;  %v6226_v29 = vld [vmem:[%s10268_s2 + $0x30] sm:$0xff] }
 0x3b2   : > { %2372 = vperm.xlu2 %6500, %v6225_v6  }
 0x3b3   : > { %2187 = vrot.lane.b32.xlu0 %v7360_v38, %s6536_s16  ;;  %v2042_v49 = vpop.permute.xlu1 %2041 }
 0x3b4   : > { %v7627_v61 = vpop.permute.xlu2 %1723 }
 0x3b5   : > { %v7629_v52 = vpop.permute.xlu0 %1793 }
 0x3b6   : > { %1832 = vst.msk [vmem:[#allocation3 + $0x148] sm:$0xff] %vm397_vm0, %v7629_v52 }
 0x3b9   : > { %2382 = vperm.xlu1 %6502, %v6227_v41  }
 0x3bb   : > { %2377 = vperm.xlu0 %6501, %v6226_v29   ;;  %v7639_v6 = vpop.permute.xlu1 %1881 }
 0x3bc   : > { %v7641_v38 = vpop.permute.xlu2 %1803 }
 0x3bd   : > { %v7643_v58 = vpop.permute.xlu0 %2033  ;;  %v1813_v34 = vsel %vm618_vm2, %v1802_v11, %v7641_v38 }
 0x3be   : > { %10324 = vst [vmem:[#allocation16_spill] sm:$0xff] %v7643_v58  ;;  %2397 = vmatpush.msra.mxu0 %v1813_v34  ;;  %v2127_v34 = vsel %vm942_vm15, %v7370_v43, %v7470_v45 }
 0x3bf   : > { %2072 = vst.msk [vmem:[#allocation3 + $0x268] sm:$0xff] %vm397_vm0, %v7643_v58 }
 0x3c3   : > { %v2202_v51 = vpop.permute.xlu1 %2201 }
 0x3c4   : > { %v7649_v17 = vpop.permute.xlu2 %2043 }
 0x3c5   : > { %v7651_v10 = vpop.permute.xlu0 %1953 }
 0x3c6   : > { %10325 = vst [vmem:[#allocation17_spill] sm:$0xff] %v7651_v10 }
 0x3c7   : > { %1992 = vst.msk [vmem:[#allocation3 + $0x208] sm:$0xff] %vm397_vm0, %v7651_v10  ;;  %v2053_v10 = vsel %vm861_vm11, %v2042_v49, %v7649_v17 }
 0x3cb   : > { %v7655_v41 = vpop.permute.xlu1 %2111 }
 0x3cc   : > { %v7657_v29 = vpop.permute.xlu2 %1883  ;;  %v2129_v11 = vsel %vm942_vm15, %v7406_v40, %v7655_v41 }
 0x3cd   : > { %v7662_v22 = vpop.permute.xlu0 %1639  ;;  %2428 = vmatpush.msra.mxu1 %v2129_v11 }
 0x3ce   : > { %1675 = vst.msk [vmem:[#allocation3 + $0xa0] sm:$0xff] %vm397_vm0, %v7662_v22 }
 0x3cf   : > { %2429 = vmatpush.msra.mxu1 %v2127_v34  ;;  %v1809_v34 = vsel %vm618_vm2, %v7492_v62, %v7518_v46  ;;  %v1733_v62 = vsel %vm537_vm10, %v1722_v4, %v7627_v61  ;;  %v2047_v4 = vsel %vm861_vm11, %v7430_v16, %v7456_v36  ;;  %v1649_v16 = vsel %vm456_vm1, %v7466_v32, %v7494_v54 }
 0x3d1   : > { %2430 = vmatpush.msra.mxu1 %v2053_v10  ;;  %v2211_v10 = vsel %vm1023_vm13, %v7571_v50, %v7601_v55  ;;  %v1731_v50 = vsel %vm537_vm10, %v7544_v20, %v7573_v59  ;;  %v1729_v20 = vsel %vm537_vm10, %v7480_v39, %v7506_v26 }
 0x3d3   : > { %v7671_v58 = vpop.permute.xlu1 %1797 }
 0x3d4   : > { %v7673_v33 = vpop.permute.xlu2 %2203  ;;  %v1811_v40 = vsel %vm618_vm2, %v7422_v0, %v7671_v58  ;;  %v1807_v0 = vsel %vm618_vm2, %v7418_v57, %v7444_v23 }
 0x3d5   : > { %v7678_v11 = vpop.permute.xlu0 %1719  ;;  %v2213_v43 = vsel %vm1023_vm13, %v2202_v51, %v7673_v33  ;;  %2398 = vmatpush.msra.mxu0 %v1811_v40  ;;  %v2209_v51 = vsel %vm1023_vm13, %v7516_v13, %v7546_v5  ;;  %v2049_v13 = vsel %vm861_vm11, %v7378_v30, %v7484_v2  ;;  %v1653_v30 = vsel %vm456_vm1, %v7585_v3, %v7613_v35 }
 0x3d6   : > { %1755 = vst.msk [vmem:[#allocation3 + $0x100] sm:$0xff] %vm397_vm0, %v7678_v11  ;;  %2467 = vmatpush.msra.mxu3 %v2213_v43 }
 0x3d7   : > { %2399 = vmatpush.msra.mxu0 %v1809_v34  ;;  %v1651_v34 = vsel %vm456_vm1, %v7530_v53, %v7558_v12  ;;  %v1647_v53 = vsel %vm456_vm1, %v7394_v18, %v7420_v28  ;;  %v1971_v18 = vsel %vm780_vm12, %v7396_v24, %v7508_v42  ;;  %v1967_v24 = vsel %vm780_vm12, %v7442_v21, %v7468_v47 }
 0x3d8   : > { %2468 = vmatpush.msra.mxu3 %v2211_v10 }
 0x3d9   : > { %2400 = vmatpush.msra.mxu0 %v1807_v0 }
 0x3da   : > { %2469 = vmatpush.msra.mxu3 %v2209_v51 }
 0x3db   : > { %v7698_v49 = vpop.permute.xlu1 %2037  ;;  %2401 = vmatpush.msra.mxu0 %v1733_v62 }
 0x3dc   : > { %v7703_v40 = vpop.permute.xlu2 %2113  ;;  %v2051_v57 = vsel %vm861_vm11, %v7434_v37, %v7698_v49  ;;  %v1727_v37 = vsel %vm537_vm10, %v7404_v19, %v7432_v48 }
 0x3dd   : > { %v7708_v43 = vpop.permute.xlu0 %1799  ;;  %2152 = vst.msk [vmem:[#allocation3 + $0x2c8] sm:$0xff] %vm397_vm0, %v7703_v40  ;;  %2402 = vmatpush.msra.mxu0 %v1731_v50  ;;  %2431 = vmatpush.msra.mxu1 %v2051_v57  ;;  %v7804_v50 = vld [vmem:[%s10267_s1 + $0x68] sm:$0xff] }
 0x3de   : > { %1835 = vst.msk [vmem:[#allocation3 + $0x160] sm:$0xff] %vm397_vm0, %v7708_v43 }
 0x3df   : > { %2403 = vmatpush.msra.mxu0 %v1729_v20  ;;  %2432 = vmatpush.msra.mxu1 %v2049_v13 }
 0x3e1   : > { %2404 = vmatpush.msra.mxu0 %v1727_v37  ;;  %2433 = vmatpush.msra.mxu1 %v2047_v4  ;;  %v1812_v37 = vsel %vm618_vm2, %v7671_v58, %v7708_v43  ;;  %v7830_v4 = vld [vmem:[%s10267_s1 + $0x80] sm:$0xff] }
 0x3e3   : > { %v7729_v39 = vpop.permute.xlu1 %1877  ;;  %2405 = vmatpush.msra.mxu0 %v1653_v30 }
 0x3e4   : > { %v7734_v10 = vpop.permute.xlu2 %2039  ;;  %v1891_v21 = vsel %vm699_vm14, %v7446_v7, %v7729_v39  ;;  %v1887_v7 = vsel %vm699_vm14, %v7454_v63, %v7482_v15  ;;  %v7822_v63 = vld [vmem:[%s10267_s1 + $0x90] sm:$0xff] }
 0x3e5   : > { %v7736_v19 = vpop.permute.xlu0 %1959  ;;  %2075 = vst.msk [vmem:[#allocation3 + $0x280] sm:$0xff] %vm397_vm0, %v7734_v10  ;;  %2406 = vmatpush.msra.mxu0 %v1651_v34  ;;  %v1808_v34 = vsel %vm618_vm2, %v7444_v23, %v7548_v14  ;;  %v7853_v23 = vld [vmem:[%s10267_s1 + $0xa8] sm:$0xff]  ;;  %v1732_v14 = vsel %vm537_vm10, %v7573_v59, %v7678_v11 }
 0x3e6   : > { %1995 = vst.msk [vmem:[#allocation3 + $0x220] sm:$0xff] %vm397_vm0, %v7736_v19  ;;  %v10329_v11 = vld [vmem:[#allocation9_spill] sm:$0xff] }
 0x3e7   : > { %2407 = vmatpush.msra.mxu0 %v1649_v16 }
 0x3e9   : > { %2408 = vmatpush.msra.mxu0 %v1647_v53  ;;  %v10327_v53 = vld [vmem:[#allocation12_spill] sm:$0xff] }
 0x3eb   : > { %v7748_v3 = vpop.permute.xlu1 %1963  ;;  %2409 = vmatpush.msra.mxu0 %v7307_v8  ;;  %v7768_v8 = vld [vmem:[%s10267_s1 + $0x60] sm:$0xff] }
 0x3ec   : > { %v7751_v0 = vpop.permute.xlu2 %2185  ;;  %v1973_v51 = vsel %vm780_vm12, %v7458_v27, %v7748_v3  ;;  %v1893_v27 = vsel %vm699_vm14, %v7639_v6, %v7657_v29  ;;  %v1889_v6 = vsel %vm699_vm14, %v7386_v1, %v7496_v25 }
 0x3ed   : > { %v7756_v32 = vpop.permute.xlu0 %1645  ;;  %2410 = vmatpush.msra.mxu0 %v7288_v9  ;;  %2434 = vmatpush.msra.mxu1 %v1973_v51  ;;  %v1969_v9 = vsel %vm780_vm12, %v7504_v31, %v7532_v60  ;;  %v7796_v31 = vld [vmem:[%s10267_s1 + $0x78] sm:$0xff] }
 0x3ee   : > { %1678 = vst.msk [vmem:[#allocation3 + $0xb8] sm:$0xff] %vm397_vm0, %v7756_v32 }
 0x3ef   : > { %2411 = vmatpush.msra.mxu0 %v7273_v56  ;;  %2435 = vmatpush.msra.mxu1 %v1971_v18  ;;  %v10328_v18 = vld [vmem:[#allocation15_spill] sm:$0xff] }
 0x3f1   : > { %2412 = vmatpush.msra.mxu0 %v7260_v44  ;;  %2436 = vmatpush.msra.mxu1 %v1969_v9  ;;  %v1730_v9 = vsel %vm537_vm10, %v7506_v26, %v10328_v18 }
 0x3f2   : > { %2413 = vmatmul.f32.vlgmr.msra.gmra.mxu0 %v7768_v8 }
 0x3f3   : > { %v7778_v56 = vpop.permute.xlu1 %2027  ;;  %2437 = vmatpush.msra.mxu1 %v1967_v24  ;;  %v2130_v24 = vsel %vm942_vm15, %v7655_v41, %v7703_v40  ;;  %v7886_v41 = vld [vmem:[%s10267_s1 + $0x70] sm:$0xff]  ;;  %v1652_v40 = vsel %vm456_vm1, %v7558_v12, %v7662_v22  ;;  %v2296_v12 = vld [vmem:[#allocation3 + $0x160] sm:$0xff] }
 0x3f4   : > { %v7783_v62 = vpop.permute.xlu2 %1965  ;;  %2069 = vst.msk [vmem:[#allocation3 + $0x250] sm:$0xff] %vm397_vm0, %v7778_v56  ;;  %v10332_v22 = vld [vmem:[#allocation16_spill] sm:$0xff] }
 0x3f5   : > { %v1726_v44 = vpop.permute.xlu0 %1725  ;;  %1998 = vst.msk [vmem:[#allocation3 + $0x238] sm:$0xff] %vm397_vm0, %v7783_v62  ;;  %2438 = vmatpush.msra.mxu1 %v1893_v27  ;;  %v1728_v27 = vsel %vm537_vm10, %v7432_v48, %v10329_v11  ;;  %v1654_v48 = vsel %vm456_vm1, %v7613_v35, %v7756_v32  ;;  %v2052_v35 = vsel %vm861_vm11, %v7698_v49, %v7734_v10  ;;  %v10331_v32 = vld [vmem:[#allocation14_spill] sm:$0xff]  ;;  %v10333_v49 = vld [vmem:[#allocation8_spill] sm:$0xff] }
 0x3f6   : > { %1758 = vst.msk [vmem:[#allocation3 + $0x118] sm:$0xff] %vm397_vm0, %v1726_v44  ;;  %v1648_v10 = vsel %vm456_vm1, %v7420_v28, %v10333_v49  ;;  %v7927_v28 = vld [vmem:[%s10267_s1 + $0x88] sm:$0xff]  ;;  %v2341_v11 = vld [vmem:[#allocation3 + $0x2c8] sm:$0xff] }
 0x3f7   : > { %2439 = vmatpush.msra.mxu1 %v1891_v21  ;;  %v2320_v49 = vld [vmem:[#allocation3 + $0x220] sm:$0xff] }
 0x3f9   : > { %2440 = vmatpush.msra.mxu1 %v1889_v6 }
 0x3fa   : > { %2416 = vmatmul.f32.gmra.mxu0 %v7796_v31 }
 0x3fb   : > { %v2120_v57 = vpop.permute.xlu1 %2119  ;;  %2441 = vmatpush.msra.mxu1 %v1887_v7 }
 0x3fc   : > { %v7810_v13 = vpop.permute.xlu2 %1873  ;;  %2155 = vst.msk [vmem:[#allocation3 + $0x2e0] sm:$0xff] %vm397_vm0, %v2120_v57  ;;  %2442 = vmatmul.f32.vlgmr.msra.gmra.mxu1 %v7804_v50  ;;  %v2132_v51 = vsel %vm942_vm15, %v10327_v53, %v2120_v57  ;;  %v1650_v57 = vsel %vm456_vm1, %v7494_v54, %v10331_v32  ;;  %v2293_v54 = vld [vmem:[#allocation3 + $0x148] sm:$0xff] }
 0x3fd   : > { %v1806_v1 = vpop.permute.xlu0 %1805  ;;  %1912 = vst.msk [vmem:[#allocation3 + $0x1a8] sm:$0xff] %vm397_vm0, %v7810_v13 }
 0x3fe   : > { %v1814_v20 = vsel %vm618_vm2, %v7641_v38, %v1806_v1  ;;  %1838 = vst.msk [vmem:[#allocation3 + $0x178] sm:$0xff] %vm397_vm0, %v1806_v1  ;;  %v1810_v38 = vsel %vm618_vm2, %v7518_v46, %v7629_v52  ;;  %v1734_v52 = vsel %vm537_vm10, %v7627_v61, %v1726_v44  ;;  %v10326_v46 = vld [vmem:[#allocation10_spill] sm:$0xff]  ;;  %v10330_v44 = vld [vmem:[#allocation11_spill] sm:$0xff]  ;;  %v2050_v1 = vsel %vm861_vm11, %v7484_v2, %v10332_v22 }
 0x3ff   : > { %2484 = vmatpush.msrb.mxu2 %v1814_v20  ;;  %v7863_v61 = vld [vmem:[%s10267_s1 + $0x98] sm:$0xff]  ;;  %v2128_v21 = vsel %vm942_vm15, %v7470_v45, %v10330_v44  ;;  %v2048_v2 = vsel %vm861_vm11, %v7456_v36, %v7778_v56  ;;  %v2287_v36 = vld [vmem:[#allocation3 + $0x118] sm:$0xff]  ;;  %v2269_v44 = vld [vmem:[#allocation3 + $0x88] sm:$0xff] }
 0x400   : > { %v1582_v56 = vld [vmem:[#allocation2 + $0x38] sm:$0xff]  ;;  %v2326_v22 = vld [vmem:[#allocation3 + $0x250] sm:$0xff] }
 0x401   : > { %2485 = vmatpush.msrb.mxu2 %v1812_v37 }
 0x402   : > { %2419 = vmatmul.f32.gmra.mxu0 %v7822_v63 }
 0x403   : > { %v2046_v30 = vpop.permute.xlu1 %2045  ;;  %2486 = vmatpush.msrb.mxu2 %v1810_v38 }
 0x404   : > { %v7839_v16 = vpop.permute.xlu2 %2193  ;;  %2078 = vst.msk [vmem:[#allocation3 + $0x298] sm:$0xff] %vm397_vm0, %v2046_v30  ;;  %2445 = vmatmul.f32.gmra.mxu1 %v7830_v4  ;;  %v2054_v45 = vsel %vm861_vm11, %v7649_v17, %v2046_v30  ;;  %v7906_v17 = vld [vmem:[%s10267_s1 + $0xb0] sm:$0xff]  ;;  %v1585_v30 = vld [vmem:[#allocation2 + $0x50] sm:$0xff] }
 0x405   : > { %v2126_v58 = vpop.permute.xlu0 %2125  ;;  %2232 = vst.msk [vmem:[#allocation3 + $0x328] sm:$0xff] %vm397_vm0, %v7839_v16  ;;  %2487 = vmatpush.msrb.mxu2 %v1808_v34  ;;  %v2299_v7 = vld [vmem:[#allocation3 + $0x178] sm:$0xff]  ;;  %v1974_v34 = vsel %vm780_vm12, %v7748_v3, %v7783_v62  ;;  %v2284_v3 = vld [vmem:[#allocation3 + $0x100] sm:$0xff] }
 0x406   : > { %v2134_v43 = vsel %vm942_vm15, %v10326_v46, %v2126_v58  ;;  %2158 = vst.msk [vmem:[#allocation3 + $0x2f8] sm:$0xff] %vm397_vm0, %v2126_v58  ;;  %v1972_v58 = vsel %vm780_vm12, %v7508_v42, %v7736_v19  ;;  %v1579_v62 = vld [vmem:[#allocation2 + $0x20] sm:$0xff]  ;;  %v2281_v42 = vld [vmem:[#allocation3 + $0xe8] sm:$0xff] }
 0x407   : > { %2488 = vmatpush.msrb.mxu2 %v1734_v52  ;;  %2513 = vmatpush.msrb.mxu0 %v2134_v43  ;;  %v10334_v46 = vld [vmem:[#allocation17_spill] sm:$0xff] }
 0x408   : > { %v1970_v43 = vsel %vm780_vm12, %v7532_v60, %v10334_v46  ;;  %v10335_v19 = vld [vmem:[#allocation13_spill] sm:$0xff]  ;;  %v7953_v60 = vld [vmem:[%s10267_s1 + $0xa0] sm:$0xff] }
 0x409   : > { %2489 = vmatpush.msrb.mxu2 %v1732_v14  ;;  %2514 = vmatpush.msrb.mxu0 %v2132_v51  ;;  %v2210_v14 = vsel %vm1023_vm13, %v7546_v5, %v7839_v16  ;;  %v1968_v51 = vsel %vm780_vm12, %v7468_v47, %v10335_v19  ;;  %v2278_v16 = vld [vmem:[#allocation3 + $0xd0] sm:$0xff]  ;;  %v2275_v47 = vld [vmem:[#allocation3 + $0xb8] sm:$0xff] }
 0x40a   : > { %2422 = vmatmul.f32.gmra.mxu0 %v7853_v23 }
 0x40b   : > { %v2184_v59 = vpop.permute.xlu1 %2183  ;;  %2490 = vmatpush.msrb.mxu2 %v1730_v9  ;;  %2515 = vmatpush.msrb.mxu0 %v2130_v24  ;;  %v2344_v24 = vld [vmem:[#allocation3 + $0x2e0] sm:$0xff] }
 0x40c   : > { %v2207_v26 = vsel %vm1023_vm13, %v2184_v59, %v7751_v0  ;;  %2448 = vmatmul.f32.gmra.mxu1 %v7863_v61  ;;  %v2353_v32 = vld [vmem:[#allocation3 + $0x328] sm:$0xff] }
 0x40d   : > { %v7881_v6 = vpop.permute.xlu0 %1879  ;;  %2491 = vmatpush.msrb.mxu2 %v1728_v27  ;;  %2516 = vmatpush.msrb.mxu0 %v2128_v21  ;;  %v2347_v9 = vld [vmem:[#allocation3 + $0x2f8] sm:$0xff]  ;;  %v1890_v27 = vsel %vm699_vm14, %v7496_v25, %v7810_v13  ;;  %v2338_v21 = vld [vmem:[#allocation3 + $0x2b0] sm:$0xff] }
 0x40e   : > { %1915 = vst.msk [vmem:[#allocation3 + $0x1c0] sm:$0xff] %vm397_vm0, %v7881_v6  ;;  %2470 = vmatpush.msra.mxu3 %v2207_v26  ;;  %v1892_v59 = vsel %vm699_vm14, %v7729_v39, %v7881_v6  ;;  %v2266_v25 = vld [vmem:[#allocation3 + $0x70] sm:$0xff] }
 0x40f   : > { %2492 = vmatpush.msrb.mxu2 %v1654_v48  ;;  %2517 = vmatpush.msrb.mxu0 %v2054_v45  ;;  %v7976_v13 = vld [vmem:[%s10267_s1 + $0xb8] sm:$0xff]  ;;  %v2332_v45 = vld [vmem:[#allocation3 + $0x280] sm:$0xff] }
 0x410   : > { %6228 = vmatmul.msk.f32.vlgmr.msra.gmra.mxu3 %vm397_vm0, %v7886_v41 }
 0x411   : > { %2571 = vmatpush.msrb.mxu3 %v2299_v7  ;;  %2493 = vmatpush.msrb.mxu2 %v1652_v40  ;;  %v2260_v7 = vld [vmem:[#allocation3 + $0x40] sm:$0xff] }
 0x412   : > { %2518 = vmatpush.msrb.mxu0 %v2052_v35  ;;  %v2329_v35 = vld [vmem:[#allocation3 + $0x268] sm:$0xff] }
 0x413   : > { %v2206_v20 = vpop.permute.xlu1 %2205  ;;  %2572 = vmatpush.msrb.mxu3 %v2296_v12  ;;  %2494 = vmatpush.msrb.mxu2 %v1650_v57  ;;  %v2257_v57 = vld [vmem:[#allocation3 + $0x28] sm:$0xff] }
 0x414   : > { %v2214_v37 = vsel %vm1023_vm13, %v7673_v33, %v2206_v20  ;;  %2238 = vst.msk [vmem:[#allocation3 + $0x358] sm:$0xff] %vm397_vm0, %v2206_v20  ;;  %2519 = vmatpush.msrb.mxu0 %v2050_v1  ;;  %2451 = vmatmul.f32.gmra.mxu1 %v7906_v17  ;;  %v2290_v33 = vld [vmem:[#allocation3 + $0x130] sm:$0xff]  ;;  %v2323_v20 = vld [vmem:[#allocation3 + $0x238] sm:$0xff] }
 0x415   : > { %v2200_v38 = vpop.permute.xlu0 %2199  ;;  %2573 = vmatpush.msrb.mxu3 %v2293_v54  ;;  %2495 = vmatpush.msrb.mxu2 %v1648_v10  ;;  %v2254_v1 = vld [vmem:[#allocation3 + $0x10] sm:$0xff]  ;;  %v2317_v10 = vld [vmem:[#allocation3 + $0x208] sm:$0xff] }
 0x416   : > { %2235 = vst.msk [vmem:[#allocation3 + $0x340] sm:$0xff] %vm397_vm0, %v2200_v38  ;;  %2520 = vmatpush.msrb.mxu0 %v2048_v2  ;;  %2554 = vmatpush.msrb.mxu1 %v2214_v37  ;;  %v2212_v52 = vsel %vm1023_vm13, %v7601_v55, %v2200_v38  ;;  %v1576_v55 = vld [vmem:[#allocation2 + $0x8] sm:$0xff]  ;;  %v2314_v37 = vld [vmem:[#allocation3 + $0x1f0] sm:$0xff] }
 0x417   : > { %2574 = vmatpush.msrb.mxu3 %v2290_v33  ;;  %2496 = vmatpush.msrb.mxu2 %v1585_v30  ;;  %v2305_v2 = vld [vmem:[#allocation3 + $0x1a8] sm:$0xff] }
 0x418   : > { %2521 = vmatpush.msrb.mxu0 %v1974_v34  ;;  %6229 = vmatmul.msk.f32.gmra.mxu3 %vm397_vm0, %v7927_v28 }
 0x419   : > { %2575 = vmatpush.msrb.mxu3 %v2287_v36  ;;  %2497 = vmatpush.msrb.mxu2 %v1582_v56  ;;  %v8013_v36 = vpop.permute.xlu2 %2372 }
 0x41a   : > { %2522 = vmatpush.msrb.mxu0 %v1972_v58  ;;  %2555 = vmatpush.msrb.mxu1 %v2212_v52  ;;  %v10336_v58 = vld [vmem:[#allocation5_spill] sm:$0xff] }
 0x41b   : > { %v1868_v53 = vpop.permute.xlu1 %1867  ;;  %2576 = vmatpush.msrb.mxu3 %v2284_v3  ;;  %2498 = vmatpush.msrb.mxu2 %v1579_v62  ;;  %v2359_v6 = vld [vmem:[#allocation3 + $0x358] sm:$0xff] }
 0x41c   : > { %1909 = vst.msk [vmem:[#allocation3 + $0x190] sm:$0xff] %vm397_vm0, %v1868_v53  ;;  %2523 = vmatpush.msrb.mxu0 %v1970_v43  ;;  %2556 = vmatpush.msrb.mxu1 %v2210_v14  ;;  %v1888_v26 = vsel %vm699_vm14, %v7482_v15, %v1868_v53  ;;  %v2335_v15 = vld [vmem:[#allocation3 + $0x298] sm:$0xff] }
 0x41d   : > { %v1886_v18 = vpop.permute.xlu0 %1885  ;;  %2577 = vmatpush.msrb.mxu3 %v2281_v42  ;;  %2499 = vmatpush.msrb.mxu2 %v1576_v55  ;;  %v2356_v40 = vld [vmem:[#allocation3 + $0x340] sm:$0xff] }
 0x41e   : > { %v1894_v5 = vsel %vm699_vm14, %v7657_v29, %v1886_v18  ;;  %1918 = vst.msk [vmem:[#allocation3 + $0x1d8] sm:$0xff] %vm397_vm0, %v1886_v18  ;;  %2524 = vmatpush.msrb.mxu0 %v1968_v51  ;;  %2500 = vmatmul.f32.vlgmr.msrb.gmra.mxu2 %v7768_v8  ;;  %v2272_v29 = vld [vmem:[#allocation3 + $0xa0] sm:$0xff] }
 0x41f   : > { %2578 = vmatpush.msrb.mxu3 %v2278_v16  ;;  %2600 = vmatpush.msra.mxu2 %v2347_v9 }
 0x420   : > { %2525 = vmatpush.msrb.mxu0 %v1894_v5  ;;  %6230 = vmatmul.msk.f32.gmra.mxu3 %vm397_vm0, %v7953_v60 }
 0x421   : > { %2579 = vmatpush.msrb.mxu3 %v2275_v47  ;;  %2601 = vmatpush.msra.mxu2 %v2344_v24 }
 0x422   : > { %2526 = vmatpush.msrb.mxu0 %v1892_v59 }
 0x423   : > { %2580 = vmatpush.msrb.mxu3 %v2272_v29  ;;  %2602 = vmatpush.msra.mxu2 %v2341_v11  ;;  %v2302_v38 = vld [vmem:[#allocation3 + $0x190] sm:$0xff] }
 0x424   : > { %2527 = vmatpush.msrb.mxu0 %v1890_v27 }
 0x425   : > { %v2188_v48 = vpop.permute.xlu0 %2187  ;;  %2581 = vmatpush.msrb.mxu3 %v2269_v44  ;;  %2603 = vmatpush.msra.mxu2 %v2338_v21  ;;  %v2311_v54 = vld [vmem:[#allocation3 + $0x1d8] sm:$0xff] }
 0x426   : > { %v2208_v39 = vsel %vm1023_vm13, %v7751_v0, %v2188_v48  ;;  %2229 = vst.msk [vmem:[#allocation3 + $0x310] sm:$0xff] %vm397_vm0, %v2188_v48  ;;  %2528 = vmatpush.msrb.mxu0 %v1888_v26  ;;  %2503 = vmatmul.f32.gmra.mxu2 %v7796_v31  ;;  %v2263_v0 = vld [vmem:[#allocation3 + $0x58] sm:$0xff] }
 0x427   : > { %2529 = vmatmul.f32.vlgmr.msrb.gmra.mxu0 %v7804_v50  ;;  %2582 = vmatpush.msrb.mxu3 %v2266_v25  ;;  %v10337_v25 = vld [vmem:[#allocation6_spill] sm:$0xff] }
 0x428   : > { %2604 = vmatpush.msra.mxu2 %v2335_v15  ;;  %2641 = vmatpush.msra.mxu0 %v2359_v6 }
 0x429   : > { %2557 = vmatpush.msrb.mxu1 %v2208_v39  ;;  %6231 = vmatmul.msk.f32.gmra.mxu3 %vm397_vm0, %v7976_v13 }
 0x42a   : > { %6232 = vmatmul.msk.f32.vlgmr.msrb.gmra.mxu1 %vm397_vm0, %v7886_v41  ;;  %2583 = vmatpush.msrb.mxu3 %v2263_v0 }
 0x42b   : > { %2605 = vmatpush.msra.mxu2 %v2332_v45  ;;  %2642 = vmatpush.msra.mxu0 %v2356_v40 }
 0x42c   : > { %2584 = vmatpush.msrb.mxu3 %v2260_v7 }
 0x42d   : > { %2606 = vmatpush.msra.mxu2 %v2329_v35  ;;  %2643 = vmatpush.msra.mxu0 %v2353_v32  ;;  %v2350_v12 = vld [vmem:[#allocation3 + $0x310] sm:$0xff]  ;;  %v8018_v53 = vpop.permute.xlu0 %2377 }
 0x42e   : > { %2585 = vmatpush.msrb.mxu3 %v2257_v57  ;;  %2506 = vmatmul.f32.gmra.mxu2 %v7822_v63 }
 0x42f   : > { %2607 = vmatpush.msra.mxu2 %v2326_v22  ;;  %2644 = vmatpush.msra.mxu0 %v2350_v12 }
 0x430   : > { %2532 = vmatmul.f32.gmra.mxu0 %v7830_v4  ;;  %2586 = vmatpush.msrb.mxu3 %v2254_v1 }
 0x431   : > { %2608 = vmatpush.msra.mxu2 %v2323_v20  ;;  %2587 = vmatmul.f32.vlgmr.msrb.gmra.mxu3 %v7768_v8  ;;  %v2308_v8 = vld [vmem:[#allocation3 + $0x1c0] sm:$0xff] }
 0x432   : > { %6233 = vmatmul.msk.f32.gmra.mxu1 %vm397_vm0, %v7927_v28 }
 0x433   : > { %2609 = vmatpush.msra.mxu2 %v2320_v49 }
 0x435   : > { %2610 = vmatpush.msra.mxu2 %v2317_v10 }
 0x436   : > { %2509 = vmatmul.f32.gmra.mxu2 %v7853_v23 }
 0x437   : > { %2611 = vmatpush.msra.mxu2 %v2314_v37 }
 0x438   : > { %2535 = vmatmul.f32.gmra.mxu0 %v7863_v61 }
 0x439   : > { %2612 = vmatpush.msra.mxu2 %v2311_v54  ;;  %2590 = vmatmul.f32.gmra.mxu3 %v7796_v31 }
 0x43a   : > { %6234 = vmatmul.msk.f32.gmra.mxu1 %vm397_vm0, %v7953_v60 }
 0x43b   : > { %2613 = vmatpush.msra.mxu2 %v2308_v8 }
 0x43d   : > { %2614 = vmatpush.msra.mxu2 %v2305_v2 }
 0x43f   : > { %2615 = vmatpush.msra.mxu2 %v2302_v38 }
 0x440   : > { %2538 = vmatmul.f32.gmra.mxu0 %v7906_v17  ;;  %2616 = vmatmul.f32.vlgmr.msra.gmra.mxu2 %v7804_v50 }
 0x441   : > { %2593 = vmatmul.f32.gmra.mxu3 %v7822_v63 }
 0x442   : > { %6235 = vmatmul.msk.f32.gmra.mxu1 %vm397_vm0, %v7976_v13 }
 0x448   : > { %2619 = vmatmul.f32.gmra.mxu2 %v7830_v4  ;;  %6236 = vmatmul.msk.f32.vlgmr.msra.gmra.mxu0 %vm397_vm0, %v7886_v41  ;;  %v8010_v41 = vpop.permute.xlu1 %2367 }
 0x449   : > { %2596 = vmatmul.f32.gmra.mxu3 %v7853_v23 }
 0x450   : > { %2622 = vmatmul.f32.gmra.mxu2 %v7863_v61  ;;  %6237 = vmatmul.msk.f32.gmra.mxu0 %vm397_vm0, %v7927_v28  ;;  %v8024_v29 = vpop.permute.xlu1 %2382 }
 0x458   : > { %2625 = vmatmul.f32.gmra.mxu2 %v7906_v17  ;;  %6238 = vmatmul.msk.f32.gmra.mxu0 %vm397_vm0, %v7953_v60 }
 0x460   : > { %6239 = vmatmul.msk.f32.gmra.mxu0 %vm397_vm0, %v7976_v13 }
 0x46f   : > { %v2414_v31 = vpop.f32.mrf.mxu0 }
 0x470   : > { %v2415_v23 = vadd.f32 %v2414_v31, %v8010_v41 }
 0x477   : > { %v2417_v63 = vpop.f32.mrf.mxu0 }
 0x478   : > { %v2418_v56 = vadd.f32 %v2417_v63, %v8013_v36 }
 0x479   : > { %v2443_v50 = vpop.f32.mrf.mxu1 }
 0x47a   : > { %v2444_v61 = vadd.f32 %v2443_v50, %v2415_v23 }
 0x47f   : > { %v2420_v33 = vpop.f32.mrf.mxu0 }
 0x480   : > { %v2421_v55 = vadd.f32 %v2420_v33, %v8018_v53 }
 0x481   : > { %v2446_v4 = vpop.f32.mrf.mxu1 }
 0x482   : > { %v2447_v3 = vadd.f32 %v2446_v4, %v2418_v56 }
 0x487   : > { %v2423_v46 = vpop.f32.mrf.mxu0 }
 0x488   : > { %v2424_v44 = vadd.f32 %v2423_v46, %v8024_v29  ;;  %v10338_v46 = vld [vmem:[#allocation7_spill] sm:$0xff] }
 0x489   : > { %v2449_v34 = vpop.f32.mrf.mxu1 }
 0x48a   : > { %v2450_v18 = vadd.f32 %v2449_v34, %v2421_v55 }
 0x491   : > { %v2452_v42 = vpop.f32.mrf.mxu1 }
 0x492   : > { %v2453_v39 = vadd.f32 %v2452_v42, %v2424_v44 }
 0x493   : > { %v2472_v30 = vpop.f32.mrf.mxu3 }
 0x494   : > { %v2473_v28 = vadd.f32 %v2472_v30, %v2444_v61 }
 0x496   : > { %v2658_v17 = vmax.f32 %v2473_v28, 0.0 }
 0x498   : > { %v2670_v52 = vmul.f32 %v2658_v17, %v10336_v58 }
 0x49a   : > { %2694 = vrot.lane.b32.xlu2 %v2670_v52, %s6525_s29 }
 0x49b   : > { %v2475_v62 = vpop.f32.mrf.mxu3 }
 0x49c   : > { %v2476_v43 = vadd.f32 %v2475_v62, %v2447_v3 }
 0x49e   : > { %v2661_v14 = vmax.f32 %v2476_v43, 0.0 }
 0x4a0   : > { %v2673_v19 = vmul.f32 %v2661_v14, %v10336_v58 }
 0x4a1   : > { %v2501_v51 = vpop.f32.mrf.mxu2 }
 0x4a2   : > { %v2502_v60 = vadd.f32 %v2501_v51, %v8010_v41  ;;  %2700 = vrot.lane.b32.xlu2 %v2673_v19, %s6525_s29 }
 0x4a3   : > { %v2478_v5 = vpop.f32.mrf.mxu3 }
 0x4a4   : > { %v2479_v16 = vadd.f32 %v2478_v5, %v2450_v18  ;;  %v2530_v9 = vpop.f32.mrf.mxu0 }
 0x4a5   : > { %v2531_v47 = vadd.f32 %v2530_v9, %v2502_v60 }
 0x4a6   : > { %v2664_v24 = vmax.f32 %v2479_v16, 0.0 }
 0x4a7   : > { %v2559_v59 = vpop.f32.mrf.mxu1 }
 0x4a8   : > { %v2676_v11 = vmul.f32 %v2664_v24, %v10336_v58  ;;  %v2560_v27 = vadd.f32 %v2559_v59, %v2531_v47 }
 0x4a9   : > { %v2504_v21 = vpop.f32.mrf.mxu2 }
 0x4aa   : > { %v2659_v26 = vmax.f32 %v2560_v27, 0.0  ;;  %v2505_v48 = vadd.f32 %v2504_v21, %v8013_v36  ;;  %2706 = vrot.lane.b32.xlu2 %v2676_v11, %s6525_s29 }
 0x4ac   : > { %v2671_v13 = vmul.f32 %v2659_v26, %v10337_v25  ;;  %v2481_v15 = vpop.f32.mrf.mxu3 }
 0x4ad   : > { %v2482_v6 = vadd.f32 %v2481_v15, %v2453_v39  ;;  %v2533_v0 = vpop.f32.mrf.mxu0 }
 0x4ae   : > { %v2534_v45 = vadd.f32 %v2533_v0, %v2505_v48  ;;  %2696 = vrot.lane.b32.xlu0 %v2671_v13, %s6525_s29 }
 0x4af   : > { %v2667_v40 = vmax.f32 %v2482_v6, 0.0  ;;  %v2562_v7 = vpop.f32.mrf.mxu1 }
 0x4b0   : > { %v2563_v35 = vadd.f32 %v2562_v7, %v2534_v45 }
 0x4b1   : > { %v2679_v32 = vmul.f32 %v2667_v40, %v10336_v58  ;;  %v2507_v57 = vpop.f32.mrf.mxu2  ;;  %v6254_v58 = vld [vmem:[%s10268_s2 + $0x50] sm:$0xff] }
 0x4b2   : > { %v2662_v12 = vmax.f32 %v2563_v35, 0.0  ;;  %v2508_v22 = vadd.f32 %v2507_v57, %v8018_v53 }
 0x4b3   : > { %2712 = vrot.lane.b32.xlu2 %v2679_v32, %s6525_s29 }
 0x4b4   : > { %v2674_v1 = vmul.f32 %v2662_v12, %v10337_v25  ;;  %v2588_v54 = vpop.f32.mrf.mxu3 }
 0x4b5   : > { %v2536_v20 = vpop.f32.mrf.mxu0  ;;  %v2589_v61 = vadd.f32 %v2588_v54, %v8010_v41 }
 0x4b6   : > { %v2537_v49 = vadd.f32 %v2536_v20, %v2508_v22  ;;  %2702 = vrot.lane.b32.xlu0 %v2674_v1, %s6525_s29 }
 0x4b7   : > { %v2565_v10 = vpop.f32.mrf.mxu1 }
 0x4b8   : > { %v2566_v37 = vadd.f32 %v2565_v10, %v2537_v49 }
 0x4b9   : > { %v2510_v8 = vpop.f32.mrf.mxu2 }
 0x4ba   : > { %v2665_v2 = vmax.f32 %v2566_v37, 0.0  ;;  %v2511_v38 = vadd.f32 %v2510_v8, %v8024_v29 }
 0x4bc   : > { %v2677_v31 = vmul.f32 %v2665_v2, %v10337_v25  ;;  %v2591_v30 = vpop.f32.mrf.mxu3 }
 0x4bd   : > { %v2539_v50 = vpop.f32.mrf.mxu0  ;;  %v2592_v62 = vadd.f32 %v2591_v30, %v8013_v36 }
 0x4be   : > { %v2540_v63 = vadd.f32 %v2539_v50, %v2511_v38  ;;  %2708 = vrot.lane.b32.xlu0 %v2677_v31, %s6525_s29 }
 0x4bf   : > { %v2568_v4 = vpop.f32.mrf.mxu1 }
 0x4c0   : > { %v2569_v23 = vadd.f32 %v2568_v4, %v2540_v63 }
 0x4c2   : > { %v2668_v33 = vmax.f32 %v2569_v23, 0.0 }
 0x4c3   : > { %v2617_v28 = vpop.f32.mrf.mxu2 }
 0x4c4   : > { %v2680_v34 = vmul.f32 %v2668_v33, %v10337_v25  ;;  %v2618_v17 = vadd.f32 %v2617_v28, %v2589_v61  ;;  %v2594_v41 = vpop.f32.mrf.mxu3 }
 0x4c5   : > { %v2646_v56 = vpop.f32.mrf.mxu0  ;;  %v2595_v18 = vadd.f32 %v2594_v41, %v8018_v53 }
 0x4c6   : > { %v2647_v52 = vadd.f32 %v2646_v56, %v2618_v17  ;;  %2714 = vrot.lane.b32.xlu0 %v2680_v34, %s6525_s29 }
 0x4c8   : > { %v2660_v3 = vmax.f32 %v2647_v52, 0.0 }
 0x4ca   : > { %v2672_v43 = vmul.f32 %v2660_v3, %v10338_v46 }
 0x4cb   : > { %v2620_v14 = vpop.f32.mrf.mxu2 }
 0x4cc   : > { %v2621_v42 = vadd.f32 %v2620_v14, %v2592_v62  ;;  %2698 = vrot.lane.b32.xlu1 %v2672_v43, %s6525_s29  ;;  %v2597_v47 = vpop.f32.mrf.mxu3 }
 0x4cd   : > { %v2649_v55 = vpop.f32.mrf.mxu0  ;;  %v2598_v59 = vadd.f32 %v2597_v47, %v8024_v29 }
 0x4ce   : > { %v2650_v19 = vadd.f32 %v2649_v55, %v2621_v42 }
 0x4d0   : > { %v2663_v51 = vmax.f32 %v2650_v19, 0.0 }
 0x4d2   : > { %v2675_v60 = vmul.f32 %v2663_v51, %v10338_v46 }
 0x4d3   : > { %v2623_v5 = vpop.f32.mrf.mxu2 }
 0x4d4   : > { %v2624_v16 = vadd.f32 %v2623_v5, %v2595_v18  ;;  %2704 = vrot.lane.b32.xlu1 %v2675_v60, %s6525_s29 }
 0x4d5   : > { %v2652_v9 = vpop.f32.mrf.mxu0 }
 0x4d6   : > { %v2653_v36 = vadd.f32 %v2652_v9, %v2624_v16 }
 0x4d8   : > { %v2666_v24 = vmax.f32 %v2653_v36, 0.0 }
 0x4da   : > { %v2678_v11 = vmul.f32 %v2666_v24, %v10338_v46 }
 0x4db   : > { %v2626_v27 = vpop.f32.mrf.mxu2 }
 0x4dc   : > { %v2627_v44 = vadd.f32 %v2626_v27, %v2598_v59  ;;  %2710 = vrot.lane.b32.xlu1 %v2678_v11, %s6525_s29 }
 0x4dd   : > { %v2655_v21 = vpop.f32.mrf.mxu0 }
 0x4de   : > { %v2656_v53 = vadd.f32 %v2655_v21, %v2627_v44 }
 0x4e0   : > { %v2669_v26 = vmax.f32 %v2656_v53, 0.0 }
 0x4e2   : > { %v2681_v48 = vmul.f32 %v2669_v26, %v10338_v46 }
 0x4e4   : > { %2716 = vrot.lane.b32.xlu1 %v2681_v48, %s6525_s29 }
 0x4f4   : > { %v2695_v39 = vpop.permute.xlu2 %2694 }
 0x4f5   : > { %2738 = vst.msk [vmem:[#allocation2] sm:$0xff] %vm1561_vm4, %v2695_v39 }
 0x4fc   : > { %v2701_v13 = vpop.permute.xlu2 %2700  ;;  %v8055_v15 = vld [vmem:[#allocation2] sm:$0xff] }
 0x4fd   : > { %10339 = vst [vmem:[#allocation10_spill] sm:$0xff] %v8055_v15  ;;  %3198 = vrot.lane.b32.xlu1 %v8055_v15, %s6541_s21  ;;  %3118 = vrot.lane.b32.xlu0 %v8055_v15, %s6547_s7 }
 0x4fe   : > { %2741 = vst.msk [vmem:[#allocation2 + $0x18] sm:$0xff] %vm1561_vm4, %v2701_v13  ;;  %2798 = vrot.lane.b32.xlu2 %v8055_v15, %s6524_s4 }
 0x504   : > { %v2707_v29 = vpop.permute.xlu2 %2706 }
 0x505   : > { %v8064_v6 = vld [vmem:[#allocation2 + $0x18] sm:$0xff]  ;;  %2744 = vst.msk [vmem:[#allocation2 + $0x30] sm:$0xff] %vm1561_vm4, %v2707_v29 }
 0x506   : > { %10340 = vst [vmem:[#allocation12_spill] sm:$0xff] %v8064_v6  ;;  %3284 = vrot.lane.b32.xlu1 %v8064_v6, %s6538_s18  ;;  %3044 = vrot.lane.b32.xlu0 %v8064_v6, %s6533_s13 }
 0x507   : > { %2878 = vrot.lane.b32.xlu2 %v8055_v15, %s6526_s30 }
 0x50c   : > { %v8073_v0 = vld [vmem:[#allocation2 + $0x30] sm:$0xff] }
 0x50d   : > { %v2713_v45 = vpop.permute.xlu2 %2712 }
 0x50e   : > { %2964 = vrot.lane.b32.xlu1 %v8064_v6, %s6528_s8  ;;  %3290 = vrot.lane.b32.xlu0 %v8073_v0, %s6538_s18  ;;  %2747 = vst.msk [vmem:[#allocation2 + $0x48] sm:$0xff] %vm1561_vm4, %v2713_v45 }
 0x50f   : > { %3278 = vrot.lane.b32.xlu2 %v8055_v15, %s6538_s18 }
 0x515   : > { %v8088_v40 = vld [vmem:[#allocation2 + $0x48] sm:$0xff] }
 0x516   : > { %3124 = vrot.lane.b32.xlu1 %v8064_v6, %s6547_s7  ;;  %2970 = vrot.lane.b32.xlu0 %v8073_v0, %s6528_s8 }
 0x517   : > { %2958 = vrot.lane.b32.xlu2 %v8055_v15, %s6528_s8 }
 0x51e   : > { %3364 = vrot.lane.b32.xlu1 %v8064_v6, %s6536_s16  ;;  %3216 = vrot.lane.b32.xlu0 %v8088_v40, %s6541_s21 }
 0x51f   : > { %3038 = vrot.lane.b32.xlu2 %v8055_v15, %s6533_s13 }
 0x520   : > { %v2697_v7 = vpop.permute.xlu0 %2696 }
 0x521   : > { %v8097_v35 = vsel %vm1540_vm3, %v2695_v39, %v2697_v7 }
 0x522   : > { %2739 = vst [vmem:[#allocation2 + $0x8] sm:$0xff] %v8097_v35 }
 0x526   : > { %3210 = vrot.lane.b32.xlu1 %v8073_v0, %s6541_s21  ;;  %2896 = vrot.lane.b32.xlu0 %v8088_v40, %s6526_s30 }
 0x527   : > { %2804 = vrot.lane.b32.xlu2 %v8064_v6, %s6524_s4 }
 0x528   : > { %v2703_v32 = vpop.permute.xlu0 %2702 }
 0x529   : > { %v8107_v57 = vsel %vm1540_vm3, %v2701_v13, %v2703_v32 }
 0x52a   : > { %2742 = vst [vmem:[#allocation2 + $0x20] sm:$0xff] %v8107_v57 }
 0x52e   : > { %3050 = vrot.lane.b32.xlu1 %v8073_v0, %s6533_s13  ;;  %3136 = vrot.lane.b32.xlu0 %v8088_v40, %s6547_s7 }
 0x52f   : > { %2884 = vrot.lane.b32.xlu2 %v8064_v6, %s6526_s30 }
 0x530   : > { %v2709_v12 = vpop.permute.xlu0 %2708 }
 0x531   : > { %v8117_v22 = vsel %vm1540_vm3, %v2707_v29, %v2709_v12 }
 0x532   : > { %2745 = vst [vmem:[#allocation2 + $0x38] sm:$0xff] %v8117_v22 }
 0x536   : > { %3370 = vrot.lane.b32.xlu1 %v8073_v0, %s6536_s16  ;;  %2800 = vrot.lane.b32.xlu0 %v8097_v35, %s6524_s4 }
 0x537   : > { %3204 = vrot.lane.b32.xlu2 %v8064_v6, %s6541_s21 }
 0x538   : > { %v2715_v1 = vpop.permute.xlu0 %2714 }
 0x539   : > { %v8127_v20 = vsel %vm1540_vm3, %v2713_v45, %v2715_v1 }
 0x53a   : > { %2748 = vst [vmem:[#allocation2 + $0x50] sm:$0xff] %v8127_v20 }
 0x53e   : > { %3296 = vrot.lane.b32.xlu1 %v8088_v40, %s6538_s18  ;;  %2880 = vrot.lane.b32.xlu0 %v8097_v35, %s6526_s30  ;;  %v2699_v49 = vpop.permute.xlu1 %2698 }
 0x53f   : > { %2810 = vrot.lane.b32.xlu2 %v8073_v0, %s6524_s4  ;;  %v2719_v10 = vsel %vm1540_vm3, %v2697_v7, %v2699_v49 }
 0x540   : > { %2740 = vst.msk [vmem:[#allocation2 + $0x10] sm:$0xff] %vm1564_vm5, %v2719_v10 }
 0x546   : > { %3376 = vrot.lane.b32.xlu1 %v8088_v40, %s6536_s16  ;;  %3280 = vrot.lane.b32.xlu0 %v8097_v35, %s6538_s18  ;;  %v2705_v37 = vpop.permute.xlu1 %2704 }
 0x547   : > { %2890 = vrot.lane.b32.xlu2 %v8073_v0, %s6526_s30  ;;  %v2721_v54 = vsel %vm1540_vm3, %v2703_v32, %v2705_v37  ;;  %v2752_v8 = vld [vmem:[#allocation2 + $0x10] sm:$0xff] }
 0x548   : > { %2743 = vst.msk [vmem:[#allocation2 + $0x28] sm:$0xff] %vm1564_vm5, %v2721_v54  ;;  %v8226_v42 = vld [vmem:[#allocation2 + $0x10] sm:$0xff] }
 0x549   : > { %2764 = vst.msk [vmem:[#allocation3 + $0x10] sm:$0xff] %vm397_vm0, %v2752_v8 }
 0x54e   : > { %3120 = vrot.lane.b32.xlu1 %v8097_v35, %s6547_s7  ;;  %2960 = vrot.lane.b32.xlu0 %v8097_v35, %s6528_s8  ;;  %v2711_v2 = vpop.permute.xlu1 %2710 }
 0x54f   : > { %3130 = vrot.lane.b32.xlu2 %v8073_v0, %s6547_s7  ;;  %v2723_v38 = vsel %vm1540_vm3, %v2709_v12, %v2711_v2  ;;  %v2755_v31 = vld [vmem:[#allocation2 + $0x28] sm:$0xff] }
 0x550   : > { %2746 = vst.msk [vmem:[#allocation2 + $0x40] sm:$0xff] %vm1564_vm5, %v2723_v38  ;;  %v8252_v5 = vld [vmem:[#allocation2 + $0x28] sm:$0xff] }
 0x551   : > { %2767 = vst.msk [vmem:[#allocation3 + $0x28] sm:$0xff] %vm397_vm0, %v2755_v31 }
 0x556   : > { %3046 = vrot.lane.b32.xlu1 %v8107_v57, %s6533_s13  ;;  %3040 = vrot.lane.b32.xlu0 %v8097_v35, %s6533_s13  ;;  %v2717_v50 = vpop.permute.xlu1 %2716 }
 0x557   : > { %2816 = vrot.lane.b32.xlu2 %v8088_v40, %s6524_s4  ;;  %v2725_v63 = vsel %vm1540_vm3, %v2715_v1, %v2717_v50  ;;  %v8163_v4 = vld [vmem:[#allocation2 + $0x40] sm:$0xff] }
 0x558   : > { %2749 = vst.msk [vmem:[#allocation2 + $0x58] sm:$0xff] %vm1564_vm5, %v2725_v63  ;;  %v8166_v23 = vpop.permute.xlu2 %2798 }
 0x559   : > { %2770 = vst.msk [vmem:[#allocation3 + $0x40] sm:$0xff] %vm397_vm0, %v8163_v4 }
 0x55e   : > { %3292 = vrot.lane.b32.xlu1 %v8117_v22, %s6538_s18  ;;  %2806 = vrot.lane.b32.xlu0 %v8107_v57, %s6524_s4 }
 0x55f   : > { %2976 = vrot.lane.b32.xlu2 %v8088_v40, %s6528_s8  ;;  %v8176_v61 = vld [vmem:[#allocation2 + $0x58] sm:$0xff] }
 0x560   : > { %2773 = vst.msk [vmem:[#allocation3 + $0x58] sm:$0xff] %vm397_vm0, %v8176_v61 }
 0x561   : > { %v8178_v33 = vpop.permute.xlu2 %2878 }
 0x566   : > { %2972 = vrot.lane.b32.xlu1 %v8117_v22, %s6528_s8  ;;  %2886 = vrot.lane.b32.xlu0 %v8107_v57, %s6526_s30 }
 0x567   : > { %3056 = vrot.lane.b32.xlu2 %v8088_v40, %s6533_s13 }
 0x569   : > { %v8188_v30 = vpop.permute.xlu2 %3278 }
 0x56e   : > { %3206 = vrot.lane.b32.xlu0 %v8107_v57, %s6541_s21  ;;  %3218 = vrot.lane.b32.xlu1 %v8127_v20, %s6541_s21 }
 0x56f   : > { %3200 = vrot.lane.b32.xlu2 %v8097_v35, %s6541_s21  ;;  %v8196_v28 = vpop.permute.xlu0 %3118  ;;  %v8198_v34 = vpop.permute.xlu1 %3198 }
 0x571   : > { %v8200_v17 = vpop.permute.xlu2 %2958 }
 0x576   : > { %2812 = vrot.lane.b32.xlu0 %v8117_v22, %s6524_s4  ;;  %2898 = vrot.lane.b32.xlu1 %v8127_v20, %s6526_s30 }
 0x577   : > { %3286 = vrot.lane.b32.xlu2 %v8107_v57, %s6538_s18 }
 0x578   : > { %v8208_v56 = vpop.permute.xlu0 %3044  ;;  %v8210_v52 = vpop.permute.xlu1 %3284 }
 0x579   : > { %10341 = vst [vmem:[#allocation15_spill] sm:$0xff] %v8208_v56  ;;  %v8212_v3 = vpop.permute.xlu2 %3038 }
 0x57a   : > { %10342 = vst [vmem:[#allocation9_spill] sm:$0xff] %v8212_v3 }
 0x57e   : > { %2892 = vrot.lane.b32.xlu0 %v8117_v22, %s6526_s30  ;;  %3138 = vrot.lane.b32.xlu1 %v8127_v20, %s6547_s7 }
 0x57f   : > { %2966 = vrot.lane.b32.xlu2 %v8107_v57, %s6528_s8 }
 0x580   : > { %v8220_v62 = vpop.permute.xlu0 %3290  ;;  %v8222_v43 = vpop.permute.xlu1 %2964 }
 0x581   : > { %v8224_v14 = vpop.permute.xlu2 %2804 }
 0x586   : > { %3132 = vrot.lane.b32.xlu0 %v8117_v22, %s6547_s7  ;;  %2802 = vrot.lane.b32.xlu1 %v8226_v42, %s6524_s4 }
 0x587   : > { %3126 = vrot.lane.b32.xlu2 %v8107_v57, %s6547_s7 }
 0x588   : > { %v8234_v41 = vpop.permute.xlu0 %2970  ;;  %v8236_v55 = vpop.permute.xlu1 %3124 }
 0x589   : > { %v8238_v19 = vpop.permute.xlu2 %2884 }
 0x58e   : > { %2818 = vrot.lane.b32.xlu0 %v8127_v20, %s6524_s4  ;;  %2882 = vrot.lane.b32.xlu1 %v8226_v42, %s6526_s30 }
 0x58f   : > { %3366 = vrot.lane.b32.xlu2 %v8107_v57, %s6536_s16 }
 0x590   : > { %v8246_v51 = vpop.permute.xlu0 %3216  ;;  %v8248_v18 = vpop.permute.xlu1 %3364 }
 0x591   : > { %v8250_v60 = vpop.permute.xlu2 %3204 }
 0x596   : > { %2978 = vrot.lane.b32.xlu0 %v8127_v20, %s6528_s8  ;;  %2808 = vrot.lane.b32.xlu1 %v8252_v5, %s6524_s4 }
 0x597   : > { %3212 = vrot.lane.b32.xlu2 %v8117_v22, %s6541_s21 }
 0x598   : > { %v8260_v16 = vpop.permute.xlu0 %2896  ;;  %v8262_v9 = vpop.permute.xlu1 %3210 }
 0x599   : > { %v8264_v36 = vpop.permute.xlu2 %2810 }
 0x59e   : > { %3058 = vrot.lane.b32.xlu0 %v8127_v20, %s6533_s13  ;;  %2888 = vrot.lane.b32.xlu1 %v8252_v5, %s6526_s30 }
 0x59f   : > { %3052 = vrot.lane.b32.xlu2 %v8117_v22, %s6533_s13 }
 0x5a0   : > { %v8272_v47 = vpop.permute.xlu0 %3136  ;;  %v8274_v24 = vpop.permute.xlu1 %3050 }
 0x5a1   : > { %v8276_v59 = vpop.permute.xlu2 %2890 }
 0x5a6   : > { %2962 = vrot.lane.b32.xlu0 %v8226_v42, %s6528_s8  ;;  %2968 = vrot.lane.b32.xlu1 %v8252_v5, %s6528_s8 }
 0x5a7   : > { %3372 = vrot.lane.b32.xlu2 %v8117_v22, %s6536_s16 }
 0x5a8   : > { %v8284_v11 = vpop.permute.xlu0 %2800  ;;  %v8286_v27 = vpop.permute.xlu1 %3370 }
 0x5a9   : > { %v8288_v44 = vpop.permute.xlu2 %3130 }
 0x5ae   : > { %3282 = vrot.lane.b32.xlu0 %v8226_v42, %s6538_s18  ;;  %3288 = vrot.lane.b32.xlu1 %v8252_v5, %s6538_s18 }
 0x5af   : > { %3298 = vrot.lane.b32.xlu2 %v8127_v20, %s6538_s18 }
 0x5b0   : > { %v8296_v21 = vpop.permute.xlu0 %2880  ;;  %v8298_v53 = vpop.permute.xlu1 %3296 }
 0x5b1   : > { %v8300_v26 = vpop.permute.xlu2 %2816 }
 0x5b6   : > { %3128 = vrot.lane.b32.xlu0 %v8252_v5, %s6547_s7  ;;  %3208 = vrot.lane.b32.xlu1 %v8252_v5, %s6541_s21 }
 0x5b7   : > { %3378 = vrot.lane.b32.xlu2 %v8127_v20, %s6536_s16 }
 0x5b8   : > { %v8308_v48 = vpop.permute.xlu0 %3280  ;;  %v8310_v39 = vpop.permute.xlu1 %3376 }
 0x5b9   : > { %v8312_v13 = vpop.permute.xlu2 %2976 }
 0x5be   : > { %3214 = vrot.lane.b32.xlu0 %v8163_v4, %s6541_s21  ;;  %2814 = vrot.lane.b32.xlu1 %v8163_v4, %s6524_s4 }
 0x5bf   : > { %3202 = vrot.lane.b32.xlu2 %v8226_v42, %s6541_s21 }
 0x5c0   : > { %v8320_v29 = vpop.permute.xlu0 %2960  ;;  %v8322_v45 = vpop.permute.xlu1 %3120 }
 0x5c1   : > { %v8324_v7 = vpop.permute.xlu2 %3056 }
 0x5c6   : > { %3134 = vrot.lane.b32.xlu0 %v8163_v4, %s6547_s7  ;;  %2894 = vrot.lane.b32.xlu1 %v8163_v4, %s6526_s30 }
 0x5c7   : > { %2974 = vrot.lane.b32.xlu2 %v8163_v4, %s6528_s8 }
 0x5c8   : > { %v8332_v32 = vpop.permute.xlu0 %3040  ;;  %v8334_v57 = vpop.permute.xlu1 %3046 }
 0x5c9   : > { %10343 = vst [vmem:[#allocation11_spill] sm:$0xff] %v8332_v32  ;;  %v8336_v12 = vpop.permute.xlu2 %3200  ;;  %v6252_v32 = vld [vmem:[%s10268_s2 + $0x40] sm:$0xff] }
 0x5ce   : > { %3300 = vrot.lane.b32.xlu0 %v8176_v61, %s6538_s18  ;;  %2820 = vrot.lane.b32.xlu1 %v8176_v61, %s6524_s4 }
 0x5cf   : > { %3294 = vrot.lane.b32.xlu2 %v8163_v4, %s6538_s18 }
 0x5d0   : > { %v8344_v22 = vpop.permute.xlu0 %2806  ;;  %v8346_v1 = vpop.permute.xlu1 %3292 }
 0x5d1   : > { %v8348_v20 = vpop.permute.xlu2 %3286 }
 0x5d6   : > { %3360 = vrot.lane.b32.xlu0 %v8097_v35, %s6536_s16  ;;  %2980 = vrot.lane.b32.xlu1 %v8176_v61, %s6528_s8 }
 0x5d7   : > { %2900 = vrot.lane.b32.xlu2 %v8176_v61, %s6526_s30 }
 0x5d8   : > { %v8356_v49 = vpop.permute.xlu0 %2886  ;;  %v8358_v10 = vpop.permute.xlu1 %2972 }
 0x5d9   : > { %v8360_v37 = vpop.permute.xlu2 %2966 }
 0x5de   : > { %3368 = vrot.lane.b32.xlu0 %v8252_v5, %s6536_s16  ;;  %3122 = vrot.lane.b32.xlu1 %v8226_v42, %s6547_s7 }
 0x5df   : > { %3220 = vrot.lane.b32.xlu2 %v8176_v61, %s6541_s21 }
 0x5e0   : > { %v8368_v35 = vpop.permute.xlu0 %3206  ;;  %v8370_v54 = vpop.permute.xlu1 %3218 }
 0x5e1   : > { %v8372_v8 = vpop.permute.xlu2 %3126 }
 0x5e6   : > { %3140 = vrot.lane.b32.xlu0 %v8176_v61, %s6547_s7  ;;  %3374 = vrot.lane.b32.xlu1 %v8163_v4, %s6536_s16 }
 0x5e7   : > { %3358 = vrot.lane.b32.xlu2 %v8055_v15, %s6536_s16 }
 0x5e8   : > { %v8380_v2 = vpop.permute.xlu0 %2812  ;;  %v8382_v38 = vpop.permute.xlu1 %2898 }
 0x5e9   : > { %v8384_v31 = vpop.permute.xlu2 %3366 }
 0x5ee   : > { %3380 = vrot.lane.b32.xlu0 %v8176_v61, %s6536_s16  ;;  %3054 = vrot.lane.b32.xlu1 %v8163_v4, %s6533_s13 }
 0x5ef   : > { %3060 = vrot.lane.b32.xlu2 %v8176_v61, %s6533_s13 }
 0x5f0   : > { %v8392_v50 = vpop.permute.xlu0 %2892  ;;  %v8394_v63 = vpop.permute.xlu1 %3138 }
 0x5f1   : > { %v8396_v46 = vpop.permute.xlu2 %3212 }
 0x5f6   : > { %3048 = vrot.lane.b32.xlu0 %v8252_v5, %s6533_s13  ;;  %3042 = vrot.lane.b32.xlu1 %v8226_v42, %s6533_s13  ;;  %v6253_v5 = vld [vmem:[%s10268_s2 + $0x48] sm:$0xff] }
 0x5f7   : > { %3362 = vrot.lane.b32.xlu2 %v8226_v42, %s6536_s16  ;;  %v6255_v42 = vld [vmem:[%s10268_s2 + $0x58] sm:$0xff] }
 0x5f8   : > { %v8404_v25 = vpop.permute.xlu0 %3132  ;;  %v8406_v4 = vpop.permute.xlu1 %2802 }
 0x5f9   : > { %10344 = vst [vmem:[#allocation14_spill] sm:$0xff] %v8406_v4  ;;  %v8408_v61 = vpop.permute.xlu2 %3052 }
 0x5fa   : > { %2844 = vst.msk [vmem:[#allocation3 + $0x70] sm:$0xff] %vm397_vm0, %v8406_v4 }
 0x5fe   : > { %3552 = vperm.xlu0 %6501, %v6254_v58   ;;  %3547 = vperm.xlu1 %6502, %v6253_v5  }
 0x5ff   : > { %3557 = vperm.xlu2 %6500, %v6255_v42  }
 0x600   : > { %v8421_v15 = vpop.permute.xlu0 %2818  ;;  %v8423_v3 = vpop.permute.xlu1 %2882 }
 0x601   : > { %10345 = vst [vmem:[#allocation16_spill] sm:$0xff] %v8423_v3  ;;  %v8425_v4 = vpop.permute.xlu2 %3372 }
 0x602   : > { %2924 = vst.msk [vmem:[#allocation3 + $0xd0] sm:$0xff] %vm397_vm0, %v8423_v3  ;;  %v3306_v3 = vsel %vm942_vm15, %v8220_v62, %v8346_v1  ;;  %v3302_v62 = vsel %vm942_vm15, %v8188_v30, %v8308_v48 }
 0x607   : > { %3542 = vperm.xlu2 %6500, %v6252_v32   ;;  %v2986_v32 = vsel %vm618_vm2, %v8234_v41, %v8358_v10  ;;  %v2982_v41 = vsel %vm618_vm2, %v8200_v17, %v8320_v29  ;;  %v3228_v17 = vsel %vm861_vm11, %v8246_v51, %v8370_v54  ;;  %v2904_v51 = vsel %vm537_vm10, %v8238_v19, %v8356_v49 }
 0x608   : > { %v8432_v6 = vpop.permute.xlu0 %2978  ;;  %v8434_v56 = vpop.permute.xlu1 %2808  ;;  %v3222_v19 = vsel %vm861_vm11, %v8198_v34, %v8336_v12  ;;  %v2826_v34 = vsel %vm456_vm1, %v8264_v36, %v8380_v2  ;;  %v2822_v36 = vsel %vm456_vm1, %v8166_v23, %v8284_v11 }
 0x609   : > { %v2988_v58 = vsel %vm618_vm2, %v8312_v13, %v8432_v6  ;;  %v8439_v5 = vpop.permute.xlu2 %3298  ;;  %2847 = vst.msk [vmem:[#allocation3 + $0x88] sm:$0xff] %vm397_vm0, %v8434_v56  ;;  %v2984_v13 = vsel %vm618_vm2, %v8222_v43, %v8360_v37  ;;  %v2906_v43 = vsel %vm537_vm10, %v8276_v59, %v8392_v50  ;;  %v3224_v59 = vsel %vm861_vm11, %v8250_v60, %v8368_v35 }
 0x60a   : > { %v3308_v42 = vsel %vm942_vm15, %v8298_v53, %v8439_v5  ;;  %3572 = vmatpush.msra.mxu1 %v2988_v58  ;;  %v3304_v53 = vsel %vm942_vm15, %v8210_v52, %v8348_v20 }
 0x60b   : > { %3601 = vmatpush.msra.mxu3 %v3308_v42 }
 0x60c   : > { %3573 = vmatpush.msra.mxu1 %v2986_v32  ;;  %v3386_v32 = vsel %vm1023_vm13, %v8286_v27, %v8425_v4 }
 0x60d   : > { %3602 = vmatpush.msra.mxu3 %v3306_v3  ;;  %v2908_v3 = vsel %vm537_vm10, %v8260_v16, %v8382_v38  ;;  %v3226_v16 = vsel %vm861_vm11, %v8262_v9, %v8396_v46  ;;  %v2902_v9 = vsel %vm537_vm10, %v8178_v33, %v8296_v21  ;;  %v3148_v33 = vsel %vm780_vm12, %v8272_v47, %v8394_v63 }
 0x60e   : > { %3574 = vmatpush.msra.mxu1 %v2984_v13  ;;  %v2824_v47 = vsel %vm456_vm1, %v8224_v14, %v8344_v22 }
 0x60f   : > { %3603 = vmatpush.msra.mxu3 %v3304_v53  ;;  %v3144_v53 = vsel %vm780_vm12, %v8236_v55, %v8372_v8  ;;  %v10346_v55 = vld [vmem:[#allocation15_spill] sm:$0xff] }
 0x610   : > { %v8464_v58 = vpop.permute.xlu0 %3058  ;;  %v8466_v42 = vpop.permute.xlu1 %2888  ;;  %3575 = vmatpush.msra.mxu1 %v2982_v41 }
 0x611   : > { %v8471_v52 = vpop.permute.xlu2 %3378  ;;  %2927 = vst.msk [vmem:[#allocation3 + $0xe8] sm:$0xff] %vm397_vm0, %v8466_v42  ;;  %3604 = vmatpush.msra.mxu3 %v3302_v62  ;;  %v3068_v23 = vsel %vm699_vm14, %v8324_v7, %v8464_v58  ;;  %v3064_v7 = vsel %vm699_vm14, %v10346_v55, %v8334_v57 }
 0x612   : > { %v3388_v30 = vsel %vm1023_vm13, %v8310_v39, %v8471_v52  ;;  %3576 = vmatpush.msra.mxu1 %v2908_v3  ;;  %v3384_v39 = vsel %vm1023_vm13, %v8248_v18, %v8384_v31  ;;  %v2828_v18 = vsel %vm456_vm1, %v8300_v26, %v8421_v15  ;;  %v3146_v26 = vsel %vm780_vm12, %v8288_v44, %v8404_v25  ;;  %v10347_v3 = vld [vmem:[#allocation12_spill] sm:$0xff] }
 0x613   : > { %3605 = vmatpush.msra.mxu3 %v3228_v17  ;;  %3642 = vmatpush.msrb.mxu2 %v3388_v30  ;;  %v3142_v44 = vsel %vm780_vm12, %v8196_v28, %v8322_v45  ;;  %v3066_v28 = vsel %vm699_vm14, %v8274_v24, %v8408_v61  ;;  %v8573_v17 = vld [vmem:[%s10267_s1 + $0xc8] sm:$0xff]  ;;  %v10348_v24 = vld [vmem:[#allocation11_spill] sm:$0xff] }
 0x614   : > { %3577 = vmatpush.msra.mxu1 %v2906_v43 }
 0x615   : > { %3606 = vmatpush.msra.mxu3 %v3226_v16  ;;  %3643 = vmatpush.msrb.mxu2 %v3386_v32  ;;  %v10350_v32 = vld [vmem:[#allocation10_spill] sm:$0xff] }
 0x616   : > { %3578 = vmatpush.msra.mxu1 %v2904_v51 }
 0x617   : > { %3607 = vmatpush.msra.mxu3 %v3224_v59  ;;  %3644 = vmatpush.msrb.mxu2 %v3384_v39  ;;  %v8593_v59 = vld [vmem:[%s10267_s1 + $0xd8] sm:$0xff]  ;;  %v8598_v39 = vld [vmem:[%s10267_s1 + $0xe0] sm:$0xff] }
 0x618   : > { %v8505_v27 = vpop.permute.xlu0 %2962  ;;  %v8507_v13 = vpop.permute.xlu1 %2968  ;;  %3579 = vmatpush.msra.mxu1 %v2902_v9 }
 0x619   : > { %v8512_v60 = vpop.permute.xlu2 %3202  ;;  %3004 = vst.msk [vmem:[#allocation3 + $0x130] sm:$0xff] %vm397_vm0, %v8505_v27  ;;  %3608 = vmatpush.msra.mxu3 %v3222_v19 }
 0x61a   : > { %3244 = vst.msk [vmem:[#allocation3 + $0x250] sm:$0xff] %vm397_vm0, %v8512_v60  ;;  %3580 = vmatpush.msra.mxu1 %v2828_v18 }
 0x61b   : > { %3007 = vst.msk [vmem:[#allocation3 + $0x148] sm:$0xff] %vm397_vm0, %v8507_v13  ;;  %3609 = vmatpush.msra.mxu3 %v3148_v33  ;;  %v8611_v33 = vld [vmem:[%s10267_s1 + $0xf0] sm:$0xff] }
 0x61c   : > { %3581 = vmatpush.msra.mxu1 %v2826_v34  ;;  %v8616_v34 = vld [vmem:[%s10267_s1 + $0xf8] sm:$0xff] }
 0x61d   : > { %3610 = vmatpush.msra.mxu3 %v3146_v26 }
 0x61e   : > { %3582 = vmatpush.msra.mxu1 %v2824_v47 }
 0x61f   : > { %3611 = vmatpush.msra.mxu3 %v3144_v53 }
 0x620   : > { %v8541_v41 = vpop.permute.xlu0 %3282  ;;  %v8543_v62 = vpop.permute.xlu1 %3288  ;;  %3583 = vmatpush.msra.mxu1 %v2822_v36  ;;  %v8629_v36 = vld [vmem:[%s10267_s1 + $0x108] sm:$0xff] }
 0x621   : > { %3324 = vst.msk [vmem:[#allocation3 + $0x2b0] sm:$0xff] %vm397_vm0, %v8541_v41  ;;  %v8547_v14 = vpop.permute.xlu2 %2974  ;;  %3612 = vmatpush.msra.mxu3 %v3142_v44  ;;  %v8634_v44 = vld [vmem:[%s10267_s1 + $0x110] sm:$0xff] }
 0x622   : > { %3010 = vst.msk [vmem:[#allocation3 + $0x160] sm:$0xff] %vm397_vm0, %v8547_v14  ;;  %3584 = vmatpush.msra.mxu1 %v8088_v40  ;;  %v8568_v40 = vld [vmem:[%s10267_s1 + $0xc0] sm:$0xff] }
 0x623   : > { %3327 = vst.msk [vmem:[#allocation3 + $0x2c8] sm:$0xff] %vm397_vm0, %v8543_v62  ;;  %3613 = vmatpush.msra.mxu3 %v3068_v23 }
 0x624   : > { %3585 = vmatpush.msra.mxu1 %v8073_v0  ;;  %v10349_v0 = vld [vmem:[#allocation9_spill] sm:$0xff] }
 0x625   : > { %3614 = vmatpush.msra.mxu3 %v3066_v28  ;;  %v3062_v30 = vsel %vm699_vm14, %v10349_v0, %v10348_v24  ;;  %v3305_v0 = vsel %vm942_vm15, %v8348_v20, %v8543_v62 }
 0x626   : > { %3586 = vmatpush.msra.mxu1 %v10347_v3 }
 0x627   : > { %3615 = vmatpush.msra.mxu3 %v3064_v7 }
 0x628   : > { %v8578_v43 = vpop.permute.xlu0 %3128  ;;  %v8580_v16 = vpop.permute.xlu1 %3208  ;;  %3587 = vmatpush.msra.mxu1 %v10350_v32 }
 0x629   : > { %3167 = vst.msk [vmem:[#allocation3 + $0x208] sm:$0xff] %vm397_vm0, %v8578_v43  ;;  %v3295_v51 = vpop.permute.xlu2 %3294  ;;  %3616 = vmatpush.msra.mxu3 %v3062_v30  ;;  %3588 = vmatmul.f32.vlgmr.msra.gmra.mxu1 %v8568_v40  ;;  %v3225_v62 = vsel %vm861_vm11, %v8368_v35, %v8580_v16 }
 0x62a   : > { %3330 = vst.msk [vmem:[#allocation3 + $0x2e0] sm:$0xff] %vm397_vm0, %v3295_v51  ;;  %3617 = vmatmul.f32.vlgmr.msra.gmra.mxu3 %v8573_v17  ;;  %v3307_v3 = vsel %vm942_vm15, %v8346_v1, %v3295_v51 }
 0x62b   : > { %3247 = vst.msk [vmem:[#allocation3 + $0x268] sm:$0xff] %vm397_vm0, %v8580_v16  ;;  %v10351_v16 = vld [vmem:[#allocation16_spill] sm:$0xff] }
 0x630   : > { %v3215_v9 = vpop.permute.xlu0 %3214  ;;  %v8600_v19 = vpop.permute.xlu1 %2814 }
 0x631   : > { %3250 = vst.msk [vmem:[#allocation3 + $0x280] sm:$0xff] %vm397_vm0, %v3215_v9  ;;  %v2901_v18 = vpop.permute.xlu2 %2900  ;;  %3591 = vmatmul.f32.gmra.mxu1 %v8593_v59 }
 0x632   : > { %2933 = vst.msk [vmem:[#allocation3 + $0x118] sm:$0xff] %vm397_vm0, %v2901_v18  ;;  %3620 = vmatmul.f32.gmra.mxu3 %v8598_v39 }
 0x633   : > { %2850 = vst.msk [vmem:[#allocation3 + $0xa0] sm:$0xff] %vm397_vm0, %v8600_v19 }
 0x638   : > { %v8618_v26 = vpop.permute.xlu0 %3134  ;;  %v2895_v47 = vpop.permute.xlu1 %2894 }
 0x639   : > { %3170 = vst.msk [vmem:[#allocation3 + $0x220] sm:$0xff] %vm397_vm0, %v8618_v26  ;;  %v3221_v53 = vpop.permute.xlu2 %3220  ;;  %3594 = vmatmul.f32.gmra.mxu1 %v8611_v33 }
 0x63a   : > { %3253 = vst.msk [vmem:[#allocation3 + $0x298] sm:$0xff] %vm397_vm0, %v3221_v53  ;;  %3623 = vmatmul.f32.gmra.mxu3 %v8616_v34 }
 0x63b   : > { %2930 = vst.msk [vmem:[#allocation3 + $0x100] sm:$0xff] %vm397_vm0, %v2895_v47 }
 0x640   : > { %v3301_v23 = vpop.permute.xlu0 %3300  ;;  %v8636_v28 = vpop.permute.xlu1 %2820 }
 0x641   : > { %v3309_v55 = vsel %vm942_vm15, %v8439_v5, %v3301_v23  ;;  %3333 = vst.msk [vmem:[#allocation3 + $0x2f8] sm:$0xff] %vm397_vm0, %v3301_v23  ;;  %v3359_v7 = vpop.permute.xlu2 %3358  ;;  %3597 = vmatmul.f32.gmra.mxu1 %v8629_v36  ;;  %v3303_v5 = vsel %vm942_vm15, %v8308_v48, %v8541_v41  ;;  %v8658_v23 = vld [vmem:[%s10267_s1 + $0xd0] sm:$0xff]  ;;  %v3229_v48 = vsel %vm861_vm11, %v8370_v54, %v3221_v53 }
 0x642   : > { %2853 = vst.msk [vmem:[#allocation3 + $0xb8] sm:$0xff] %vm397_vm0, %v8636_v28  ;;  %3626 = vmatmul.f32.gmra.mxu3 %v8634_v44  ;;  %3688 = vmatpush.msrb.mxu1 %v3309_v55  ;;  %v2987_v41 = vsel %vm618_vm2, %v8358_v10, %v8547_v14  ;;  %v2985_v54 = vsel %vm618_vm2, %v8360_v37, %v8507_v13  ;;  %v3462_v55 = vld [vmem:[#allocation3 + $0x118] sm:$0xff] }
 0x643   : > { %v2983_v10 = vsel %vm618_vm2, %v8320_v29, %v8505_v27  ;;  %v2909_v37 = vsel %vm537_vm10, %v8382_v38, %v2901_v18  ;;  %v8701_v29 = vld [vmem:[%s10267_s1 + $0xe8] sm:$0xff]  ;;  %v2907_v38 = vsel %vm537_vm10, %v8392_v50, %v2895_v47  ;;  %v3468_v27 = vld [vmem:[#allocation3 + $0x148] sm:$0xff]  ;;  %v2905_v13 = vsel %vm537_vm10, %v8356_v49, %v8466_v42  ;;  %v8725_v49 = vld [vmem:[%s10267_s1 + $0x100] sm:$0xff] }
 0x644   : > { %3689 = vmatpush.msrb.mxu1 %v3307_v3  ;;  %v2903_v18 = vsel %vm537_vm10, %v8296_v21, %v10351_v16  ;;  %v3459_v21 = vld [vmem:[#allocation3 + $0x100] sm:$0xff]  ;;  %v3456_v42 = vld [vmem:[#allocation3 + $0xe8] sm:$0xff] }
 0x646   : > { %3690 = vmatpush.msrb.mxu1 %v3305_v0  ;;  %v10352_v0 = vld [vmem:[#allocation14_spill] sm:$0xff] }
 0x648   : > { %v8653_v30 = vpop.permute.xlu0 %3360  ;;  %v2981_v32 = vpop.permute.xlu1 %2980  ;;  %3691 = vmatpush.msrb.mxu1 %v3303_v5 }
 0x649   : > { %v3382_v1 = vsel %vm1023_vm13, %v3359_v7, %v8653_v30  ;;  %v8662_v51 = vpop.permute.xlu2 %3060  ;;  %v2989_v20 = vsel %vm618_vm2, %v8432_v6, %v2981_v32  ;;  %3013 = vst.msk [vmem:[#allocation3 + $0x178] sm:$0xff] %vm397_vm0, %v2981_v32  ;;  %v3227_v6 = vsel %vm861_vm11, %v8396_v46, %v3215_v9  ;;  %v3223_v46 = vsel %vm861_vm11, %v8336_v12, %v8512_v60  ;;  %v3471_v12 = vld [vmem:[#allocation3 + $0x160] sm:$0xff]  ;;  %v3465_v60 = vld [vmem:[#allocation3 + $0x130] sm:$0xff] }
 0x64a   : > { %3093 = vst.msk [vmem:[#allocation3 + $0x1d8] sm:$0xff] %vm397_vm0, %v8662_v51  ;;  %3645 = vmatpush.msrb.mxu2 %v3382_v1  ;;  %3659 = vmatpush.msrb.mxu0 %v2989_v20  ;;  %v2829_v7 = vsel %vm456_vm1, %v8421_v15, %v8636_v28  ;;  %v2827_v15 = vsel %vm456_vm1, %v8380_v2, %v8600_v19  ;;  %v3453_v19 = vld [vmem:[#allocation3 + $0xd0] sm:$0xff]  ;;  %v3444_v20 = vld [vmem:[#allocation3 + $0x88] sm:$0xff] }
 0x64b   : > { %3692 = vmatpush.msrb.mxu1 %v3229_v48  ;;  %6256 = vmatmul.msk.f32.vlgmr.msrb.gmra.mxu2 %vm397_vm0, %v8658_v23  ;;  %v2825_v28 = vsel %vm456_vm1, %v8344_v22, %v8434_v56  ;;  %v3145_v2 = vsel %vm780_vm12, %v8372_v8, %v8578_v43  ;;  %v3450_v56 = vld [vmem:[#allocation3 + $0xb8] sm:$0xff]  ;;  %v2760_v8 = vld [vmem:[#allocation2 + $0x50] sm:$0xff]  ;;  %v3447_v43 = vld [vmem:[#allocation3 + $0xa0] sm:$0xff] }
 0x64c   : > { %3660 = vmatpush.msrb.mxu0 %v2987_v41 }
 0x64d   : > { %3693 = vmatpush.msrb.mxu1 %v3227_v6 }
 0x64e   : > { %3661 = vmatpush.msrb.mxu0 %v2985_v54 }
 0x64f   : > { %3694 = vmatpush.msrb.mxu1 %v3225_v62  ;;  %v3438_v62 = vld [vmem:[#allocation3 + $0x58] sm:$0xff] }
 0x650   : > { %v8690_v14 = vpop.permute.xlu0 %3368  ;;  %v3123_v9 = vpop.permute.xlu1 %3122  ;;  %v3474_v53 = vld [vmem:[#allocation3 + $0x178] sm:$0xff]  ;;  %3662 = vmatpush.msrb.mxu0 %v2983_v10 }
 0x651   : > { %3407 = vst.msk [vmem:[#allocation3 + $0x328] sm:$0xff] %vm397_vm0, %v8690_v14  ;;  %v8696_v35 = vpop.permute.xlu2 %3362  ;;  %3746 = vmatpush.msra.mxu2 %v3474_v53  ;;  %3695 = vmatpush.msrb.mxu1 %v3223_v46  ;;  %v3385_v41 = vsel %vm1023_vm13, %v8384_v31, %v8690_v14  ;;  %v3522_v31 = vld [vmem:[#allocation3 + $0x2f8] sm:$0xff]  ;;  %v3435_v46 = vld [vmem:[#allocation3 + $0x40] sm:$0xff]  ;;  %v3429_v53 = vld [vmem:[#allocation3 + $0x10] sm:$0xff] }
 0x652   : > { %3404 = vst.msk [vmem:[#allocation3 + $0x310] sm:$0xff] %vm397_vm0, %v8696_v35  ;;  %3663 = vmatpush.msrb.mxu0 %v2909_v37  ;;  %v3519_v14 = vld [vmem:[#allocation3 + $0x2e0] sm:$0xff] }
 0x653   : > { %3164 = vst.msk [vmem:[#allocation3 + $0x1f0] sm:$0xff] %vm397_vm0, %v3123_v9  ;;  %3747 = vmatpush.msra.mxu2 %v3471_v12 }
 0x654   : > { %6257 = vmatmul.msk.f32.gmra.mxu2 %vm397_vm0, %v8701_v29  ;;  %3664 = vmatpush.msrb.mxu0 %v2907_v38  ;;  %v3510_v38 = vld [vmem:[#allocation3 + $0x298] sm:$0xff] }
 0x655   : > { %3748 = vmatpush.msra.mxu2 %v3468_v27  ;;  %v3507_v27 = vld [vmem:[#allocation3 + $0x280] sm:$0xff] }
 0x656   : > { %3665 = vmatpush.msrb.mxu0 %v2905_v13 }
 0x657   : > { %3749 = vmatpush.msra.mxu2 %v3465_v60  ;;  %v3504_v60 = vld [vmem:[#allocation3 + $0x268] sm:$0xff] }
 0x658   : > { %v3141_v50 = vpop.permute.xlu0 %3140  ;;  %v3375_v47 = vpop.permute.xlu1 %3374  ;;  %3666 = vmatpush.msrb.mxu0 %v2903_v18  ;;  %v3495_v18 = vld [vmem:[#allocation3 + $0x220] sm:$0xff] }
 0x659   : > { %v3149_v3 = vsel %vm780_vm12, %v8394_v63, %v3141_v50  ;;  %3173 = vst.msk [vmem:[#allocation3 + $0x238] sm:$0xff] %vm397_vm0, %v3141_v50  ;;  %3750 = vmatpush.msra.mxu2 %v3462_v55  ;;  %v3147_v63 = vsel %vm780_vm12, %v8404_v25, %v8618_v26  ;;  %v2823_v25 = vsel %vm456_vm1, %v8284_v11, %v10352_v0  ;;  %v8753_v11 = vld [vmem:[%s10267_s1 + $0x118] sm:$0xff]  ;;  %v3492_v50 = vld [vmem:[#allocation3 + $0x208] sm:$0xff] }
 0x65a   : > { %3410 = vst.msk [vmem:[#allocation3 + $0x340] sm:$0xff] %vm397_vm0, %v3375_v47  ;;  %3667 = vmatpush.msrb.mxu0 %v2829_v7  ;;  %3696 = vmatpush.msrb.mxu1 %v3149_v3  ;;  %v3143_v26 = vsel %vm780_vm12, %v8322_v45, %v3123_v9  ;;  %v3069_v45 = vsel %vm699_vm14, %v8464_v58, %v8662_v51  ;;  %v2754_v58 = vld [vmem:[#allocation2 + $0x20] sm:$0xff]  ;;  %v3441_v51 = vld [vmem:[#allocation3 + $0x70] sm:$0xff]  ;;  %v3516_v9 = vld [vmem:[#allocation3 + $0x2c8] sm:$0xff] }
 0x65b   : > { %3751 = vmatpush.msra.mxu2 %v3459_v21  ;;  %v3387_v48 = vsel %vm1023_vm13, %v8425_v4, %v3375_v47  ;;  %v3383_v4 = vsel %vm1023_vm13, %v8653_v30, %v8696_v35  ;;  %v3432_v30 = vld [vmem:[#allocation3 + $0x28] sm:$0xff]  ;;  %v3513_v35 = vld [vmem:[#allocation3 + $0x2b0] sm:$0xff] }
 0x65c   : > { %6258 = vmatmul.msk.f32.gmra.mxu2 %vm397_vm0, %v8725_v49  ;;  %3668 = vmatpush.msrb.mxu0 %v2827_v15  ;;  %v3525_v13 = vld [vmem:[#allocation3 + $0x310] sm:$0xff] }
 0x65d   : > { %3752 = vmatpush.msra.mxu2 %v3456_v42  ;;  %3697 = vmatpush.msrb.mxu1 %v3147_v63  ;;  %v3489_v47 = vld [vmem:[#allocation3 + $0x1f0] sm:$0xff] }
 0x65e   : > { %3669 = vmatpush.msrb.mxu0 %v2825_v28 }
 0x65f   : > { %3753 = vmatpush.msra.mxu2 %v3453_v19  ;;  %3698 = vmatpush.msrb.mxu1 %v3145_v2 }
 0x660   : > { %v3381_v5 = vpop.permute.xlu0 %3380  ;;  %v3055_v32 = vpop.permute.xlu1 %3054  ;;  %3670 = vmatpush.msrb.mxu0 %v2823_v25  ;;  %v3498_v16 = vld [vmem:[#allocation3 + $0x238] sm:$0xff] }
 0x661   : > { %v3389_v22 = vsel %vm1023_vm13, %v8471_v52, %v3381_v5  ;;  %3413 = vst.msk [vmem:[#allocation3 + $0x358] sm:$0xff] %vm397_vm0, %v3381_v5  ;;  %3754 = vmatpush.msra.mxu2 %v3450_v56  ;;  %3699 = vmatpush.msrb.mxu1 %v3143_v26  ;;  %v2757_v52 = vld [vmem:[#allocation2 + $0x38] sm:$0xff]  ;;  %v3067_v1 = vsel %vm699_vm14, %v8408_v61, %v3055_v32  ;;  %v2751_v61 = vld [vmem:[#allocation2 + $0x8] sm:$0xff]  ;;  %v3531_v12 = vld [vmem:[#allocation3 + $0x340] sm:$0xff] }
 0x662   : > { %3090 = vst.msk [vmem:[#allocation3 + $0x1c0] sm:$0xff] %vm397_vm0, %v3055_v32  ;;  %3671 = vmatpush.msrb.mxu0 %v2760_v8  ;;  %3729 = vmatpush.msrb.mxu3 %v3389_v22 }
 0x663   : > { %3755 = vmatpush.msra.mxu2 %v3447_v43  ;;  %3700 = vmatpush.msrb.mxu1 %v3069_v45 }
 0x664   : > { %6259 = vmatmul.msk.f32.gmra.mxu2 %vm397_vm0, %v8753_v11  ;;  %3672 = vmatpush.msrb.mxu0 %v2757_v52 }
 0x665   : > { %3756 = vmatpush.msra.mxu2 %v3444_v20  ;;  %3701 = vmatpush.msrb.mxu1 %v3067_v1 }
 0x666   : > { %3730 = vmatpush.msrb.mxu3 %v3387_v48  ;;  %3673 = vmatpush.msrb.mxu0 %v2754_v58 }
 0x667   : > { %3757 = vmatpush.msra.mxu2 %v3441_v51 }
 0x668   : > { %v3049_v6 = vpop.permute.xlu0 %3048  ;;  %v3043_v54 = vpop.permute.xlu1 %3042  ;;  %3731 = vmatpush.msrb.mxu3 %v3385_v41  ;;  %3674 = vmatpush.msrb.mxu0 %v2751_v61  ;;  %v3534_v37 = vld [vmem:[#allocation3 + $0x358] sm:$0xff] }
 0x669   : > { %v3065_v10 = vsel %vm699_vm14, %v8334_v57, %v3049_v6  ;;  %3087 = vst.msk [vmem:[#allocation3 + $0x1a8] sm:$0xff] %vm397_vm0, %v3049_v6  ;;  %3758 = vmatpush.msra.mxu2 %v3438_v62  ;;  %3675 = vmatmul.f32.vlgmr.msrb.gmra.mxu0 %v8568_v40  ;;  %v3063_v57 = vsel %vm699_vm14, %v10348_v24, %v3043_v54  ;;  %v3528_v24 = vld [vmem:[#allocation3 + $0x328] sm:$0xff]  ;;  %v3483_v55 = vld [vmem:[#allocation3 + $0x1c0] sm:$0xff] }
 0x66a   : > { %3084 = vst.msk [vmem:[#allocation3 + $0x190] sm:$0xff] %vm397_vm0, %v3043_v54  ;;  %3732 = vmatpush.msrb.mxu3 %v3383_v4  ;;  %3775 = vmatpush.msra.mxu0 %v3522_v31 }
 0x66b   : > { %3759 = vmatpush.msra.mxu2 %v3435_v46  ;;  %6260 = vmatmul.msk.f32.vlgmr.msrb.gmra.mxu3 %vm397_vm0, %v8658_v23 }
 0x66c   : > { %3702 = vmatpush.msrb.mxu1 %v3065_v10  ;;  %3776 = vmatpush.msra.mxu0 %v3519_v14 }
 0x66d   : > { %3760 = vmatpush.msra.mxu2 %v3432_v30 }
 0x66e   : > { %3703 = vmatpush.msrb.mxu1 %v3063_v57  ;;  %3777 = vmatpush.msra.mxu0 %v3516_v9 }
 0x66f   : > { %3761 = vmatpush.msra.mxu2 %v3429_v53  ;;  %3704 = vmatmul.f32.vlgmr.msrb.gmra.mxu1 %v8573_v17  ;;  %v10354_v53 = vld [vmem:[#allocation6_spill] sm:$0xff] }
 0x670   : > { %3762 = vmatmul.f32.vlgmr.msra.gmra.mxu2 %v8568_v40  ;;  %3816 = vmatpush.msra.mxu1 %v3534_v37  ;;  %v3501_v40 = vld [vmem:[#allocation3 + $0x250] sm:$0xff]  ;;  %v3480_v7 = vld [vmem:[#allocation3 + $0x1a8] sm:$0xff]  ;;  %v8819_v56 = vpop.permute.xlu0 %3552 }
 0x671   : > { %3778 = vmatpush.msra.mxu0 %v3513_v35  ;;  %v3477_v3 = vld [vmem:[#allocation3 + $0x190] sm:$0xff] }
 0x672   : > { %3817 = vmatpush.msra.mxu1 %v3531_v12  ;;  %3678 = vmatmul.f32.gmra.mxu0 %v8593_v59 }
 0x673   : > { %6261 = vmatmul.msk.f32.gmra.mxu3 %vm397_vm0, %v8701_v29  ;;  %3779 = vmatpush.msra.mxu0 %v3510_v38 }
 0x674   : > { %3818 = vmatpush.msra.mxu1 %v3528_v24 }
 0x675   : > { %3780 = vmatpush.msra.mxu0 %v3507_v27 }
 0x676   : > { %3819 = vmatpush.msra.mxu1 %v3525_v13 }
 0x677   : > { %3707 = vmatmul.f32.gmra.mxu1 %v8598_v39  ;;  %3781 = vmatpush.msra.mxu0 %v3504_v60 }
 0x678   : > { %3765 = vmatmul.f32.gmra.mxu2 %v8593_v59  ;;  %v3486_v59 = vld [vmem:[#allocation3 + $0x1d8] sm:$0xff] }
 0x679   : > { %3782 = vmatpush.msra.mxu0 %v3501_v40 }
 0x67a   : > { %3681 = vmatmul.f32.gmra.mxu0 %v8611_v33 }
 0x67b   : > { %6262 = vmatmul.msk.f32.gmra.mxu3 %vm397_vm0, %v8725_v49  ;;  %3783 = vmatpush.msra.mxu0 %v3498_v16 }
 0x67d   : > { %3784 = vmatpush.msra.mxu0 %v3495_v18 }
 0x67f   : > { %3710 = vmatmul.f32.gmra.mxu1 %v8616_v34  ;;  %3785 = vmatpush.msra.mxu0 %v3492_v50 }
 0x680   : > { %3768 = vmatmul.f32.gmra.mxu2 %v8611_v33  ;;  %v8809_v33 = vpop.permute.xlu2 %3557 }
 0x681   : > { %3786 = vmatpush.msra.mxu0 %v3489_v47 }
 0x682   : > { %3684 = vmatmul.f32.gmra.mxu0 %v8629_v36 }
 0x683   : > { %6263 = vmatmul.msk.f32.gmra.mxu3 %vm397_vm0, %v8753_v11  ;;  %3787 = vmatpush.msra.mxu0 %v3486_v59 }
 0x685   : > { %3788 = vmatpush.msra.mxu0 %v3483_v55 }
 0x687   : > { %3713 = vmatmul.f32.gmra.mxu1 %v8634_v44  ;;  %3789 = vmatpush.msra.mxu0 %v3480_v7 }
 0x688   : > { %3771 = vmatmul.f32.gmra.mxu2 %v8629_v36 }
 0x689   : > { %3790 = vmatpush.msra.mxu0 %v3477_v3 }
 0x68a   : > { %3791 = vmatmul.f32.vlgmr.msra.gmra.mxu0 %v8573_v17 }
 0x68f   : > { %6264 = vmatmul.msk.f32.vlgmr.msra.gmra.mxu1 %vm397_vm0, %v8658_v23  ;;  %v8811_v23 = vpop.permute.xlu2 %3542 }
 0x692   : > { %3794 = vmatmul.f32.gmra.mxu0 %v8598_v39 }
 0x697   : > { %6265 = vmatmul.msk.f32.gmra.mxu1 %vm397_vm0, %v8701_v29 }
 0x69a   : > { %3797 = vmatmul.f32.gmra.mxu0 %v8616_v34 }
 0x69f   : > { %6266 = vmatmul.msk.f32.gmra.mxu1 %vm397_vm0, %v8725_v49  ;;  %v8814_v49 = vpop.permute.xlu1 %3547 }
 0x6a2   : > { %3800 = vmatmul.f32.gmra.mxu0 %v8634_v44  ;;  %v10353_v44 = vld [vmem:[#allocation5_spill] sm:$0xff] }
 0x6a6   : > { %v3589_v17 = vpop.f32.mrf.mxu1 }
 0x6a7   : > { %6267 = vmatmul.msk.f32.gmra.mxu1 %vm397_vm0, %v8753_v11  ;;  %v3590_v39 = vadd.f32 %v3589_v17, %v8811_v23 }
 0x6ad   : > { %v3618_v36 = vpop.f32.mrf.mxu3 }
 0x6ae   : > { %v3619_v21 = vadd.f32 %v3618_v36, %v3590_v39  ;;  %v3592_v29 = vpop.f32.mrf.mxu1 }
 0x6af   : > { %v3593_v2 = vadd.f32 %v3592_v29, %v8814_v49 }
 0x6b5   : > { %v3621_v34 = vpop.f32.mrf.mxu3 }
 0x6b6   : > { %v3622_v19 = vadd.f32 %v3621_v34, %v3593_v2  ;;  %v3595_v0 = vpop.f32.mrf.mxu1 }
 0x6b7   : > { %v3596_v22 = vadd.f32 %v3595_v0, %v8819_v56 }
 0x6bd   : > { %v3624_v5 = vpop.f32.mrf.mxu3 }
 0x6be   : > { %v3625_v11 = vadd.f32 %v3624_v5, %v3596_v22  ;;  %v3598_v52 = vpop.f32.mrf.mxu1 }
 0x6bf   : > { %v3599_v48 = vadd.f32 %v3598_v52, %v8809_v33 }
 0x6c5   : > { %v3627_v20 = vpop.f32.mrf.mxu3 }
 0x6c6   : > { %v3628_v51 = vadd.f32 %v3627_v20, %v3599_v48 }
 0x6ce   : > { %v3647_v15 = vpop.f32.mrf.mxu2 }
 0x6cf   : > { %v3648_v63 = vadd.f32 %v3647_v15, %v3619_v21 }
 0x6d1   : > { %v3833_v42 = vmax.f32 %v3648_v63, 0.0 }
 0x6d3   : > { %v3845_v28 = vmul.f32 %v3833_v42, %v10353_v44 }
 0x6d5   : > { %3869 = vrot.lane.b32.xlu0 %v3845_v28, %s6525_s29 }
 0x6d7   : > { %v3650_v25 = vpop.f32.mrf.mxu2 }
 0x6d8   : > { %v3651_v26 = vadd.f32 %v3650_v25, %v3622_v19 }
 0x6da   : > { %v3836_v32 = vmax.f32 %v3651_v26, 0.0 }
 0x6dc   : > { %v3848_v8 = vmul.f32 %v3836_v32, %v10353_v44  ;;  %v10355_v32 = vld [vmem:[#allocation7_spill] sm:$0xff] }
 0x6de   : > { %3875 = vrot.lane.b32.xlu0 %v3848_v8, %s6525_s29 }
 0x6df   : > { %v3653_v45 = vpop.f32.mrf.mxu2 }
 0x6e0   : > { %v3654_v43 = vadd.f32 %v3653_v45, %v3625_v11 }
 0x6e2   : > { %v3839_v1 = vmax.f32 %v3654_v43, 0.0 }
 0x6e4   : > { %v3851_v58 = vmul.f32 %v3839_v1, %v10353_v44 }
 0x6e6   : > { %3881 = vrot.lane.b32.xlu0 %v3851_v58, %s6525_s29  ;;  %v3676_v41 = vpop.f32.mrf.mxu0 }
 0x6e7   : > { %v3656_v61 = vpop.f32.mrf.mxu2  ;;  %v3677_v62 = vadd.f32 %v3676_v41, %v8811_v23 }
 0x6e8   : > { %v3657_v6 = vadd.f32 %v3656_v61, %v3628_v51 }
 0x6ea   : > { %v3842_v54 = vmax.f32 %v3657_v6, 0.0 }
 0x6ec   : > { %v3854_v4 = vmul.f32 %v3842_v54, %v10353_v44  ;;  %v3705_v10 = vpop.f32.mrf.mxu1  ;;  %v6281_v44 = vld [vmem:[%s10268_s2 + $0x68] sm:$0xff] }
 0x6ed   : > { %v3706_v31 = vadd.f32 %v3705_v10, %v3677_v62 }
 0x6ee   : > { %v3734_v46 = vpop.f32.mrf.mxu3  ;;  %3887 = vrot.lane.b32.xlu1 %v3854_v4, %s6525_s29 }
 0x6ef   : > { %v3735_v14 = vadd.f32 %v3734_v46, %v3706_v31  ;;  %v3679_v30 = vpop.f32.mrf.mxu0 }
 0x6f0   : > { %v3680_v9 = vadd.f32 %v3679_v30, %v8814_v49 }
 0x6f1   : > { %v3834_v57 = vmax.f32 %v3735_v14, 0.0 }
 0x6f3   : > { %v3846_v37 = vmul.f32 %v3834_v57, %v10354_v53  ;;  %v3763_v55 = vpop.f32.mrf.mxu2 }
 0x6f4   : > { %v3708_v35 = vpop.f32.mrf.mxu1  ;;  %v3764_v34 = vadd.f32 %v3763_v55, %v8811_v23 }
 0x6f5   : > { %v3709_v12 = vadd.f32 %v3708_v35, %v3680_v9 }
 0x6f6   : > { %v3737_v38 = vpop.f32.mrf.mxu3  ;;  %3871 = vrot.lane.b32.xlu1 %v3846_v37, %s6525_s29 }
 0x6f7   : > { %v3738_v24 = vadd.f32 %v3737_v38, %v3709_v12  ;;  %v3682_v27 = vpop.f32.mrf.mxu0 }
 0x6f8   : > { %v3683_v60 = vadd.f32 %v3682_v27, %v8819_v56 }
 0x6f9   : > { %v3837_v13 = vmax.f32 %v3738_v24, 0.0 }
 0x6fb   : > { %v3849_v40 = vmul.f32 %v3837_v13, %v10354_v53  ;;  %v3766_v42 = vpop.f32.mrf.mxu2 }
 0x6fc   : > { %v3711_v16 = vpop.f32.mrf.mxu1  ;;  %v3767_v5 = vadd.f32 %v3766_v42, %v8814_v49 }
 0x6fd   : > { %v3712_v18 = vadd.f32 %v3711_v16, %v3683_v60 }
 0x6fe   : > { %v3740_v50 = vpop.f32.mrf.mxu3  ;;  %3877 = vrot.lane.b32.xlu1 %v3849_v40, %s6525_s29 }
 0x6ff   : > { %v3741_v47 = vadd.f32 %v3740_v50, %v3712_v18  ;;  %v3685_v59 = vpop.f32.mrf.mxu0 }
 0x700   : > { %v3686_v17 = vadd.f32 %v3685_v59, %v8809_v33 }
 0x701   : > { %v3840_v7 = vmax.f32 %v3741_v47, 0.0 }
 0x703   : > { %v3852_v3 = vmul.f32 %v3840_v7, %v10354_v53  ;;  %v3769_v11 = vpop.f32.mrf.mxu2 }
 0x704   : > { %v3714_v36 = vpop.f32.mrf.mxu1  ;;  %v3770_v1 = vadd.f32 %v3769_v11, %v8819_v56 }
 0x705   : > { %v3715_v39 = vadd.f32 %v3714_v36, %v3686_v17  ;;  %3883 = vrot.lane.b32.xlu0 %v3852_v3, %s6525_s29 }
 0x706   : > { %v3743_v21 = vpop.f32.mrf.mxu3 }
 0x707   : > { %v3744_v29 = vadd.f32 %v3743_v21, %v3715_v39  ;;  %v3792_v15 = vpop.f32.mrf.mxu0 }
 0x708   : > { %v3793_v2 = vadd.f32 %v3792_v15, %v3764_v34 }
 0x709   : > { %v3843_v63 = vmax.f32 %v3744_v29, 0.0 }
 0x70b   : > { %v3855_v28 = vmul.f32 %v3843_v63, %v10354_v53  ;;  %v3772_v49 = vpop.f32.mrf.mxu2  ;;  %v6283_v53 = vld [vmem:[%s10268_s2 + $0x78] sm:$0xff] }
 0x70c   : > { %v3821_v19 = vpop.f32.mrf.mxu1  ;;  %v3773_v6 = vadd.f32 %v3772_v49, %v8809_v33 }
 0x70d   : > { %v3822_v0 = vadd.f32 %v3821_v19, %v3793_v2  ;;  %3889 = vrot.lane.b32.xlu2 %v3855_v28, %s6525_s29 }
 0x70f   : > { %v3835_v25 = vmax.f32 %v3822_v0, 0.0  ;;  %v3795_v26 = vpop.f32.mrf.mxu0 }
 0x710   : > { %v3796_v8 = vadd.f32 %v3795_v26, %v3767_v5 }
 0x711   : > { %v3847_v22 = vmul.f32 %v3835_v25, %v10355_v32 }
 0x714   : > { %v3824_v45 = vpop.f32.mrf.mxu1 }
 0x715   : > { %v3825_v43 = vadd.f32 %v3824_v45, %v3796_v8  ;;  %3873 = vrot.lane.b32.xlu2 %v3847_v22, %s6525_s29 }
 0x717   : > { %v3838_v23 = vmax.f32 %v3825_v43, 0.0  ;;  %v3798_v52 = vpop.f32.mrf.mxu0 }
 0x718   : > { %v3799_v48 = vadd.f32 %v3798_v52, %v3770_v1 }
 0x719   : > { %v3850_v20 = vmul.f32 %v3838_v23, %v10355_v32 }
 0x71c   : > { %v3827_v58 = vpop.f32.mrf.mxu1 }
 0x71d   : > { %v3828_v51 = vadd.f32 %v3827_v58, %v3799_v48  ;;  %3879 = vrot.lane.b32.xlu2 %v3850_v20, %s6525_s29 }
 0x71f   : > { %v3841_v41 = vmax.f32 %v3828_v51, 0.0  ;;  %v3801_v61 = vpop.f32.mrf.mxu0 }
 0x720   : > { %v3802_v62 = vadd.f32 %v3801_v61, %v3773_v6 }
 0x721   : > { %v3853_v54 = vmul.f32 %v3841_v41, %v10355_v32 }
 0x723   : > { %3885 = vrot.lane.b32.xlu1 %v3853_v54, %s6525_s29 }
 0x724   : > { %v3830_v4 = vpop.f32.mrf.mxu1 }
 0x725   : > { %v3831_v10 = vadd.f32 %v3830_v4, %v3802_v62 }
 0x727   : > { %v3844_v56 = vmax.f32 %v3831_v10, 0.0 }
 0x729   : > { %v3856_v31 = vmul.f32 %v3844_v56, %v10355_v32  ;;  %v6282_v32 = vld [vmem:[%s10268_s2 + $0x70] sm:$0xff] }
 0x72b   : > { %3891 = vrot.lane.b32.xlu2 %v3856_v31, %s6525_s29 }
 0x747   : > { %v3870_v46 = vpop.permute.xlu0 %3869 }
 0x748   : > { %3913 = vst.msk [vmem:[#allocation2] sm:$0xff] %vm1561_vm4, %v3870_v46 }
 0x74f   : > { %v8854_v14 = vld [vmem:[#allocation2] sm:$0xff] }
 0x750   : > { %v3876_v30 = vpop.permute.xlu0 %3875  ;;  %4373 = vrot.lane.b32.xlu2 %v8854_v14, %s6541_s21  ;;  %4053 = vrot.lane.b32.xlu1 %v8854_v14, %s6526_s30 }
 0x751   : > { %3916 = vst.msk [vmem:[#allocation2 + $0x18] sm:$0xff] %vm1561_vm4, %v3876_v30  ;;  %3973 = vrot.lane.b32.xlu0 %v8854_v14, %s6524_s4 }
 0x758   : > { %v3882_v33 = vpop.permute.xlu0 %3881  ;;  %4293 = vrot.lane.b32.xlu1 %v8854_v14, %s6547_s7  ;;  %v8865_v57 = vld [vmem:[#allocation2 + $0x18] sm:$0xff] }
 0x759   : > { %3919 = vst.msk [vmem:[#allocation2 + $0x30] sm:$0xff] %vm1561_vm4, %v3882_v33  ;;  %4133 = vrot.lane.b32.xlu0 %v8854_v14, %s6528_s8  ;;  %4139 = vrot.lane.b32.xlu2 %v8865_v57, %s6528_s8 }
 0x760   : > { %v3888_v9 = vpop.permute.xlu1 %3887  ;;  %4219 = vrot.lane.b32.xlu1 %v8865_v57, %s6533_s13  ;;  %v8879_v35 = vld [vmem:[#allocation2 + $0x30] sm:$0xff] }
 0x761   : > { %3922 = vst.msk [vmem:[#allocation2 + $0x48] sm:$0xff] %vm1561_vm4, %v3888_v9  ;;  %4453 = vrot.lane.b32.xlu0 %v8854_v14, %s6538_s18  ;;  %4459 = vrot.lane.b32.xlu2 %v8865_v57, %s6538_s18 }
 0x767   : > { %v3890_v37 = vpop.permute.xlu2 %3889 }
 0x768   : > { %v8882_v12 = vsel %vm1540_vm3, %v3888_v9, %v3890_v37  ;;  %v3872_v38 = vpop.permute.xlu1 %3871  ;;  %4145 = vrot.lane.b32.xlu1 %v8879_v35, %s6528_s8  ;;  %v8907_v50 = vld [vmem:[#allocation2 + $0x48] sm:$0xff] }
 0x769   : > { %3923 = vst [vmem:[#allocation2 + $0x50] sm:$0xff] %v8882_v12  ;;  %v8888_v24 = vsel %vm1540_vm3, %v3870_v46, %v3872_v38  ;;  %4213 = vrot.lane.b32.xlu0 %v8854_v14, %s6533_s13  ;;  %4299 = vrot.lane.b32.xlu2 %v8865_v57, %s6547_s7 }
 0x76a   : > { %3914 = vst [vmem:[#allocation2 + $0x8] sm:$0xff] %v8888_v24 }
 0x76f   : > { %v3874_v27 = vpop.permute.xlu2 %3873 }
 0x770   : > { %v3894_v13 = vsel %vm1540_vm3, %v3872_v38, %v3874_v27  ;;  %v3878_v60 = vpop.permute.xlu1 %3877  ;;  %4465 = vrot.lane.b32.xlu1 %v8879_v35, %s6538_s18 }
 0x771   : > { %3915 = vst.msk [vmem:[#allocation2 + $0x10] sm:$0xff] %vm1564_vm5, %v3894_v13  ;;  %v8900_v40 = vsel %vm1540_vm3, %v3876_v30, %v3878_v60  ;;  %3979 = vrot.lane.b32.xlu0 %v8865_v57, %s6524_s4  ;;  %4065 = vrot.lane.b32.xlu2 %v8879_v35, %s6526_s30 }
 0x772   : > { %3917 = vst [vmem:[#allocation2 + $0x20] sm:$0xff] %v8900_v40 }
 0x777   : > { %v3880_v16 = vpop.permute.xlu2 %3879  ;;  %v3884_v18 = vpop.permute.xlu0 %3883 }
 0x778   : > { %v3896_v47 = vsel %vm1540_vm3, %v3878_v60, %v3880_v16  ;;  %v8911_v59 = vsel %vm1540_vm3, %v3882_v33, %v3884_v18  ;;  %4071 = vrot.lane.b32.xlu1 %v8907_v50, %s6526_s30  ;;  %v3927_v55 = vld [vmem:[#allocation2 + $0x10] sm:$0xff] }
 0x779   : > { %3918 = vst.msk [vmem:[#allocation2 + $0x28] sm:$0xff] %vm1564_vm5, %v3896_v47  ;;  %4059 = vrot.lane.b32.xlu0 %v8865_v57, %s6526_s30  ;;  %4385 = vrot.lane.b32.xlu2 %v8879_v35, %s6541_s21  ;;  %v9007_v26 = vld [vmem:[#allocation2 + $0x10] sm:$0xff] }
 0x77a   : > { %3920 = vst [vmem:[#allocation2 + $0x38] sm:$0xff] %v8911_v59 }
 0x77b   : > { %3939 = vst.msk [vmem:[#allocation3 + $0x10] sm:$0xff] %vm397_vm0, %v3927_v55 }
 0x780   : > { %4391 = vrot.lane.b32.xlu1 %v8907_v50, %s6541_s21  ;;  %v3930_v7 = vld [vmem:[#allocation2 + $0x28] sm:$0xff] }
 0x781   : > { %4379 = vrot.lane.b32.xlu0 %v8865_v57, %s6541_s21  ;;  %4225 = vrot.lane.b32.xlu2 %v8879_v35, %s6533_s13  ;;  %3942 = vst.msk [vmem:[#allocation3 + $0x28] sm:$0xff] %vm397_vm0, %v3930_v7  ;;  %v3954_v11 = vld [vmem:[#allocation2 + $0x28] sm:$0xff] }
 0x785   : > { %v3892_v3 = vpop.permute.xlu2 %3891 }
 0x786   : > { %v3900_v17 = vsel %vm1540_vm3, %v3890_v37, %v3892_v3 }
 0x787   : > { %3924 = vst.msk [vmem:[#allocation2 + $0x58] sm:$0xff] %vm1564_vm5, %v3900_v17 }
 0x788   : > { %4311 = vrot.lane.b32.xlu1 %v8907_v50, %s6547_s7 }
 0x789   : > { %3985 = vrot.lane.b32.xlu0 %v8879_v35, %s6524_s4  ;;  %4151 = vrot.lane.b32.xlu2 %v8907_v50, %s6528_s8 }
 0x78e   : > { %v3936_v36 = vld [vmem:[#allocation2 + $0x58] sm:$0xff] }
 0x78f   : > { %3948 = vst.msk [vmem:[#allocation3 + $0x58] sm:$0xff] %vm397_vm0, %v3936_v36  ;;  %v4440_v46 = vld [vmem:[#allocation2 + $0x58] sm:$0xff] }
 0x790   : > { %3975 = vrot.lane.b32.xlu1 %v8888_v24, %s6524_s4 }
 0x791   : > { %4305 = vrot.lane.b32.xlu0 %v8879_v35, %s6547_s7  ;;  %4055 = vrot.lane.b32.xlu2 %v8888_v24, %s6526_s30 }
 0x795   : > { %v3886_v39 = vpop.permute.xlu1 %3885 }
 0x796   : > { %v3898_v21 = vsel %vm1540_vm3, %v3884_v18, %v3886_v39 }
 0x797   : > { %3921 = vst.msk [vmem:[#allocation2 + $0x40] sm:$0xff] %vm1564_vm5, %v3898_v21 }
 0x798   : > { %4135 = vrot.lane.b32.xlu1 %v8888_v24, %s6528_s8 }
 0x799   : > { %3991 = vrot.lane.b32.xlu0 %v8907_v50, %s6524_s4  ;;  %4295 = vrot.lane.b32.xlu2 %v8888_v24, %s6547_s7 }
 0x79e   : > { %v3933_v29 = vld [vmem:[#allocation2 + $0x40] sm:$0xff] }
 0x79f   : > { %3945 = vst.msk [vmem:[#allocation3 + $0x40] sm:$0xff] %vm397_vm0, %v3933_v29  ;;  %v3957_v49 = vld [vmem:[#allocation2 + $0x40] sm:$0xff] }
 0x7a0   : > { %4455 = vrot.lane.b32.xlu1 %v8888_v24, %s6538_s18 }
 0x7a1   : > { %4471 = vrot.lane.b32.xlu0 %v8907_v50, %s6538_s18  ;;  %4221 = vrot.lane.b32.xlu2 %v8900_v40, %s6533_s13 }
 0x7a8   : > { %4215 = vrot.lane.b32.xlu1 %v8888_v24, %s6533_s13 }
 0x7a9   : > { %4231 = vrot.lane.b32.xlu0 %v8907_v50, %s6533_s13  ;;  %4147 = vrot.lane.b32.xlu2 %v8911_v59, %s6528_s8 }
 0x7aa   : > { %v8965_v15 = vpop.permute.xlu2 %4373 }
 0x7b0   : > { %3981 = vrot.lane.b32.xlu1 %v8900_v40, %s6524_s4 }
 0x7b1   : > { %4375 = vrot.lane.b32.xlu0 %v8888_v24, %s6541_s21  ;;  %4467 = vrot.lane.b32.xlu2 %v8911_v59, %s6538_s18 }
 0x7b3   : > { %v8973_v34 = vpop.permute.xlu2 %4139 }
 0x7b8   : > { %4061 = vrot.lane.b32.xlu1 %v8900_v40, %s6526_s30 }
 0x7b9   : > { %4073 = vrot.lane.b32.xlu2 %v8882_v12, %s6526_s30  ;;  %4141 = vrot.lane.b32.xlu0 %v8900_v40, %s6528_s8 }
 0x7bb   : > { %v8981_v63 = vpop.permute.xlu2 %4459 }
 0x7c0   : > { %4381 = vrot.lane.b32.xlu1 %v8900_v40, %s6541_s21 }
 0x7c1   : > { %4393 = vrot.lane.b32.xlu2 %v8882_v12, %s6541_s21  ;;  %4461 = vrot.lane.b32.xlu0 %v8900_v40, %s6538_s18 }
 0x7c2   : > { %v8989_v42 = vpop.permute.xlu1 %4053 }
 0x7c3   : > { %v8991_v28 = vpop.permute.xlu2 %4299  ;;  %v8993_v2 = vpop.permute.xlu0 %3973 }
 0x7c8   : > { %3987 = vrot.lane.b32.xlu1 %v8911_v59, %s6524_s4 }
 0x7c9   : > { %4313 = vrot.lane.b32.xlu2 %v8882_v12, %s6547_s7  ;;  %4301 = vrot.lane.b32.xlu0 %v8900_v40, %s6547_s7 }
 0x7ca   : > { %v9001_v19 = vpop.permute.xlu1 %4293 }
 0x7cb   : > { %v9003_v0 = vpop.permute.xlu2 %4065  ;;  %v9005_v25 = vpop.permute.xlu0 %4133 }
 0x7d0   : > { %4307 = vrot.lane.b32.xlu1 %v8911_v59, %s6547_s7 }
 0x7d1   : > { %3977 = vrot.lane.b32.xlu2 %v9007_v26, %s6524_s4  ;;  %4067 = vrot.lane.b32.xlu0 %v8911_v59, %s6526_s30 }
 0x7d2   : > { %v9015_v5 = vpop.permute.xlu1 %4219 }
 0x7d3   : > { %v9017_v22 = vpop.permute.xlu2 %4385  ;;  %v9019_v8 = vpop.permute.xlu0 %4453 }
 0x7d8   : > { %3993 = vrot.lane.b32.xlu1 %v8882_v12, %s6524_s4 }
 0x7d9   : > { %3983 = vrot.lane.b32.xlu2 %v3954_v11, %s6524_s4  ;;  %4387 = vrot.lane.b32.xlu0 %v8911_v59, %s6541_s21 }
 0x7da   : > { %v9026_v45 = vpop.permute.xlu1 %4145 }
 0x7db   : > { %v9028_v43 = vpop.permute.xlu2 %4225  ;;  %v9030_v23 = vpop.permute.xlu0 %4213 }
 0x7e0   : > { %4473 = vrot.lane.b32.xlu1 %v8882_v12, %s6538_s18 }
 0x7e1   : > { %4463 = vrot.lane.b32.xlu2 %v3954_v11, %s6538_s18  ;;  %4227 = vrot.lane.b32.xlu0 %v8911_v59, %s6533_s13 }
 0x7e2   : > { %v9037_v52 = vpop.permute.xlu1 %4465 }
 0x7e3   : > { %v9039_v1 = vpop.permute.xlu0 %3979  ;;  %v9041_v20 = vpop.permute.xlu2 %4151 }
 0x7e8   : > { %4233 = vrot.lane.b32.xlu1 %v8882_v12, %s6533_s13 }
 0x7e9   : > { %4143 = vrot.lane.b32.xlu2 %v3954_v11, %s6528_s8  ;;  %4153 = vrot.lane.b32.xlu0 %v8882_v12, %s6528_s8 }
 0x7ea   : > { %v9048_v48 = vpop.permute.xlu1 %4071 }
 0x7eb   : > { %v9050_v58 = vpop.permute.xlu0 %4059  ;;  %v9052_v51 = vpop.permute.xlu2 %4055 }
 0x7f0   : > { %4553 = vrot.lane.b32.xlu1 %v8882_v12, %s6536_s16 }
 0x7f1   : > { %4377 = vrot.lane.b32.xlu0 %v9007_v26, %s6541_s21  ;;  %3989 = vrot.lane.b32.xlu2 %v3957_v49, %s6524_s4 }
 0x7f2   : > { %v9059_v41 = vpop.permute.xlu1 %4391 }
 0x7f3   : > { %v9061_v61 = vpop.permute.xlu0 %4379  ;;  %v9063_v6 = vpop.permute.xlu2 %4295 }
 0x7f8   : > { %4457 = vrot.lane.b32.xlu1 %v9007_v26, %s6538_s18 }
 0x7f9   : > { %4057 = vrot.lane.b32.xlu0 %v9007_v26, %s6526_s30  ;;  %4389 = vrot.lane.b32.xlu2 %v3957_v49, %s6541_s21 }
 0x7fa   : > { %v9070_v54 = vpop.permute.xlu1 %4311 }
 0x7fb   : > { %v9072_v62 = vpop.permute.xlu0 %3985  ;;  %v9074_v4 = vpop.permute.xlu2 %4221 }
 0x800   : > { %4137 = vrot.lane.b32.xlu1 %v9007_v26, %s6528_s8 }
 0x801   : > { %4303 = vrot.lane.b32.xlu0 %v3954_v11, %s6547_s7  ;;  %4069 = vrot.lane.b32.xlu2 %v3957_v49, %s6526_s30 }
 0x802   : > { %v9080_v10 = vpop.permute.xlu1 %3975 }
 0x803   : > { %v9082_v56 = vpop.permute.xlu0 %4305  ;;  %v9084_v31 = vpop.permute.xlu2 %4147 }
 0x808   : > { %4297 = vrot.lane.b32.xlu1 %v9007_v26, %s6547_s7 }
 0x809   : > { %4223 = vrot.lane.b32.xlu0 %v3954_v11, %s6533_s13  ;;  %4475 = vrot.lane.b32.xlu2 %v4440_v46, %s6538_s18 }
 0x80a   : > { %v9090_v30 = vpop.permute.xlu1 %4135 }
 0x80b   : > { %v9092_v33 = vpop.permute.xlu0 %3991  ;;  %v9094_v9 = vpop.permute.xlu2 %4467 }
 0x810   : > { %4383 = vrot.lane.b32.xlu1 %v3954_v11, %s6541_s21 }
 0x811   : > { %4469 = vrot.lane.b32.xlu0 %v3957_v49, %s6538_s18  ;;  %4549 = vrot.lane.b32.xlu2 %v3957_v49, %s6536_s16 }
 0x812   : > { %v9099_v37 = vpop.permute.xlu1 %4455 }
 0x813   : > { %v4472_v12 = vpop.permute.xlu0 %4471  ;;  %v9101_v38 = vpop.permute.xlu2 %4073 }
 0x818   : > { %4063 = vrot.lane.b32.xlu1 %v3954_v11, %s6526_s30 }
 0x819   : > { %4149 = vrot.lane.b32.xlu0 %v3957_v49, %s6528_s8  ;;  %4543 = vrot.lane.b32.xlu2 %v3954_v11, %s6536_s16 }
 0x81a   : > { %v9106_v27 = vpop.permute.xlu1 %4215 }
 0x81b   : > { %v9108_v13 = vpop.permute.xlu0 %4231  ;;  %v9110_v60 = vpop.permute.xlu2 %4393 }
 0x820   : > { %4309 = vrot.lane.b32.xlu1 %v3957_v49, %s6547_s7 }
 0x821   : > { %4229 = vrot.lane.b32.xlu0 %v3957_v49, %s6533_s13  ;;  %4315 = vrot.lane.b32.xlu2 %v4440_v46, %s6547_s7 }
 0x822   : > { %v9115_v16 = vpop.permute.xlu1 %3981 }
 0x823   : > { %v9117_v18 = vpop.permute.xlu0 %4375  ;;  %v9119_v47 = vpop.permute.xlu2 %4313 }
 0x828   : > { %4155 = vrot.lane.b32.xlu1 %v4440_v46, %s6528_s8 }
 0x829   : > { %4395 = vrot.lane.b32.xlu0 %v4440_v46, %s6541_s21  ;;  %3995 = vrot.lane.b32.xlu2 %v4440_v46, %s6524_s4 }
 0x82a   : > { %v9124_v55 = vpop.permute.xlu1 %4061 }
 0x82b   : > { %v9126_v7 = vpop.permute.xlu2 %3977  ;;  %v9128_v3 = vpop.permute.xlu0 %4141 }
 0x82c   : > { %10356 = vst [vmem:[#allocation8_spill] sm:$0xff] %v9126_v7 }
 0x82d   : > { %4019 = vst.msk [vmem:[#allocation3 + $0x70] sm:$0xff] %vm397_vm0, %v9126_v7 }
 0x830   : > { %4547 = vrot.lane.b32.xlu1 %v8911_v59, %s6536_s16 }
 0x831   : > { %4075 = vrot.lane.b32.xlu0 %v4440_v46, %s6526_s30  ;;  %4235 = vrot.lane.b32.xlu2 %v4440_v46, %s6533_s13 }
 0x832   : > { %v9136_v17 = vpop.permute.xlu1 %4381 }
 0x833   : > { %v9138_v36 = vpop.permute.xlu2 %3983  ;;  %v9140_v39 = vpop.permute.xlu0 %4461 }
 0x834   : > { %10357 = vst [vmem:[#allocation17_spill] sm:$0xff] %v9138_v36 }
 0x835   : > { %4022 = vst.msk [vmem:[#allocation3 + $0x88] sm:$0xff] %vm397_vm0, %v9138_v36 }
 0x838   : > { %4541 = vrot.lane.b32.xlu1 %v8900_v40, %s6536_s16 }
 0x839   : > { %4217 = vrot.lane.b32.xlu0 %v9007_v26, %s6533_s13  ;;  %4555 = vrot.lane.b32.xlu2 %v4440_v46, %s6536_s16 }
 0x83a   : > { %v9149_v59 = vpop.permute.xlu1 %3987 }
 0x83b   : > { %v9151_v21 = vpop.permute.xlu2 %4463  ;;  %v9153_v29 = vpop.permute.xlu0 %4301 }
 0x83c   : > { %10358 = vst [vmem:[#allocation13_spill] sm:$0xff] %v9151_v21 }
 0x83d   : > { %4502 = vst.msk [vmem:[#allocation3 + $0x2c8] sm:$0xff] %vm397_vm0, %v9151_v21  ;;  %v4481_v21 = vsel %vm942_vm15, %v9037_v52, %v9094_v9  ;;  %v4403_v52 = vsel %vm861_vm11, %v9059_v41, %v9110_v60  ;;  %v4161_v41 = vsel %vm618_vm2, %v9026_v45, %v9084_v31  ;;  %v4157_v45 = vsel %vm618_vm2, %v9005_v25, %v9090_v30 }
 0x840   : > { %4537 = vrot.lane.b32.xlu1 %v9007_v26, %s6536_s16 }
 0x841   : > { %4535 = vrot.lane.b32.xlu0 %v8888_v24, %s6536_s16  ;;  %4551 = vrot.lane.b32.xlu2 %v8907_v50, %s6536_s16 }
 0x842   : > { %v9163_v40 = vpop.permute.xlu1 %4307 }
 0x843   : > { %v9165_v11 = vpop.permute.xlu2 %4143  ;;  %v9167_v49 = vpop.permute.xlu0 %4067  ;;  %v4321_v25 = vsel %vm780_vm12, %v9082_v56, %v9163_v40  ;;  %v4317_v56 = vsel %vm780_vm12, %v9001_v19, %v9063_v6 }
 0x844   : > { %10359 = vst [vmem:[#allocation15_spill] sm:$0xff] %v9165_v11 }
 0x845   : > { %4182 = vst.msk [vmem:[#allocation3 + $0x148] sm:$0xff] %vm397_vm0, %v9165_v11 }
 0x848   : > { %4539 = vrot.lane.b32.xlu1 %v8865_v57, %s6536_s16 }
 0x849   : > { %4545 = vrot.lane.b32.xlu0 %v8879_v35, %s6536_s16  ;;  %4533 = vrot.lane.b32.xlu2 %v8854_v14, %s6536_s16 }
 0x84a   : > { %v9177_v24 = vpop.permute.xlu1 %3993 }
 0x84b   : > { %v9179_v26 = vpop.permute.xlu0 %4387  ;;  %v9181_v46 = vpop.permute.xlu2 %3989  ;;  %v4003_v19 = vsel %vm456_vm1, %v9092_v33, %v9177_v24  ;;  %v4239_v33 = vsel %vm699_vm14, %v9015_v5, %v9074_v4  ;;  %v3997_v5 = vsel %vm456_vm1, %v8993_v2, %v9080_v10  ;;  %v9338_v2 = vld [vmem:[%s10267_s1 + $0x140] sm:$0xff] }
 0x84c   : > { %10360 = vst [vmem:[#allocation12_spill] sm:$0xff] %v9181_v46 }
 0x84d   : > { %4025 = vst.msk [vmem:[#allocation3 + $0xa0] sm:$0xff] %vm397_vm0, %v9181_v46 }
 0x850   : > { %4727 = vperm.xlu1 %6502, %v6282_v32   ;;  %v4477_v32 = vsel %vm942_vm15, %v9019_v8, %v9099_v37  ;;  %v4401_v8 = vsel %vm861_vm11, %v9017_v22, %v9179_v26  ;;  %v4397_v22 = vsel %vm861_vm11, %v8965_v15, %v9117_v18  ;;  %v4083_v15 = vsel %vm537_vm10, %v9048_v48, %v9101_v38 }
 0x851   : > { %4732 = vperm.xlu0 %6501, %v6283_v53   ;;  %4722 = vperm.xlu2 %6500, %v6281_v44   ;;  %v6280_v44 = vld [vmem:[%s10268_s2 + $0x60] sm:$0xff]  ;;  %v4479_v53 = vsel %vm942_vm15, %v8981_v63, %v9140_v39  ;;  %v4319_v48 = vsel %vm780_vm12, %v8991_v28, %v9153_v29 }
 0x852   : > { %v9194_v7 = vpop.permute.xlu1 %4473 }
 0x853   : > { %v9196_v36 = vpop.permute.xlu0 %4227  ;;  %v9198_v46 = vpop.permute.xlu2 %4389  ;;  %v4483_v11 = vsel %vm942_vm15, %v4472_v12, %v9194_v7 }
 0x854   : > { %4425 = vst.msk [vmem:[#allocation3 + $0x280] sm:$0xff] %vm397_vm0, %v9198_v46  ;;  %4776 = vmatpush.msrb.mxu2 %v4483_v11 }
 0x856   : > { %4777 = vmatpush.msrb.mxu2 %v4481_v21 }
 0x858   : > { %4778 = vmatpush.msrb.mxu2 %v4479_v53 }
 0x859   : > { %4717 = vperm.xlu0 %6501, %v6280_v44   ;;  %v4399_v44 = vsel %vm861_vm11, %v9061_v61, %v9136_v17  ;;  %v4323_v61 = vsel %vm780_vm12, %v9070_v54, %v9119_v47  ;;  %v4081_v54 = vsel %vm537_vm10, %v9003_v0, %v9167_v49  ;;  %v4077_v0 = vsel %vm537_vm10, %v8989_v42, %v9052_v51 }
 0x85a   : > { %v9216_v12 = vpop.permute.xlu1 %4233  ;;  %4779 = vmatpush.msrb.mxu2 %v4477_v32  ;;  %v4241_v42 = vsel %vm699_vm14, %v9028_v43, %v9196_v36  ;;  %v9312_v43 = vld [vmem:[%s10267_s1 + $0x128] sm:$0xff] }
 0x85b   : > { %v9221_v11 = vpop.permute.xlu0 %4153  ;;  %v9223_v21 = vpop.permute.xlu2 %4069  ;;  %v4243_v28 = vsel %vm699_vm14, %v9108_v13, %v9216_v12  ;;  %v4001_v13 = vsel %vm456_vm1, %v9072_v62, %v9149_v59  ;;  %v4237_v62 = vsel %vm699_vm14, %v9030_v23, %v9106_v27  ;;  %v9344_v23 = vld [vmem:[%s10267_s1 + $0x120] sm:$0xff] }
 0x85c   : > { %v4163_v63 = vsel %vm618_vm2, %v9041_v20, %v9221_v11  ;;  %4105 = vst.msk [vmem:[#allocation3 + $0x100] sm:$0xff] %vm397_vm0, %v9223_v21  ;;  %4780 = vmatpush.msrb.mxu2 %v4403_v52  ;;  %v4159_v20 = vsel %vm618_vm2, %v8973_v34, %v9128_v3  ;;  %v4079_v52 = vsel %vm537_vm10, %v9050_v58, %v9124_v55 }
 0x85d   : > { %4747 = vmatpush.msra.mxu3 %v4163_v63 }
 0x85e   : > { %4781 = vmatpush.msrb.mxu2 %v4401_v8 }
 0x85f   : > { %4748 = vmatpush.msra.mxu3 %v4161_v41  ;;  %v3999_v41 = vsel %vm456_vm1, %v9039_v1, %v9115_v16 }
 0x860   : > { %4782 = vmatpush.msrb.mxu2 %v4399_v44 }
 0x861   : > { %4749 = vmatpush.msra.mxu3 %v4159_v20 }
 0x862   : > { %v9248_v53 = vpop.permute.xlu1 %4553  ;;  %4783 = vmatpush.msrb.mxu2 %v4397_v22 }
 0x863   : > { %v9253_v32 = vpop.permute.xlu0 %4377  ;;  %v4476_v34 = vpop.permute.xlu2 %4475  ;;  %4750 = vmatpush.msra.mxu3 %v4157_v45 }
 0x864   : > { %4419 = vst.msk [vmem:[#allocation3 + $0x250] sm:$0xff] %vm397_vm0, %v9253_v32  ;;  %4784 = vmatpush.msrb.mxu2 %v4323_v61 }
 0x865   : > { %4508 = vst.msk [vmem:[#allocation3 + $0x2f8] sm:$0xff] %vm397_vm0, %v4476_v34  ;;  %4751 = vmatpush.msra.mxu3 %v4083_v15 }
 0x866   : > { %4785 = vmatpush.msrb.mxu2 %v4321_v25  ;;  %v10361_v25 = vld [vmem:[#allocation13_spill] sm:$0xff] }
 0x867   : > { %4752 = vmatpush.msra.mxu3 %v4081_v54  ;;  %v4480_v54 = vsel %vm942_vm15, %v9140_v39, %v10361_v25 }
 0x868   : > { %4786 = vmatpush.msrb.mxu2 %v4319_v48 }
 0x869   : > { %4753 = vmatpush.msra.mxu3 %v4079_v52  ;;  %v9397_v52 = vld [vmem:[%s10267_s1 + $0x150] sm:$0xff] }
 0x86a   : > { %v9279_v63 = vpop.permute.xlu1 %4457  ;;  %4787 = vmatpush.msrb.mxu2 %v4317_v56 }
 0x86b   : > { %v9284_v8 = vpop.permute.xlu0 %4057  ;;  %v9286_v58 = vpop.permute.xlu2 %4549  ;;  %4499 = vst.msk [vmem:[#allocation3 + $0x2b0] sm:$0xff] %vm397_vm0, %v9279_v63  ;;  %4754 = vmatpush.msra.mxu3 %v4077_v0  ;;  %v4478_v48 = vsel %vm942_vm15, %v9099_v37, %v9279_v63  ;;  %v9410_v37 = vld [vmem:[%s10267_s1 + $0x168] sm:$0xff] }
 0x86c   : > { %4099 = vst.msk [vmem:[#allocation3 + $0xd0] sm:$0xff] %vm397_vm0, %v9284_v8  ;;  %4788 = vmatpush.msrb.mxu2 %v4243_v28 }
 0x86d   : > { %4585 = vst.msk [vmem:[#allocation3 + $0x340] sm:$0xff] %vm397_vm0, %v9286_v58  ;;  %4755 = vmatpush.msra.mxu3 %v4003_v19 }
 0x86e   : > { %4789 = vmatpush.msrb.mxu2 %v4241_v42 }
 0x86f   : > { %4756 = vmatpush.msra.mxu3 %v4001_v13 }
 0x870   : > { %4790 = vmatpush.msrb.mxu2 %v4239_v33 }
 0x871   : > { %4757 = vmatpush.msra.mxu3 %v3999_v41 }
 0x872   : > { %v9320_v44 = vpop.permute.xlu1 %4137  ;;  %4791 = vmatpush.msrb.mxu2 %v4237_v62 }
 0x873   : > { %v9322_v20 = vpop.permute.xlu0 %4303  ;;  %v9324_v1 = vpop.permute.xlu2 %4543  ;;  %4179 = vst.msk [vmem:[#allocation3 + $0x130] sm:$0xff] %vm397_vm0, %v9320_v44  ;;  %4758 = vmatpush.msra.mxu3 %v3997_v5  ;;  %4792 = vmatmul.f32.vlgmr.msrb.gmra.mxu2 %v9312_v43 }
 0x874   : > { %4342 = vst.msk [vmem:[#allocation3 + $0x208] sm:$0xff] %vm397_vm0, %v9322_v20 }
 0x875   : > { %4582 = vst.msk [vmem:[#allocation3 + $0x328] sm:$0xff] %vm397_vm0, %v9324_v1  ;;  %4759 = vmatpush.msra.mxu3 %v8907_v50 }
 0x877   : > { %4760 = vmatpush.msra.mxu3 %v8879_v35  ;;  %v9366_v35 = vld [vmem:[%s10267_s1 + $0x158] sm:$0xff] }
 0x879   : > { %4761 = vmatpush.msra.mxu3 %v8865_v57  ;;  %v4484_v57 = vsel %vm942_vm15, %v9194_v7, %v4476_v34 }
 0x87a   : > { %v9346_v22 = vpop.permute.xlu1 %4297 }
 0x87b   : > { %v9348_v45 = vpop.permute.xlu0 %4223  ;;  %v9350_v61 = vpop.permute.xlu2 %4315  ;;  %4339 = vst.msk [vmem:[#allocation3 + $0x1f0] sm:$0xff] %vm397_vm0, %v9346_v22  ;;  %4762 = vmatpush.msra.mxu3 %v8854_v14  ;;  %4795 = vmatmul.f32.gmra.mxu2 %v9338_v2  ;;  %v9371_v14 = vld [vmem:[%s10267_s1 + $0x138] sm:$0xff] }
 0x87c   : > { %4262 = vst.msk [vmem:[#allocation3 + $0x1a8] sm:$0xff] %vm397_vm0, %v9348_v45  ;;  %4763 = vmatmul.f32.vlgmr.msra.gmra.mxu3 %v9344_v23 }
 0x87d   : > { %4348 = vst.msk [vmem:[#allocation3 + $0x238] sm:$0xff] %vm397_vm0, %v9350_v61  ;;  %4863 = vmatpush.msrb.mxu3 %v4484_v57 }
 0x882   : > { %v4384_v50 = vpop.permute.xlu1 %4383 }
 0x883   : > { %v4470_v7 = vpop.permute.xlu0 %4469  ;;  %v9373_v34 = vpop.permute.xlu2 %3995  ;;  %4422 = vst.msk [vmem:[#allocation3 + $0x268] sm:$0xff] %vm397_vm0, %v4384_v50  ;;  %4798 = vmatmul.f32.gmra.mxu2 %v9366_v35  ;;  %v4400_v25 = vsel %vm861_vm11, %v9136_v17, %v4384_v50  ;;  %v4324_v17 = vsel %vm780_vm12, %v9119_v47, %v9350_v61  ;;  %v4320_v47 = vsel %vm780_vm12, %v9153_v29, %v9322_v20  ;;  %v3935_v50 = vld [vmem:[#allocation2 + $0x50] sm:$0xff] }
 0x884   : > { %v4482_v15 = vsel %vm942_vm15, %v9094_v9, %v4470_v7  ;;  %4505 = vst.msk [vmem:[#allocation3 + $0x2e0] sm:$0xff] %vm397_vm0, %v4470_v7  ;;  %4766 = vmatmul.f32.gmra.mxu3 %v9371_v14  ;;  %v9392_v9 = vld [vmem:[%s10267_s1 + $0x170] sm:$0xff] }
 0x885   : > { %4028 = vst.msk [vmem:[#allocation3 + $0xb8] sm:$0xff] %vm397_vm0, %v9373_v34  ;;  %4864 = vmatpush.msrb.mxu3 %v4482_v15  ;;  %v10362_v15 = vld [vmem:[#allocation15_spill] sm:$0xff] }
 0x887   : > { %4865 = vmatpush.msrb.mxu3 %v4480_v54  ;;  %v3929_v54 = vld [vmem:[#allocation2 + $0x20] sm:$0xff] }
 0x889   : > { %4866 = vmatpush.msrb.mxu3 %v4478_v48 }
 0x88a   : > { %v4064_v56 = vpop.permute.xlu1 %4063 }
 0x88b   : > { %v4150_v0 = vpop.permute.xlu0 %4149  ;;  %v9399_v28 = vpop.permute.xlu2 %4235  ;;  %4102 = vst.msk [vmem:[#allocation3 + $0xe8] sm:$0xff] %vm397_vm0, %v4064_v56  ;;  %4801 = vmatmul.f32.gmra.mxu2 %v9392_v9 }
 0x88c   : > { %4185 = vst.msk [vmem:[#allocation3 + $0x160] sm:$0xff] %vm397_vm0, %v4150_v0  ;;  %4769 = vmatmul.f32.gmra.mxu3 %v9397_v52  ;;  %v4162_v7 = vsel %vm618_vm2, %v9084_v31, %v4150_v0  ;;  %v4158_v31 = vsel %vm618_vm2, %v9090_v30, %v9320_v44  ;;  %v4244_v29 = vsel %vm699_vm14, %v9216_v12, %v9399_v28 }
 0x88d   : > { %4268 = vst.msk [vmem:[#allocation3 + $0x1d8] sm:$0xff] %vm397_vm0, %v9399_v28  ;;  %v4240_v12 = vsel %vm699_vm14, %v9074_v4, %v9348_v45  ;;  %v9502_v4 = vld [vmem:[%s10267_s1 + $0x130] sm:$0xff] }
 0x892   : > { %v4310_v39 = vpop.permute.xlu1 %4309 }
 0x893   : > { %v9412_v63 = vpop.permute.xlu0 %4229  ;;  %v4556_v19 = vpop.permute.xlu2 %4555  ;;  %4345 = vst.msk [vmem:[#allocation3 + $0x220] sm:$0xff] %vm397_vm0, %v4310_v39 }
 0x894   : > { %4265 = vst.msk [vmem:[#allocation3 + $0x1c0] sm:$0xff] %vm397_vm0, %v9412_v63  ;;  %v4564_v42 = vsel %vm1023_vm13, %v9248_v53, %v4556_v19  ;;  %4772 = vmatmul.f32.gmra.mxu3 %v9410_v37 }
 0x895   : > { %4588 = vst.msk [vmem:[#allocation3 + $0x358] sm:$0xff] %vm397_vm0, %v4556_v19  ;;  %4904 = vmatpush.msra.mxu2 %v4564_v42  ;;  %v4697_v19 = vld [vmem:[#allocation3 + $0x2f8] sm:$0xff] }
 0x89a   : > { %v4156_v13 = vpop.permute.xlu1 %4155 }
 0x89b   : > { %v4396_v33 = vpop.permute.xlu0 %4395  ;;  %v4552_v41 = vpop.permute.xlu2 %4551  ;;  %v4164_v62 = vsel %vm618_vm2, %v9221_v11, %v4156_v13  ;;  %4188 = vst.msk [vmem:[#allocation3 + $0x178] sm:$0xff] %vm397_vm0, %v4156_v13  ;;  %v4402_v11 = vsel %vm861_vm11, %v9179_v26, %v9198_v46  ;;  %v4694_v13 = vld [vmem:[#allocation3 + $0x2e0] sm:$0xff] }
 0x89c   : > { %v4404_v5 = vsel %vm861_vm11, %v9110_v60, %v4396_v33  ;;  %4428 = vst.msk [vmem:[#allocation3 + $0x298] sm:$0xff] %vm397_vm0, %v4396_v33  ;;  %v4563_v57 = vsel %vm1023_vm13, %v4552_v41, %v9248_v53  ;;  %4834 = vmatpush.msrb.mxu1 %v4164_v62  ;;  %v4160_v60 = vsel %vm618_vm2, %v9128_v3, %v10362_v15  ;;  %v4691_v62 = vld [vmem:[#allocation3 + $0x2c8] sm:$0xff] }
 0x89d   : > { %4817 = vmatpush.msrb.mxu0 %v4563_v57  ;;  %4867 = vmatpush.msrb.mxu3 %v4404_v5  ;;  %v4398_v53 = vsel %vm861_vm11, %v9117_v18, %v9253_v32  ;;  %v4082_v18 = vsel %vm537_vm10, %v9167_v49, %v9223_v21  ;;  %v4322_v32 = vsel %vm780_vm12, %v9163_v40, %v4310_v39  ;;  %v9511_v39 = vld [vmem:[%s10267_s1 + $0x148] sm:$0xff]  ;;  %v4688_v57 = vld [vmem:[#allocation3 + $0x2b0] sm:$0xff] }
 0x89e   : > { %4835 = vmatpush.msrb.mxu1 %v4162_v7  ;;  %v4318_v49 = vsel %vm780_vm12, %v9063_v6, %v9346_v22  ;;  %v9526_v7 = vld [vmem:[%s10267_s1 + $0x160] sm:$0xff] }
 0x89f   : > { %4868 = vmatpush.msrb.mxu3 %v4402_v11  ;;  %v4646_v11 = vld [vmem:[#allocation3 + $0x160] sm:$0xff] }
 0x8a0   : > { %4836 = vmatpush.msrb.mxu1 %v4160_v60  ;;  %v4643_v60 = vld [vmem:[#allocation3 + $0x148] sm:$0xff] }
 0x8a1   : > { %4869 = vmatpush.msrb.mxu3 %v4400_v25  ;;  %v4682_v25 = vld [vmem:[#allocation3 + $0x280] sm:$0xff] }
 0x8a2   : > { %v9445_v26 = vpop.permute.xlu1 %4547  ;;  %4837 = vmatpush.msrb.mxu1 %v4158_v31  ;;  %v4649_v5 = vld [vmem:[#allocation3 + $0x178] sm:$0xff]  ;;  %v4640_v31 = vld [vmem:[#allocation3 + $0x130] sm:$0xff] }
 0x8a3   : > { %v4076_v46 = vpop.permute.xlu0 %4075  ;;  %v4562_v3 = vsel %vm1023_vm13, %v9445_v26, %v9286_v58  ;;  %4870 = vmatpush.msrb.mxu3 %v4398_v53  ;;  %v4078_v58 = vsel %vm537_vm10, %v9052_v51, %v9284_v8  ;;  %v10363_v51 = vld [vmem:[#allocation12_spill] sm:$0xff]  ;;  %v4242_v8 = vsel %vm699_vm14, %v9196_v36, %v9412_v63  ;;  %v4534_v33 = vpop.permute.xlu2 %4533  ;;  %v4679_v53 = vld [vmem:[#allocation3 + $0x268] sm:$0xff] }
 0x8a4   : > { %v4084_v30 = vsel %vm537_vm10, %v9101_v38, %v4076_v46  ;;  %4108 = vst.msk [vmem:[#allocation3 + $0x118] sm:$0xff] %vm397_vm0, %v4076_v46  ;;  %4905 = vmatpush.msra.mxu2 %v4562_v3  ;;  %v4080_v38 = vsel %vm537_vm10, %v9124_v55, %v4064_v56  ;;  %v4004_v55 = vsel %vm456_vm1, %v9177_v24, %v9373_v34  ;;  %v10364_v24 = vld [vmem:[#allocation17_spill] sm:$0xff]  ;;  %v4685_v15 = vld [vmem:[#allocation3 + $0x298] sm:$0xff]  ;;  %v4676_v46 = vld [vmem:[#allocation3 + $0x250] sm:$0xff] }
 0x8a5   : > { %4838 = vmatpush.msrb.mxu1 %v4084_v30  ;;  %4871 = vmatpush.msrb.mxu3 %v4324_v17  ;;  %v4002_v6 = vsel %vm456_vm1, %v9149_v59, %v10363_v51  ;;  %v4000_v20 = vsel %vm456_vm1, %v9115_v16, %v10364_v24  ;;  %v4709_v16 = vld [vmem:[#allocation3 + $0x358] sm:$0xff]  ;;  %v4703_v34 = vld [vmem:[#allocation3 + $0x328] sm:$0xff]  ;;  %v6279_v3 = vld [vmem:[%s10267_s1 + $0x178] sm:$0xff] }
 0x8a6   : > { %v3926_v56 = vld [vmem:[#allocation2 + $0x8] sm:$0xff]  ;;  %v4634_v17 = vld [vmem:[#allocation3 + $0x100] sm:$0xff]  ;;  %v4673_v30 = vld [vmem:[#allocation3 + $0x238] sm:$0xff] }
 0x8a7   : > { %4839 = vmatpush.msrb.mxu1 %v4082_v18  ;;  %4872 = vmatpush.msrb.mxu3 %v4322_v32  ;;  %v4631_v18 = vld [vmem:[#allocation3 + $0xe8] sm:$0xff]  ;;  %v4670_v32 = vld [vmem:[#allocation3 + $0x220] sm:$0xff] }
 0x8a8   : > { %v4655_v51 = vld [vmem:[#allocation3 + $0x1a8] sm:$0xff]  ;;  %v4610_v24 = vld [vmem:[#allocation3 + $0x40] sm:$0xff] }
 0x8a9   : > { %4840 = vmatpush.msrb.mxu1 %v4080_v38  ;;  %4873 = vmatpush.msrb.mxu3 %v4320_v47  ;;  %v4628_v47 = vld [vmem:[#allocation3 + $0xd0] sm:$0xff]  ;;  %v4667_v38 = vld [vmem:[#allocation3 + $0x208] sm:$0xff] }
 0x8aa   : > { %v4542_v40 = vpop.permute.xlu1 %4541 }
 0x8ab   : > { %v4218_v21 = vpop.permute.xlu0 %4217  ;;  %v4560_v44 = vsel %vm1023_vm13, %v4542_v40, %v9324_v1  ;;  %4841 = vmatpush.msrb.mxu1 %v4078_v58  ;;  %4874 = vmatpush.msrb.mxu3 %v4318_v49  ;;  %v10365_v1 = vld [vmem:[#allocation8_spill] sm:$0xff]  ;;  %v4664_v49 = vld [vmem:[#allocation3 + $0x1f0] sm:$0xff] }
 0x8ac   : > { %4259 = vst.msk [vmem:[#allocation3 + $0x190] sm:$0xff] %vm397_vm0, %v4218_v21  ;;  %4906 = vmatpush.msra.mxu2 %v4560_v44  ;;  %v3998_v59 = vsel %vm456_vm1, %v9080_v10, %v10365_v1  ;;  %v4238_v22 = vsel %vm699_vm14, %v9106_v27, %v4218_v21  ;;  %v4706_v10 = vld [vmem:[#allocation3 + $0x340] sm:$0xff]  ;;  %v3932_v27 = vld [vmem:[#allocation2 + $0x38] sm:$0xff]  ;;  %v4619_v44 = vld [vmem:[#allocation3 + $0x88] sm:$0xff] }
 0x8ad   : > { %4842 = vmatpush.msrb.mxu1 %v4004_v55  ;;  %4875 = vmatpush.msrb.mxu3 %v4244_v29  ;;  %v4625_v58 = vld [vmem:[#allocation3 + $0xb8] sm:$0xff]  ;;  %v4658_v55 = vld [vmem:[#allocation3 + $0x1c0] sm:$0xff]  ;;  %v4616_v29 = vld [vmem:[#allocation3 + $0x70] sm:$0xff] }
 0x8ae   : > { %v4661_v21 = vld [vmem:[#allocation3 + $0x1d8] sm:$0xff] }
 0x8af   : > { %4843 = vmatpush.msrb.mxu1 %v4002_v6  ;;  %4876 = vmatpush.msrb.mxu3 %v4242_v8  ;;  %v4613_v6 = vld [vmem:[#allocation3 + $0x58] sm:$0xff] }
 0x8b1   : > { %4844 = vmatpush.msrb.mxu1 %v4000_v20  ;;  %4877 = vmatpush.msrb.mxu3 %v4240_v12  ;;  %v4607_v20 = vld [vmem:[#allocation3 + $0x28] sm:$0xff]  ;;  %v4604_v12 = vld [vmem:[#allocation3 + $0x10] sm:$0xff] }
 0x8b2   : > { %v4538_v36 = vpop.permute.xlu1 %4537 }
 0x8b3   : > { %v4536_v61 = vpop.permute.xlu0 %4535  ;;  %4579 = vst.msk [vmem:[#allocation3 + $0x310] sm:$0xff] %vm397_vm0, %v4538_v36  ;;  %4845 = vmatpush.msrb.mxu1 %v3998_v59  ;;  %4878 = vmatpush.msrb.mxu3 %v4238_v22  ;;  %v4652_v8 = vld [vmem:[#allocation3 + $0x190] sm:$0xff] }
 0x8b4   : > { %v4558_v45 = vsel %vm1023_vm13, %v4536_v61, %v4538_v36  ;;  %4879 = vmatmul.f32.vlgmr.msrb.gmra.mxu3 %v9312_v43  ;;  %v4557_v41 = vsel %vm1023_vm13, %v4534_v33, %v4536_v61 }
 0x8b5   : > { %4991 = vmatpush.msra.mxu3 %v4709_v16  ;;  %4846 = vmatpush.msrb.mxu1 %v3935_v50 }
 0x8b6   : > { %4907 = vmatpush.msra.mxu2 %v4558_v45 }
 0x8b7   : > { %4992 = vmatpush.msra.mxu3 %v4706_v10  ;;  %6288 = vmatmul.msk.f32.vlgmr.msra.gmra.mxu2 %vm397_vm0, %v9502_v4 }
 0x8b8   : > { %4847 = vmatpush.msrb.mxu1 %v3932_v27 }
 0x8b9   : > { %4993 = vmatpush.msra.mxu3 %v4703_v34 }
 0x8ba   : > { %4848 = vmatpush.msrb.mxu1 %v3929_v54  ;;  %v4700_v48 = vld [vmem:[#allocation3 + $0x310] sm:$0xff]  ;;  %v4540_v28 = vpop.permute.xlu1 %4539 }
 0x8bb   : > { %v4546_v0 = vpop.permute.xlu0 %4545  ;;  %4994 = vmatpush.msra.mxu3 %v4700_v48  ;;  %v4559_v42 = vsel %vm1023_vm13, %v4540_v28, %v4542_v40  ;;  %v4622_v40 = vld [vmem:[#allocation3 + $0xa0] sm:$0xff] }
 0x8bc   : > { %4849 = vmatpush.msrb.mxu1 %v3926_v56  ;;  %v4561_v63 = vsel %vm1023_vm13, %v4546_v0, %v9445_v26  ;;  %4882 = vmatmul.f32.gmra.mxu3 %v9338_v2  ;;  %v4637_v26 = vld [vmem:[#allocation3 + $0x118] sm:$0xff]  ;;  %v10366_v28 = vld [vmem:[#allocation5_spill] sm:$0xff] }
 0x8bd   : > { %4850 = vmatmul.f32.vlgmr.msrb.gmra.mxu1 %v9344_v23  ;;  %4818 = vmatpush.msrb.mxu0 %v4561_v63 }
 0x8be   : > { %4950 = vmatpush.msra.mxu1 %v4697_v19 }
 0x8bf   : > { %6289 = vmatmul.msk.f32.gmra.mxu2 %vm397_vm0, %v9511_v39  ;;  %4819 = vmatpush.msrb.mxu0 %v4559_v42 }
 0x8c0   : > { %4951 = vmatpush.msra.mxu1 %v4694_v13 }
 0x8c1   : > { %4820 = vmatpush.msrb.mxu0 %v4557_v41 }
 0x8c2   : > { %4952 = vmatpush.msra.mxu1 %v4691_v62  ;;  %6284 = vmatmul.msk.f32.vlgmr.msrb.gmra.mxu0 %vm397_vm0, %v9502_v4  ;;  %v9570_v42 = vpop.permute.xlu1 %4727 }
 0x8c3   : > { %4921 = vmatpush.msra.mxu0 %v4649_v5  ;;  %v9559_v36 = vpop.permute.xlu0 %4732 }
 0x8c4   : > { %4953 = vmatpush.msra.mxu1 %v4688_v57  ;;  %4885 = vmatmul.f32.gmra.mxu3 %v9366_v35 }
 0x8c5   : > { %4853 = vmatmul.f32.gmra.mxu1 %v9371_v14  ;;  %4922 = vmatpush.msra.mxu0 %v4646_v11 }
 0x8c6   : > { %4954 = vmatpush.msra.mxu1 %v4685_v15 }
 0x8c7   : > { %6290 = vmatmul.msk.f32.gmra.mxu2 %vm397_vm0, %v9526_v7  ;;  %4923 = vmatpush.msra.mxu0 %v4643_v60 }
 0x8c8   : > { %4955 = vmatpush.msra.mxu1 %v4682_v25 }
 0x8c9   : > { %4924 = vmatpush.msra.mxu0 %v4640_v31 }
 0x8ca   : > { %4956 = vmatpush.msra.mxu1 %v4679_v53  ;;  %6285 = vmatmul.msk.f32.gmra.mxu0 %vm397_vm0, %v9511_v39 }
 0x8cb   : > { %4925 = vmatpush.msra.mxu0 %v4637_v26  ;;  %v9561_v16 = vpop.permute.xlu0 %4717 }
 0x8cc   : > { %4957 = vmatpush.msra.mxu1 %v4676_v46  ;;  %4888 = vmatmul.f32.gmra.mxu3 %v9392_v9 }
 0x8cd   : > { %4856 = vmatmul.f32.gmra.mxu1 %v9397_v52  ;;  %4926 = vmatpush.msra.mxu0 %v4634_v17 }
 0x8ce   : > { %4958 = vmatpush.msra.mxu1 %v4673_v30 }
 0x8cf   : > { %6291 = vmatmul.msk.f32.gmra.mxu2 %vm397_vm0, %v6279_v3  ;;  %4927 = vmatpush.msra.mxu0 %v4631_v18 }
 0x8d0   : > { %4959 = vmatpush.msra.mxu1 %v4670_v32 }
 0x8d1   : > { %4928 = vmatpush.msra.mxu0 %v4628_v47 }
 0x8d2   : > { %4960 = vmatpush.msra.mxu1 %v4667_v38  ;;  %6286 = vmatmul.msk.f32.gmra.mxu0 %vm397_vm0, %v9526_v7  ;;  %v10367_v38 = vld [vmem:[#allocation6_spill] sm:$0xff] }
 0x8d3   : > { %4929 = vmatpush.msra.mxu0 %v4625_v58 }
 0x8d4   : > { %4961 = vmatpush.msra.mxu1 %v4664_v49  ;;  %6292 = vmatmul.msk.f32.vlgmr.msra.gmra.mxu3 %vm397_vm0, %v9502_v4 }
 0x8d5   : > { %4859 = vmatmul.f32.gmra.mxu1 %v9410_v37  ;;  %4930 = vmatpush.msra.mxu0 %v4622_v40 }
 0x8d6   : > { %4962 = vmatpush.msra.mxu1 %v4661_v21 }
 0x8d7   : > { %4931 = vmatpush.msra.mxu0 %v4619_v44 }
 0x8d8   : > { %4963 = vmatpush.msra.mxu1 %v4658_v55 }
 0x8d9   : > { %4932 = vmatpush.msra.mxu0 %v4616_v29 }
 0x8da   : > { %4964 = vmatpush.msra.mxu1 %v4655_v51  ;;  %6287 = vmatmul.msk.f32.gmra.mxu0 %vm397_vm0, %v6279_v3 }
 0x8db   : > { %4933 = vmatpush.msra.mxu0 %v4613_v6 }
 0x8dc   : > { %4965 = vmatpush.msra.mxu1 %v4652_v8  ;;  %6293 = vmatmul.msk.f32.gmra.mxu3 %vm397_vm0, %v9511_v39 }
 0x8dd   : > { %4966 = vmatmul.f32.vlgmr.msra.gmra.mxu1 %v9312_v43  ;;  %4934 = vmatpush.msra.mxu0 %v4610_v24 }
 0x8df   : > { %4935 = vmatpush.msra.mxu0 %v4607_v20 }
 0x8e1   : > { %4936 = vmatpush.msra.mxu0 %v4604_v12 }
 0x8e2   : > { %4937 = vmatmul.f32.vlgmr.msra.gmra.mxu0 %v9344_v23 }
 0x8e4   : > { %6294 = vmatmul.msk.f32.gmra.mxu3 %vm397_vm0, %v9526_v7 }
 0x8e5   : > { %4969 = vmatmul.f32.gmra.mxu1 %v9338_v2 }
 0x8ea   : > { %4940 = vmatmul.f32.gmra.mxu0 %v9371_v14 }
 0x8ec   : > { %6295 = vmatmul.msk.f32.gmra.mxu3 %vm397_vm0, %v6279_v3 }
 0x8ed   : > { %4972 = vmatmul.f32.gmra.mxu1 %v9366_v35 }
 0x8f2   : > { %4943 = vmatmul.f32.gmra.mxu0 %v9397_v52 }
 0x8f5   : > { %4975 = vmatmul.f32.gmra.mxu1 %v9392_v9 }
 0x8f6   : > { %v4793_v43 = vpop.f32.mrf.mxu2 }
 0x8fa   : > { %4946 = vmatmul.f32.gmra.mxu0 %v9410_v37  ;;  %v9564_v37 = vpop.permute.xlu2 %4722 }
 0x8fe   : > { %v4796_v23 = vpop.f32.mrf.mxu2 }
 0x8ff   : > { %v4764_v1 = vpop.f32.mrf.mxu3 }
 0x900   : > { %v4765_v52 = vadd.f32 %v4764_v1, %v9561_v16 }
 0x902   : > { %v4794_v9 = vadd.f32 %v4793_v43, %v4765_v52 }
 0x906   : > { %v4799_v2 = vpop.f32.mrf.mxu2 }
 0x907   : > { %v4767_v59 = vpop.f32.mrf.mxu3 }
 0x908   : > { %v4768_v54 = vadd.f32 %v4767_v59, %v9564_v37 }
 0x90a   : > { %v4797_v63 = vadd.f32 %v4796_v23, %v4768_v54 }
 0x90e   : > { %v4802_v61 = vpop.f32.mrf.mxu2 }
 0x90f   : > { %v4770_v22 = vpop.f32.mrf.mxu3 }
 0x910   : > { %v4771_v5 = vadd.f32 %v4770_v22, %v9570_v42 }
 0x912   : > { %v4800_v25 = vadd.f32 %v4799_v2, %v4771_v5 }
 0x917   : > { %v4773_v14 = vpop.f32.mrf.mxu3 }
 0x918   : > { %v4774_v17 = vadd.f32 %v4773_v14, %v9559_v36 }
 0x91a   : > { %v4803_v55 = vadd.f32 %v4802_v61, %v4774_v17 }
 0x937   : > { %v4880_v45 = vpop.f32.mrf.mxu3 }
 0x93a   : > { %v4851_v35 = vpop.f32.mrf.mxu1  ;;  %v4909_v4 = vpop.f32.mrf.mxu2 }
 0x93b   : > { %v4852_v0 = vadd.f32 %v4851_v35, %v9561_v16 }
 0x93d   : > { %v4881_v13 = vadd.f32 %v4880_v45, %v4852_v0 }
 0x93f   : > { %v4822_v50 = vpop.f32.mrf.mxu0  ;;  %v4883_v56 = vpop.f32.mrf.mxu3  ;;  %v4910_v11 = vadd.f32 %v4909_v4, %v4881_v13 }
 0x940   : > { %v4823_v10 = vadd.f32 %v4822_v50, %v4794_v9 }
 0x941   : > { %v5009_v53 = vmax.f32 %v4910_v11, 0.0 }
 0x942   : > { %v4854_v27 = vpop.f32.mrf.mxu1  ;;  %v4912_v34 = vpop.f32.mrf.mxu2  ;;  %v5008_v48 = vmax.f32 %v4823_v10, 0.0 }
 0x943   : > { %v4855_v60 = vadd.f32 %v4854_v27, %v9564_v37  ;;  %v5021_v58 = vmul.f32 %v5009_v53, %v10367_v38 }
 0x944   : > { %v5020_v39 = vmul.f32 %v5008_v48, %v10366_v28 }
 0x945   : > { %v4884_v46 = vadd.f32 %v4883_v56, %v4855_v60 }
 0x946   : > { %5044 = vrot.lane.b32.xlu1 %v5020_v39, %s6525_s29 }
 0x947   : > { %v4825_v19 = vpop.f32.mrf.mxu0  ;;  %v4886_v7 = vpop.f32.mrf.mxu3  ;;  %v4913_v44 = vadd.f32 %v4912_v34, %v4884_v46  ;;  %v10368_v34 = vld [vmem:[#allocation7_spill] sm:$0xff] }
 0x948   : > { %v4826_v33 = vadd.f32 %v4825_v19, %v4797_v63 }
 0x949   : > { %v5012_v20 = vmax.f32 %v4913_v44, 0.0 }
 0x94a   : > { %v4857_v41 = vpop.f32.mrf.mxu1  ;;  %v4915_v62 = vpop.f32.mrf.mxu2  ;;  %v5011_v57 = vmax.f32 %v4826_v33, 0.0 }
 0x94b   : > { %v4858_v49 = vadd.f32 %v4857_v41, %v9570_v42  ;;  %v5024_v22 = vmul.f32 %v5012_v20, %v10367_v38 }
 0x94c   : > { %v5023_v15 = vmul.f32 %v5011_v57, %v10366_v28 }
 0x94d   : > { %v4887_v6 = vadd.f32 %v4886_v7, %v4858_v49 }
 0x94e   : > { %5050 = vrot.lane.b32.xlu2 %v5023_v15, %s6525_s29 }
 0x94f   : > { %v4828_v31 = vpop.f32.mrf.mxu0  ;;  %v4889_v32 = vpop.f32.mrf.mxu3  ;;  %v4916_v23 = vadd.f32 %v4915_v62, %v4887_v6 }
 0x950   : > { %v4829_v26 = vadd.f32 %v4828_v31, %v4800_v25 }
 0x951   : > { %v5015_v14 = vmax.f32 %v4916_v23, 0.0 }
 0x952   : > { %v4860_v3 = vpop.f32.mrf.mxu1  ;;  %v5014_v30 = vmax.f32 %v4829_v26, 0.0  ;;  %v4918_v47 = vpop.f32.mrf.mxu2 }
 0x953   : > { %v4861_v18 = vadd.f32 %v4860_v3, %v9559_v36  ;;  %v5027_v45 = vmul.f32 %v5015_v14, %v10367_v38 }
 0x954   : > { %v5026_v40 = vmul.f32 %v5014_v30, %v10366_v28 }
 0x955   : > { %v4890_v21 = vadd.f32 %v4889_v32, %v4861_v18 }
 0x956   : > { %5046 = vrot.lane.b32.xlu2 %v5021_v58, %s6525_s29  ;;  %5056 = vrot.lane.b32.xlu0 %v5026_v40, %s6525_s29 }
 0x957   : > { %v4919_v29 = vadd.f32 %v4918_v47, %v4890_v21  ;;  %v4831_v51 = vpop.f32.mrf.mxu0  ;;  %v4996_v1 = vpop.f32.mrf.mxu3 }
 0x958   : > { %v4832_v24 = vadd.f32 %v4831_v51, %v4803_v55 }
 0x959   : > { %v5018_v8 = vmax.f32 %v4919_v29, 0.0 }
 0x95a   : > { %v4967_v12 = vpop.f32.mrf.mxu1  ;;  %v5017_v43 = vmax.f32 %v4832_v24, 0.0 }
 0x95b   : > { %v5030_v59 = vmul.f32 %v5018_v8, %v10367_v38 }
 0x95c   : > { %v5029_v2 = vmul.f32 %v5017_v43, %v10366_v28 }
 0x95e   : > { %5064 = vrot.lane.b32.xlu2 %v5030_v59, %s6525_s29  ;;  %5062 = vrot.lane.b32.xlu1 %v5029_v2, %s6525_s29 }
 0x95f   : > { %5052 = vrot.lane.b32.xlu0 %v5024_v22, %s6525_s29  ;;  %v4938_v61 = vpop.f32.mrf.mxu0  ;;  %v4999_v50 = vpop.f32.mrf.mxu3 }
 0x960   : > { %v4939_v35 = vadd.f32 %v4938_v61, %v9561_v16 }
 0x962   : > { %v4968_v4 = vadd.f32 %v4967_v12, %v4939_v35  ;;  %v4970_v52 = vpop.f32.mrf.mxu1 }
 0x964   : > { %v4997_v9 = vadd.f32 %v4996_v1, %v4968_v4 }
 0x966   : > { %v5010_v10 = vmax.f32 %v4997_v9, 0.0  ;;  %5058 = vrot.lane.b32.xlu1 %v5027_v45, %s6525_s29 }
 0x967   : > { %v4941_v27 = vpop.f32.mrf.mxu0  ;;  %v5002_v63 = vpop.f32.mrf.mxu3 }
 0x968   : > { %v5022_v54 = vmul.f32 %v5010_v10, %v10368_v34  ;;  %v4942_v48 = vadd.f32 %v4941_v27, %v9564_v37 }
 0x96a   : > { %v4971_v56 = vadd.f32 %v4970_v52, %v4942_v48  ;;  %5048 = vrot.lane.b32.xlu0 %v5022_v54, %s6525_s29  ;;  %v4973_v28 = vpop.f32.mrf.mxu1 }
 0x96c   : > { %v5000_v0 = vadd.f32 %v4999_v50, %v4971_v56 }
 0x96e   : > { %v5013_v16 = vmax.f32 %v5000_v0, 0.0 }
 0x96f   : > { %v4944_v39 = vpop.f32.mrf.mxu0  ;;  %v5005_v11 = vpop.f32.mrf.mxu3 }
 0x970   : > { %v5025_v19 = vmul.f32 %v5013_v16, %v10368_v34  ;;  %v4945_v13 = vadd.f32 %v4944_v39, %v9570_v42 }
 0x972   : > { %v4974_v33 = vadd.f32 %v4973_v28, %v4945_v13  ;;  %5054 = vrot.lane.b32.xlu1 %v5025_v19, %s6525_s29  ;;  %v4976_v57 = vpop.f32.mrf.mxu1 }
 0x974   : > { %v5003_v41 = vadd.f32 %v5002_v63, %v4974_v33 }
 0x976   : > { %v5016_v62 = vmax.f32 %v5003_v41, 0.0 }
 0x977   : > { %v4947_v5 = vpop.f32.mrf.mxu0 }
 0x978   : > { %v5028_v37 = vmul.f32 %v5016_v62, %v10368_v34  ;;  %v4948_v7 = vadd.f32 %v4947_v5, %v9559_v36 }
 0x97a   : > { %v4977_v15 = vadd.f32 %v4976_v57, %v4948_v7  ;;  %5060 = vrot.lane.b32.xlu2 %v5028_v37, %s6525_s29 }
 0x97c   : > { %v5006_v60 = vadd.f32 %v5005_v11, %v4977_v15 }
 0x97e   : > { %v5019_v25 = vmax.f32 %v5006_v60, 0.0 }
 0x980   : > { %v5031_v31 = vmul.f32 %v5019_v25, %v10368_v34 }
 0x982   : > { %5066 = vrot.lane.b32.xlu0 %v5031_v31, %s6525_s29 }
 0x9a8   : > { %v5051_v42 = vpop.permute.xlu2 %5050 }
 0x9a9   : > { %5091 = vst.msk [vmem:[#allocation2 + $0x18] sm:$0xff] %vm1561_vm4, %v5051_v42 }
 0x9b0   : > { %v9604_v53 = vld [vmem:[#allocation2 + $0x18] sm:$0xff]  ;;  %v5047_v26 = vpop.permute.xlu2 %5046 }
 0x9b8   : > { %v5045_v46 = vpop.permute.xlu1 %5044  ;;  %v5065_v18 = vpop.permute.xlu2 %5064 }
 0x9b9   : > { %v9607_v3 = vsel %vm1540_vm3, %v5045_v46, %v5047_v26  ;;  %5088 = vst.msk [vmem:[#allocation2] sm:$0xff] %vm1561_vm4, %v5045_v46 }
 0x9ba   : > { %5089 = vst [vmem:[#allocation2 + $0x8] sm:$0xff] %v9607_v3 }
 0x9c0   : > { %v9611_v36 = vld [vmem:[#allocation2] sm:$0xff] }
 0x9c1   : > { %5548 = vrot.lane.b32.xlu2 %v9611_v36, %s6541_s21  ;;  %5228 = vrot.lane.b32.xlu0 %v9611_v36, %s6526_s30  ;;  %v9617_v17 = vld [vmem:[#allocation2 + $0x8] sm:$0xff] }
 0x9c2   : > { %10369 = vst [vmem:[#allocation11_spill] sm:$0xff] %v9617_v17  ;;  %5148 = vrot.lane.b32.xlu1 %v9611_v36, %s6524_s4 }
 0x9c8   : > { %v5057_v30 = vpop.permute.xlu0 %5056 }
 0x9c9   : > { %5094 = vst.msk [vmem:[#allocation2 + $0x30] sm:$0xff] %vm1561_vm4, %v5057_v30  ;;  %5468 = vrot.lane.b32.xlu2 %v9611_v36, %s6547_s7  ;;  %5154 = vrot.lane.b32.xlu0 %v9604_v53, %s6524_s4 }
 0x9ca   : > { %5308 = vrot.lane.b32.xlu1 %v9611_v36, %s6528_s8 }
 0x9d0   : > { %v5063_v32 = vpop.permute.xlu1 %5062  ;;  %v9636_v58 = vld [vmem:[#allocation2 + $0x30] sm:$0xff] }
 0x9d1   : > { %v5053_v47 = vpop.permute.xlu0 %5052  ;;  %v9629_v38 = vsel %vm1540_vm3, %v5063_v32, %v5065_v18  ;;  %5097 = vst.msk [vmem:[#allocation2 + $0x48] sm:$0xff] %vm1561_vm4, %v5063_v32  ;;  %5314 = vrot.lane.b32.xlu2 %v9604_v53, %s6528_s8  ;;  %5714 = vrot.lane.b32.xlu0 %v9604_v53, %s6536_s16 }
 0x9d2   : > { %v9639_v49 = vsel %vm1540_vm3, %v5051_v42, %v5053_v47  ;;  %5098 = vst [vmem:[#allocation2 + $0x50] sm:$0xff] %v9629_v38  ;;  %5708 = vrot.lane.b32.xlu1 %v9611_v36, %s6536_s16 }
 0x9d3   : > { %5092 = vst [vmem:[#allocation2 + $0x20] sm:$0xff] %v9639_v49 }
 0x9d4   : > { %v5061_v40 = vpop.permute.xlu2 %5060 }
 0x9d8   : > { %v5059_v21 = vpop.permute.xlu1 %5058  ;;  %v9645_v44 = vld [vmem:[#allocation2 + $0x48] sm:$0xff] }
 0x9d9   : > { %v9648_v55 = vsel %vm1540_vm3, %v5057_v30, %v5059_v21  ;;  %v5073_v29 = vsel %vm1540_vm3, %v5059_v21, %v5061_v40  ;;  %5240 = vrot.lane.b32.xlu2 %v9636_v58, %s6526_s30  ;;  %5634 = vrot.lane.b32.xlu0 %v9604_v53, %s6538_s18  ;;  %v9655_v51 = vld [vmem:[#allocation2 + $0x50] sm:$0xff] }
 0x9da   : > { %5095 = vst [vmem:[#allocation2 + $0x38] sm:$0xff] %v9648_v55  ;;  %5628 = vrot.lane.b32.xlu1 %v9611_v36, %s6538_s18  ;;  %v9660_v6 = vld [vmem:[#allocation2 + $0x20] sm:$0xff] }
 0x9db   : > { %10370 = vst [vmem:[#allocation9_spill] sm:$0xff] %v9660_v6 }
 0x9dc   : > { %5096 = vst.msk [vmem:[#allocation2 + $0x40] sm:$0xff] %vm1564_vm5, %v5073_v29  ;;  %v5049_v8 = vpop.permute.xlu0 %5048 }
 0x9dd   : > { %v5069_v24 = vsel %vm1540_vm3, %v5047_v26, %v5049_v8 }
 0x9de   : > { %5090 = vst.msk [vmem:[#allocation2 + $0x10] sm:$0xff] %vm1564_vm5, %v5069_v24 }
 0x9e1   : > { %5640 = vrot.lane.b32.xlu2 %v9636_v58, %s6538_s18  ;;  %5474 = vrot.lane.b32.xlu0 %v9604_v53, %s6547_s7  ;;  %v9669_v20 = vld [vmem:[#allocation2 + $0x38] sm:$0xff] }
 0x9e2   : > { %10371 = vst [vmem:[#allocation10_spill] sm:$0xff] %v9669_v20  ;;  %5234 = vrot.lane.b32.xlu1 %v9604_v53, %s6526_s30 }
 0x9e3   : > { %v9673_v12 = vld [vmem:[#allocation2 + $0x40] sm:$0xff] }
 0x9e4   : > { %5120 = vst.msk [vmem:[#allocation3 + $0x40] sm:$0xff] %vm397_vm0, %v9673_v12  ;;  %v5055_v43 = vpop.permute.xlu1 %5054 }
 0x9e5   : > { %v5071_v1 = vsel %vm1540_vm3, %v5053_v47, %v5055_v43  ;;  %v5102_v23 = vld [vmem:[#allocation2 + $0x10] sm:$0xff] }
 0x9e6   : > { %5093 = vst.msk [vmem:[#allocation2 + $0x28] sm:$0xff] %vm1564_vm5, %v5071_v1  ;;  %v9797_v19 = vld [vmem:[#allocation2 + $0x10] sm:$0xff] }
 0x9e7   : > { %5114 = vst.msk [vmem:[#allocation3 + $0x10] sm:$0xff] %vm397_vm0, %v5102_v23 }
 0x9e9   : > { %5320 = vrot.lane.b32.xlu0 %v9636_v58, %s6528_s8  ;;  %5166 = vrot.lane.b32.xlu2 %v9645_v44, %s6524_s4 }
 0x9ea   : > { %5554 = vrot.lane.b32.xlu1 %v9604_v53, %s6541_s21 }
 0x9ed   : > { %v5105_v59 = vld [vmem:[#allocation2 + $0x28] sm:$0xff] }
 0x9ee   : > { %5117 = vst.msk [vmem:[#allocation3 + $0x28] sm:$0xff] %vm397_vm0, %v5105_v59  ;;  %v5289_v7 = vld [vmem:[#allocation2 + $0x28] sm:$0xff] }
 0x9f1   : > { %5560 = vrot.lane.b32.xlu0 %v9636_v58, %s6541_s21  ;;  %5726 = vrot.lane.b32.xlu2 %v9645_v44, %s6536_s16 }
 0x9f2   : > { %5160 = vrot.lane.b32.xlu1 %v9636_v58, %s6524_s4 }
 0x9f4   : > { %v5067_v2 = vpop.permute.xlu0 %5066 }
 0x9f5   : > { %v5075_v22 = vsel %vm1540_vm3, %v5065_v18, %v5067_v2  ;;  %vm6132_vm3 = vcmask 1041408  }
 0x9f6   : > { %5099 = vst.msk [vmem:[#allocation2 + $0x58] sm:$0xff] %vm1564_vm5, %v5075_v22 }
 0x9f9   : > { %5246 = vrot.lane.b32.xlu0 %v9645_v44, %s6526_s30  ;;  %5646 = vrot.lane.b32.xlu2 %v9645_v44, %s6538_s18 }
 0x9fa   : > { %5720 = vrot.lane.b32.xlu1 %v9636_v58, %s6536_s16 }
 0x9fd   : > { %v9701_v61 = vld [vmem:[#allocation2 + $0x58] sm:$0xff] }
 0x9fe   : > { %5123 = vst.msk [vmem:[#allocation3 + $0x58] sm:$0xff] %vm397_vm0, %v9701_v61 }
 0xa01   : > { %5486 = vrot.lane.b32.xlu0 %v9645_v44, %s6547_s7  ;;  %5566 = vrot.lane.b32.xlu2 %v9645_v44, %s6541_s21 }
 0xa02   : > { %5480 = vrot.lane.b32.xlu1 %v9636_v58, %s6547_s7 }
 0xa09   : > { %5406 = vrot.lane.b32.xlu0 %v9645_v44, %s6533_s13  ;;  %5150 = vrot.lane.b32.xlu2 %v9607_v3, %s6524_s4 }
 0xa0a   : > { %5326 = vrot.lane.b32.xlu1 %v9645_v44, %s6528_s8 }
 0xa11   : > { %5550 = vrot.lane.b32.xlu0 %v9607_v3, %s6541_s21  ;;  %5310 = vrot.lane.b32.xlu2 %v9607_v3, %s6528_s8 }
 0xa12   : > { %5230 = vrot.lane.b32.xlu1 %v9607_v3, %s6526_s30 }
 0xa19   : > { %5470 = vrot.lane.b32.xlu0 %v9607_v3, %s6547_s7  ;;  %5710 = vrot.lane.b32.xlu2 %v9607_v3, %s6536_s16 }
 0xa1a   : > { %5156 = vrot.lane.b32.xlu1 %v9639_v49, %s6524_s4 }
 0xa1b   : > { %v9729_v14 = vpop.permute.xlu2 %5548 }
 0xa21   : > { %5316 = vrot.lane.b32.xlu0 %v9639_v49, %s6528_s8  ;;  %5630 = vrot.lane.b32.xlu2 %v9607_v3, %s6538_s18 }
 0xa22   : > { %5716 = vrot.lane.b32.xlu1 %v9639_v49, %s6536_s16 }
 0xa23   : > { %v9737_v35 = vpop.permute.xlu2 %5468 }
 0xa29   : > { %5236 = vrot.lane.b32.xlu2 %v9639_v49, %s6526_s30  ;;  %5242 = vrot.lane.b32.xlu0 %v9648_v55, %s6526_s30 }
 0xa2a   : > { %5636 = vrot.lane.b32.xlu1 %v9639_v49, %s6538_s18 }
 0xa2b   : > { %v9745_v4 = vpop.permute.xlu2 %5314 }
 0xa31   : > { %5556 = vrot.lane.b32.xlu2 %v9639_v49, %s6541_s21  ;;  %5642 = vrot.lane.b32.xlu0 %v9648_v55, %s6538_s18 }
 0xa32   : > { %5476 = vrot.lane.b32.xlu1 %v9639_v49, %s6547_s7 }
 0xa33   : > { %v9753_v52 = vpop.permute.xlu2 %5240  ;;  %v9755_v45 = vpop.permute.xlu0 %5228 }
 0xa34   : > { %v5149_v9 = vpop.permute.xlu1 %5148 }
 0xa39   : > { %5168 = vrot.lane.b32.xlu0 %v9629_v38, %s6524_s4  ;;  %5162 = vrot.lane.b32.xlu2 %v9648_v55, %s6524_s4 }
 0xa3a   : > { %5322 = vrot.lane.b32.xlu1 %v9648_v55, %s6528_s8 }
 0xa3b   : > { %v9763_v50 = vpop.permute.xlu2 %5640  ;;  %v9765_v10 = vpop.permute.xlu0 %5154 }
 0xa3c   : > { %v5309_v27 = vpop.permute.xlu1 %5308 }
 0xa41   : > { %5728 = vrot.lane.b32.xlu0 %v9629_v38, %s6536_s16  ;;  %5722 = vrot.lane.b32.xlu2 %v9648_v55, %s6536_s16 }
 0xa42   : > { %5562 = vrot.lane.b32.xlu1 %v9648_v55, %s6541_s21 }
 0xa43   : > { %v9773_v34 = vpop.permute.xlu0 %5714  ;;  %v9775_v54 = vpop.permute.xlu2 %5166 }
 0xa44   : > { %v5709_v48 = vpop.permute.xlu1 %5708 }
 0xa49   : > { %5648 = vrot.lane.b32.xlu0 %v9629_v38, %s6538_s18  ;;  %5482 = vrot.lane.b32.xlu2 %v9648_v55, %s6547_s7 }
 0xa4a   : > { %5248 = vrot.lane.b32.xlu1 %v9629_v38, %s6526_s30 }
 0xa4b   : > { %v9783_v56 = vpop.permute.xlu0 %5634  ;;  %v9785_v0 = vpop.permute.xlu2 %5726 }
 0xa4c   : > { %v5629_v28 = vpop.permute.xlu1 %5628 }
 0xa51   : > { %5568 = vrot.lane.b32.xlu0 %v9629_v38, %s6541_s21  ;;  %5328 = vrot.lane.b32.xlu2 %v9629_v38, %s6528_s8 }
 0xa52   : > { %5488 = vrot.lane.b32.xlu1 %v9629_v38, %s6547_s7 }
 0xa53   : > { %v9793_v16 = vpop.permute.xlu0 %5474  ;;  %v9795_v39 = vpop.permute.xlu2 %5646 }
 0xa54   : > { %v5235_v63 = vpop.permute.xlu1 %5234 }
 0xa59   : > { %5152 = vrot.lane.b32.xlu0 %v9797_v19, %s6524_s4  ;;  %5232 = vrot.lane.b32.xlu2 %v9797_v19, %s6526_s30 }
 0xa5a   : > { %5408 = vrot.lane.b32.xlu1 %v9629_v38, %s6533_s13 }
 0xa5b   : > { %v9805_v13 = vpop.permute.xlu0 %5320  ;;  %v9807_v33 = vpop.permute.xlu2 %5566 }
 0xa5c   : > { %v5555_v41 = vpop.permute.xlu1 %5554 }
 0xa61   : > { %5632 = vrot.lane.b32.xlu0 %v9797_v19, %s6538_s18  ;;  %5472 = vrot.lane.b32.xlu2 %v9797_v19, %s6547_s7 }
 0xa62   : > { %5312 = vrot.lane.b32.xlu1 %v9797_v19, %s6528_s8 }
 0xa63   : > { %v9815_v62 = vpop.permute.xlu0 %5560  ;;  %v9817_v5 = vpop.permute.xlu2 %5150 }
 0xa64   : > { %v9821_v57 = vsel %vm456_vm1, %v5149_v9, %v9817_v5  ;;  %v5161_v37 = vpop.permute.xlu1 %5160 }
 0xa69   : > { %5712 = vrot.lane.b32.xlu2 %v9797_v19, %s6536_s16  ;;  %5318 = vrot.lane.b32.xlu0 %v5289_v7, %s6528_s8 }
 0xa6a   : > { %5552 = vrot.lane.b32.xlu1 %v9797_v19, %s6541_s21 }
 0xa6b   : > { %v9828_v11 = vpop.permute.xlu0 %5246  ;;  %v9830_v15 = vpop.permute.xlu2 %5310 }
 0xa6c   : > { %v9834_v60 = vsel %vm618_vm2, %v5309_v27, %v9830_v15  ;;  %v5721_v25 = vpop.permute.xlu1 %5720 }
 0xa71   : > { %5638 = vrot.lane.b32.xlu2 %v5289_v7, %s6538_s18  ;;  %5558 = vrot.lane.b32.xlu0 %v5289_v7, %s6541_s21 }
 0xa72   : > { %5238 = vrot.lane.b32.xlu1 %v5289_v7, %s6526_s30 }
 0xa73   : > { %v9839_v31 = vpop.permute.xlu0 %5486  ;;  %v9841_v42 = vpop.permute.xlu2 %5710 }
 0xa74   : > { %v9845_v26 = vsel %vm1023_vm13, %v5709_v48, %v9841_v42  ;;  %v5481_v46 = vpop.permute.xlu1 %5480 }
 0xa79   : > { %5324 = vrot.lane.b32.xlu2 %v9673_v12, %s6528_s8  ;;  %5478 = vrot.lane.b32.xlu0 %v5289_v7, %s6547_s7 }
 0xa7a   : > { %5158 = vrot.lane.b32.xlu1 %v5289_v7, %s6524_s4 }
 0xa7b   : > { %v9851_v30 = vpop.permute.xlu0 %5406  ;;  %v9853_v18 = vpop.permute.xlu2 %5630 }
 0xa7c   : > { %v9857_v32 = vsel %vm942_vm15, %v5629_v28, %v9853_v18  ;;  %v5327_v47 = vpop.permute.xlu1 %5326 }
 0xa81   : > { %5564 = vrot.lane.b32.xlu2 %v9673_v12, %s6541_s21  ;;  %5244 = vrot.lane.b32.xlu0 %v9673_v12, %s6526_s30 }
 0xa82   : > { %5718 = vrot.lane.b32.xlu1 %v5289_v7, %s6536_s16 }
 0xa83   : > { %v9864_v38 = vpop.permute.xlu0 %5550  ;;  %v9866_v40 = vpop.permute.xlu2 %5236 }
 0xa84   : > { %v9871_v21 = vsel %vm861_vm11, %v9729_v14, %v9864_v38  ;;  %v9875_v29 = vsel %vm537_vm10, %v5235_v63, %v9866_v40  ;;  %v5231_v8 = vpop.permute.xlu1 %5230 }
 0xa85   : > { %v9879_v24 = vsel %vm537_vm10, %v9755_v45, %v5231_v8 }
 0xa89   : > { %5164 = vrot.lane.b32.xlu2 %v9673_v12, %s6524_s4  ;;  %5650 = vrot.lane.b32.xlu0 %v9701_v61, %s6538_s18 }
 0xa8a   : > { %5644 = vrot.lane.b32.xlu1 %v9673_v12, %s6538_s18  ;;  %s6305_s18 = smul.u32 3, %s10378_s24 }
 0xa8b   : > { %v9887_v43 = vpop.permute.xlu0 %5470  ;;  %v9889_v1 = vpop.permute.xlu2 %5556 }
 0xa8c   : > { %v9894_v23 = vsel %vm780_vm12, %v9737_v35, %v9887_v43  ;;  %v9898_v59 = vsel %vm861_vm11, %v5555_v41, %v9889_v1  ;;  %v9900_v2 = vpop.permute.xlu1 %5156  ;;  %s251_s24 = scalar_lea.vmem %s10272_s6, %s6305_s18 }
 0xa8d   : > { %v9905_v22 = vsel %vm456_vm1, %v9765_v10, %v9900_v2 }
 0xa91   : > { %5724 = vrot.lane.b32.xlu2 %v9673_v12, %s6536_s16  ;;  %5404 = vrot.lane.b32.xlu0 %v9673_v12, %s6533_s13 }
 0xa92   : > { %5484 = vrot.lane.b32.xlu1 %v9673_v12, %s6547_s7 }
 0xa93   : > { %v9913_v14 = vpop.permute.xlu0 %5316  ;;  %v9915_v35 = vpop.permute.xlu2 %5162 }
 0xa94   : > { %v5334_v45 = vsel %vm618_vm2, %v9745_v4, %v9913_v14  ;;  %v9922_v9 = vsel %vm456_vm1, %v5161_v37, %v9915_v35  ;;  %v9924_v10 = vpop.permute.xlu1 %5716 }
 0xa95   : > { %v9929_v27 = vsel %vm1023_vm13, %v9773_v34, %v9924_v10 }
 0xa99   : > { %5402 = vrot.lane.b32.xlu2 %v9648_v55, %s6533_s13  ;;  %5398 = vrot.lane.b32.xlu0 %v5289_v7, %s6533_s13 }
 0xa9a   : > { %5330 = vrot.lane.b32.xlu1 %v9701_v61, %s6528_s8 }
 0xa9b   : > { %v9936_v12 = vpop.permute.xlu0 %5242  ;;  %v9938_v4 = vpop.permute.xlu2 %5722 }
 0xa9c   : > { %v5256_v48 = vsel %vm537_vm10, %v9753_v52, %v9936_v12  ;;  %v9945_v34 = vsel %vm1023_vm13, %v5721_v25, %v9938_v4  ;;  %v9947_v28 = vpop.permute.xlu1 %5636 }
 0xa9d   : > { %v5654_v55 = vsel %vm942_vm15, %v9783_v56, %v9947_v28 }
 0xaa1   : > { %5250 = vrot.lane.b32.xlu2 %v9701_v61, %s6526_s30  ;;  %5170 = vrot.lane.b32.xlu0 %v9701_v61, %s6524_s4 }
 0xaa2   : > { %5570 = vrot.lane.b32.xlu1 %v9701_v61, %s6541_s21 }
 0xaa3   : > { %v9958_v52 = vpop.permute.xlu0 %5642  ;;  %v9960_v63 = vpop.permute.xlu2 %5482 }
 0xaa4   : > { %v5656_v41 = vsel %vm942_vm15, %v9763_v50, %v9958_v52  ;;  %v9967_v56 = vsel %vm780_vm12, %v5481_v46, %v9960_v63  ;;  %v9969_v37 = vpop.permute.xlu1 %5476 }
 0xaa5   : > { %v9974_v7 = vsel %vm780_vm12, %v9793_v16, %v9969_v37 }
 0xaa9   : > { %5490 = vrot.lane.b32.xlu2 %v9701_v61, %s6547_s7  ;;  %5730 = vrot.lane.b32.xlu0 %v9701_v61, %s6536_s16 }
 0xaaa   : > { %5400 = vrot.lane.b32.xlu1 %v9636_v58, %s6533_s13 }
 0xaab   : > { %v9982_v50 = vpop.permute.xlu0 %5168  ;;  %v9984_v25 = vpop.permute.xlu2 %5328 }
 0xaac   : > { %v5178_v46 = vsel %vm456_vm1, %v9775_v54, %v9982_v50  ;;  %v5338_v16 = vsel %vm618_vm2, %v5327_v47, %v9984_v25  ;;  %v9991_v17 = vpop.permute.xlu1 %5322 }
 0xaad   : > { %v5336_v6 = vsel %vm618_vm2, %v9805_v13, %v9991_v17  ;;  %5878 = vmatpush.msrb.mxu2 %v5338_v16 }
 0xaaf   : > { %5879 = vmatpush.msrb.mxu2 %v5336_v6 }
 0xab1   : > { %5396 = vrot.lane.b32.xlu2 %v9639_v49, %s6533_s13  ;;  %5410 = vrot.lane.b32.xlu0 %v9701_v61, %s6533_s13 }
 0xab2   : > { %5394 = vrot.lane.b32.xlu1 %v9604_v53, %s6533_s13  ;;  %5880 = vmatpush.msrb.mxu2 %v5334_v45 }
 0xab3   : > { %v10002_v54 = vpop.permute.xlu0 %5728  ;;  %v5233_v47 = vpop.permute.xlu2 %5232 }
 0xab4   : > { %v10007_v20 = vsel %vm1023_vm13, %v9785_v0, %v10002_v54  ;;  %v10010_v6 = vsel %vm537_vm10, %v5231_v8, %v5233_v47  ;;  %5274 = vst.msk [vmem:[#allocation3 + $0xd0] sm:$0xff] %vm397_vm0, %v5233_v47  ;;  %v10013_v49 = vpop.permute.xlu1 %5562  ;;  %5881 = vmatpush.msrb.mxu2 %v9834_v60 }
 0xab5   : > { %v5576_v61 = vsel %vm861_vm11, %v9815_v62, %v10013_v49  ;;  %v6058_v62 = vld [vmem:[#allocation4] sm:$0x1] }
 0xab9   : > { %5390 = vrot.lane.b32.xlu2 %v9607_v3, %s6533_s13  ;;  %5392 = vrot.lane.b32.xlu0 %v9797_v19, %s6533_s13 }
 0xaba   : > { %5388 = vrot.lane.b32.xlu1 %v9611_v36, %s6533_s13 }
 0xabb   : > { %v10025_v0 = vpop.permute.xlu0 %5648  ;;  %v5473_v13 = vpop.permute.xlu2 %5472 }
 0xabc   : > { %v5658_v60 = vsel %vm942_vm15, %v9795_v39, %v10025_v0  ;;  %v10032_v8 = vsel %vm780_vm12, %v9887_v43, %v5473_v13  ;;  %5514 = vst.msk [vmem:[#allocation3 + $0x1f0] sm:$0xff] %vm397_vm0, %v5473_v13  ;;  %v10035_v3 = vpop.permute.xlu1 %5248 }
 0xabd   : > { %v5258_v19 = vsel %vm537_vm10, %v9828_v11, %v10035_v3  ;;  %5898 = vmatpush.msrb.mxu0 %v5658_v60 }
 0xabe   : > { %5882 = vmatpush.msrb.mxu2 %v5258_v19 }
 0xabf   : > { %5899 = vmatpush.msrb.mxu0 %v5656_v41 }
 0xac0   : > { %5883 = vmatpush.msrb.mxu2 %v5256_v48 }
 0xac1   : > { %5900 = vmatpush.msrb.mxu0 %v5654_v55 }
 0xac2   : > { %6061 = vperm.xlu1 %6502, %v6058_v62   ;;  %5884 = vmatpush.msrb.mxu2 %v9875_v29 }
 0xac3   : > { %v10041_v39 = vpop.permute.xlu0 %5568  ;;  %v5713_v43 = vpop.permute.xlu2 %5712  ;;  %5901 = vmatpush.msrb.mxu0 %v9857_v32 }
 0xac4   : > { %v5578_v45 = vsel %vm861_vm11, %v9807_v33, %v10041_v39  ;;  %v10049_v11 = vsel %vm1023_vm13, %v9841_v42, %v5713_v43  ;;  %5754 = vst.msk [vmem:[#allocation3 + $0x310] sm:$0xff] %vm397_vm0, %v5713_v43  ;;  %v10052_v48 = vpop.permute.xlu1 %5488  ;;  %5885 = vmatpush.msrb.mxu2 %v9879_v24 }
 0xac5   : > { %v5498_v29 = vsel %vm780_vm12, %v9839_v31, %v10052_v48  ;;  %5902 = vmatpush.msrb.mxu0 %v5578_v45 }
 0xac6   : > { %5886 = vmatpush.msrb.mxu2 %v5178_v46 }
 0xac7   : > { %5903 = vmatpush.msrb.mxu0 %v5576_v61 }
 0xac8   : > { %5887 = vmatpush.msrb.mxu2 %v9922_v9 }
 0xac9   : > { %5904 = vmatpush.msrb.mxu0 %v9898_v59 }
 0xaca   : > { %5888 = vmatpush.msrb.mxu2 %v9905_v22 }
 0xacb   : > { %v5153_v33 = vpop.permute.xlu0 %5152  ;;  %v5639_v42 = vpop.permute.xlu2 %5638  ;;  %5905 = vmatpush.msrb.mxu0 %v9871_v21 }
 0xacc   : > { %v10064_v32 = vsel %vm456_vm1, %v9817_v5, %v5153_v33  ;;  %5194 = vst.msk [vmem:[#allocation3 + $0x70] sm:$0xff] %vm397_vm0, %v5153_v33  ;;  %v10069_v31 = vsel %vm942_vm15, %v9947_v28, %v5639_v42  ;;  %v10071_v24 = vpop.permute.xlu1 %5408  ;;  %5889 = vmatpush.msrb.mxu2 %v9821_v57 }
 0xacd   : > { %v5418_v59 = vsel %vm699_vm14, %v9851_v30, %v10071_v24  ;;  %5906 = vmatpush.msrb.mxu0 %v5498_v29  ;;  %5677 = vst.msk [vmem:[#allocation3 + $0x2c8] sm:$0xff] %vm397_vm0, %v5639_v42 }
 0xace   : > { %5890 = vmatpush.msrb.mxu2 %v9645_v44 }
 0xacf   : > { %5907 = vmatpush.msrb.mxu0 %v9967_v56 }
 0xad0   : > { %5891 = vmatpush.msrb.mxu2 %v9636_v58 }
 0xad1   : > { %5908 = vmatpush.msrb.mxu0 %v9974_v7 }
 0xad2   : > { %5892 = vmatpush.msrb.mxu2 %v9604_v53 }
 0xad3   : > { %v5633_v5 = vpop.permute.xlu0 %5632  ;;  %v5325_v21 = vpop.permute.xlu2 %5324  ;;  %5909 = vmatpush.msrb.mxu0 %v9894_v23 }
 0xad4   : > { %v10086_v57 = vsel %vm942_vm15, %v9853_v18, %v5633_v5  ;;  %5674 = vst.msk [vmem:[#allocation3 + $0x2b0] sm:$0xff] %vm397_vm0, %v5633_v5  ;;  %v10091_v44 = vsel %vm618_vm2, %v9991_v17, %v5325_v21  ;;  %v5313_v30 = vpop.permute.xlu1 %5312  ;;  %5893 = vmatpush.msrb.mxu2 %v9611_v36 }
 0xad5   : > { %v10096_v53 = vsel %vm618_vm2, %v9830_v15, %v5313_v30  ;;  %5910 = vmatpush.msrb.mxu0 %v5418_v59  ;;  %5360 = vst.msk [vmem:[#allocation3 + $0x160] sm:$0xff] %vm397_vm0, %v5325_v21 }
 0xad6   : > { %5930 = vmatpush.msra.mxu2 %v10007_v20  ;;  %5354 = vst.msk [vmem:[#allocation3 + $0x130] sm:$0xff] %vm397_vm0, %v5313_v30 }
 0xad8   : > { %5931 = vmatpush.msra.mxu2 %v9945_v34 }
 0xada   : > { %5932 = vmatpush.msra.mxu2 %v9929_v27 }
 0xadb   : > { %v5565_v17 = vpop.permute.xlu2 %5564  ;;  %v5319_v58 = vpop.permute.xlu0 %5318 }
 0xadc   : > { %5933 = vmatpush.msra.mxu2 %v9845_v26  ;;  %v10106_v36 = vsel %vm861_vm11, %v10013_v49, %v5565_v17  ;;  %5600 = vst.msk [vmem:[#allocation3 + $0x280] sm:$0xff] %vm397_vm0, %v5565_v17  ;;  %v10111_v20 = vsel %vm618_vm2, %v9913_v14, %v5319_v58  ;;  %v5553_v15 = vpop.permute.xlu1 %5552  ;;  %v10374_v17 = vld [vmem:[#allocation11_spill] sm:$0xff] }
 0xadd   : > { %v10115_v18 = vsel %vm861_vm11, %v9864_v38, %v5553_v15  ;;  %5357 = vst.msk [vmem:[#allocation3 + $0x148] sm:$0xff] %vm397_vm0, %v5319_v58 }
 0xade   : > { %5594 = vst.msk [vmem:[#allocation3 + $0x250] sm:$0xff] %vm397_vm0, %v5553_v15 }
 0xae3   : > { %v5165_v26 = vpop.permute.xlu2 %5164  ;;  %v5559_v23 = vpop.permute.xlu0 %5558 }
 0xae4   : > { %v10121_v22 = vsel %vm456_vm1, %v9915_v35, %v5165_v26  ;;  %5200 = vst.msk [vmem:[#allocation3 + $0xa0] sm:$0xff] %vm397_vm0, %v5165_v26  ;;  %v10126_v14 = vsel %vm861_vm11, %v9889_v1, %v5559_v23  ;;  %v5239_v9 = vpop.permute.xlu1 %5238 }
 0xae5   : > { %v10130_v38 = vsel %vm537_vm10, %v9866_v40, %v5239_v9  ;;  %5597 = vst.msk [vmem:[#allocation3 + $0x268] sm:$0xff] %vm397_vm0, %v5559_v23 }
 0xae6   : > { %5277 = vst.msk [vmem:[#allocation3 + $0xe8] sm:$0xff] %vm397_vm0, %v5239_v9 }
 0xaeb   : > { %v5725_v27 = vpop.permute.xlu2 %5724  ;;  %v5479_v34 = vpop.permute.xlu0 %5478 }
 0xaec   : > { %v10136_v35 = vsel %vm1023_vm13, %v9938_v4, %v5725_v27  ;;  %5760 = vst.msk [vmem:[#allocation3 + $0x340] sm:$0xff] %vm397_vm0, %v5725_v27  ;;  %v10141_v1 = vsel %vm780_vm12, %v9969_v37, %v5479_v34  ;;  %v5159_v28 = vpop.permute.xlu1 %5158  ;;  %v5856_v27 = vld [vmem:[#allocation3 + $0x2c8] sm:$0xff] }
 0xaed   : > { %v10145_v40 = vsel %vm456_vm1, %v9900_v2, %v5159_v28  ;;  %5517 = vst.msk [vmem:[#allocation3 + $0x208] sm:$0xff] %vm397_vm0, %v5479_v34  ;;  %v5865_v34 = vld [vmem:[#allocation3 + $0x310] sm:$0xff] }
 0xaee   : > { %5196 = vst [vmem:[#allocation3 + $0x80] sm:$0xff] %v10145_v40 }
 0xaef   : > { %5197 = vst.msk [vmem:[#allocation3 + $0x88] sm:$0xff] %vm397_vm0, %v5159_v28  ;;  %v5787_v28 = vld [vmem:[#allocation3 + $0xa0] sm:$0xff] }
 0xaf3   : > { %v10150_v55 = vpop.permute.xlu2 %5402  ;;  %v5245_v4 = vpop.permute.xlu0 %5244  ;;  %v5871_v23 = vld [vmem:[#allocation3 + $0x340] sm:$0xff] }
 0xaf4   : > { %v5257_v41 = vsel %vm537_vm10, %v9936_v12, %v5245_v4  ;;  %5280 = vst.msk [vmem:[#allocation3 + $0x100] sm:$0xff] %vm397_vm0, %v5245_v4  ;;  %v5719_v56 = vpop.permute.xlu1 %5718  ;;  %v5847_v4 = vld [vmem:[#allocation3 + $0x280] sm:$0xff] }
 0xaf5   : > { %v10157_v37 = vsel %vm1023_vm13, %v9924_v10, %v5719_v56  ;;  %5757 = vst.msk [vmem:[#allocation3 + $0x328] sm:$0xff] %vm397_vm0, %v5719_v56  ;;  %v10171_v10 = vld [vmem:[%s10269_s3] sm:$0xff]  ;;  %v5844_v56 = vld [vmem:[#allocation3 + $0x268] sm:$0xff] }
 0xaf6   : > { %5894 = vmatmul.f32.vlgmr.msrb.gmra.mxu2 %v10171_v10 }
 0xafb   : > { %v5251_v2 = vpop.permute.xlu2 %5250  ;;  %v5651_v7 = vpop.permute.xlu0 %5650 }
 0xafc   : > { %v5259_v46 = vsel %vm537_vm10, %v10035_v3, %v5251_v2  ;;  %5283 = vst.msk [vmem:[#allocation3 + $0x118] sm:$0xff] %vm397_vm0, %v5251_v2  ;;  %v5659_v16 = vsel %vm942_vm15, %v10025_v0, %v5651_v7  ;;  %v5645_v12 = vpop.permute.xlu1 %5644  ;;  %v10190_v3 = vld [vmem:[%s10269_s3 + $0x10] sm:$0xff]  ;;  %v5841_v2 = vld [vmem:[#allocation3 + $0x250] sm:$0xff] }
 0xafd   : > { %v5657_v47 = vsel %vm942_vm15, %v9958_v52, %v5645_v12  ;;  %5958 = vmatpush.msrb.mxu3 %v5659_v16  ;;  %5683 = vst.msk [vmem:[#allocation3 + $0x2f8] sm:$0xff] %vm397_vm0, %v5651_v7  ;;  %v5868_v9 = vld [vmem:[#allocation3 + $0x328] sm:$0xff]  ;;  %v5775_v7 = vld [vmem:[#allocation3 + $0x40] sm:$0xff] }
 0xafe   : > { %5680 = vst.msk [vmem:[#allocation3 + $0x2e0] sm:$0xff] %vm397_vm0, %v5645_v12  ;;  %6296 = vmatmul.msk.f32.vlgmr.msra.gmra.mxu2 %vm397_vm0, %v10190_v3  ;;  %v5772_v16 = vld [vmem:[#allocation3 + $0x28] sm:$0xff] }
 0xaff   : > { %5959 = vmatpush.msrb.mxu3 %v5657_v47  ;;  %v5769_v47 = vld [vmem:[#allocation3 + $0x10] sm:$0xff] }
 0xb01   : > { %5960 = vmatpush.msrb.mxu3 %v10069_v31 }
 0xb03   : > { %v5491_v49 = vpop.permute.xlu2 %5490  ;;  %v5405_v61 = vpop.permute.xlu0 %5404  ;;  %5961 = vmatpush.msrb.mxu3 %v10086_v57  ;;  %v5808_v57 = vld [vmem:[#allocation3 + $0x148] sm:$0xff]  ;;  %v5802_v58 = vld [vmem:[#allocation3 + $0x118] sm:$0xff] }
 0xb04   : > { %v5499_v52 = vsel %vm780_vm12, %v10052_v48, %v5491_v49  ;;  %5523 = vst.msk [vmem:[#allocation3 + $0x238] sm:$0xff] %vm397_vm0, %v5491_v49  ;;  %v10182_v0 = vsel %vm699_vm14, %v10150_v55, %v5405_v61  ;;  %v5485_v13 = vpop.permute.xlu1 %5484  ;;  %v5862_v26 = vld [vmem:[#allocation3 + $0x2f8] sm:$0xff]  ;;  %v5832_v49 = vld [vmem:[#allocation3 + $0x208] sm:$0xff] }
 0xb05   : > { %v5497_v60 = vsel %vm780_vm12, %v9960_v63, %v5485_v13  ;;  %5440 = vst.msk [vmem:[#allocation3 + $0x1c0] sm:$0xff] %vm397_vm0, %v5405_v61  ;;  %v5829_v61 = vld [vmem:[#allocation3 + $0x1f0] sm:$0xff] }
 0xb06   : > { %5520 = vst.msk [vmem:[#allocation3 + $0x220] sm:$0xff] %vm397_vm0, %v5485_v13 }
 0xb0b   : > { %v5397_v19 = vpop.permute.xlu2 %5396  ;;  %v5399_v62 = vpop.permute.xlu0 %5398 }
 0xb0c   : > { %v5415_v43 = vsel %vm699_vm14, %v5397_v19, %v5399_v62  ;;  %5437 = vst.msk [vmem:[#allocation3 + $0x1a8] sm:$0xff] %vm397_vm0, %v5399_v62  ;;  %v5331_v45 = vpop.permute.xlu1 %5330 }
 0xb0d   : > { %v5339_v63 = vsel %vm618_vm2, %v9984_v25, %v5331_v45  ;;  %5363 = vst.msk [vmem:[#allocation3 + $0x178] sm:$0xff] %vm397_vm0, %v5331_v45  ;;  %v5835_v12 = vld [vmem:[#allocation3 + $0x220] sm:$0xff] }
 0xb0e   : > { %5938 = vmatpush.msrb.mxu1 %v5339_v63 }
 0xb10   : > { %5939 = vmatpush.msrb.mxu1 %v10091_v44  ;;  %v5805_v44 = vld [vmem:[#allocation3 + $0x130] sm:$0xff] }
 0xb12   : > { %5940 = vmatpush.msrb.mxu1 %v10111_v20  ;;  %v10243_v20 = vld [vmem:[%s10269_s3 + $0x8] sm:$0xff] }
 0xb13   : > { %v5171_v48 = vpop.permute.xlu0 %5170  ;;  %v5391_v30 = vpop.permute.xlu2 %5390  ;;  %v5820_v13 = vld [vmem:[#allocation3 + $0x1a8] sm:$0xff] }
 0xb14   : > { %v5179_v29 = vsel %vm456_vm1, %v9982_v50, %v5171_v48  ;;  %5203 = vst.msk [vmem:[#allocation3 + $0xb8] sm:$0xff] %vm397_vm0, %v5171_v48  ;;  %v5571_v33 = vpop.permute.xlu1 %5570  ;;  %5941 = vmatpush.msrb.mxu1 %v10096_v53 }
 0xb15   : > { %v5579_v42 = vsel %vm861_vm11, %v10041_v39, %v5571_v33  ;;  %5603 = vst.msk [vmem:[#allocation3 + $0x298] sm:$0xff] %vm397_vm0, %v5571_v33  ;;  %vm6130_vm11 = vcmask 1040384  }
 0xb16   : > { %5942 = vmatpush.msrb.mxu1 %v5259_v46  ;;  %5962 = vmatpush.msrb.mxu3 %v5579_v42  ;;  %v5838_v46 = vld [vmem:[#allocation3 + $0x238] sm:$0xff] }
 0xb18   : > { %5943 = vmatpush.msrb.mxu1 %v5257_v41  ;;  %5963 = vmatpush.msrb.mxu3 %v10106_v36  ;;  %v5781_v41 = vld [vmem:[#allocation3 + $0x70] sm:$0xff] }
 0xb1a   : > { %5944 = vmatpush.msrb.mxu1 %v10130_v38  ;;  %5964 = vmatpush.msrb.mxu3 %v10126_v14  ;;  %v5859_v14 = vld [vmem:[#allocation3 + $0x2e0] sm:$0xff]  ;;  %v5793_v38 = vld [vmem:[#allocation3 + $0xd0] sm:$0xff] }
 0xb1b   : > { %v5731_v50 = vpop.permute.xlu0 %5730 }
 0xb1c   : > { %v5739_v25 = vsel %vm1023_vm13, %v10002_v54, %v5731_v50  ;;  %5763 = vst.msk [vmem:[#allocation3 + $0x358] sm:$0xff] %vm397_vm0, %v5731_v50  ;;  %v5401_v31 = vpop.permute.xlu1 %5400  ;;  %5945 = vmatpush.msrb.mxu1 %v10010_v6  ;;  %5965 = vmatpush.msrb.mxu3 %v10115_v18  ;;  %v5814_v6 = vld [vmem:[#allocation3 + $0x178] sm:$0xff]  ;;  %v5799_v18 = vld [vmem:[#allocation3 + $0x100] sm:$0xff] }
 0xb1d   : > { %v5416_v39 = vsel %vm699_vm14, %v5401_v31, %v10150_v55  ;;  %5990 = vmatpush.msrb.mxu2 %v5739_v25  ;;  %v5784_v55 = vld [vmem:[#allocation3 + $0x88] sm:$0xff] }
 0xb1e   : > { %5911 = vmatpush.msrb.mxu0 %v5416_v39  ;;  %5946 = vmatpush.msrb.mxu1 %v5179_v29 }
 0xb1f   : > { %5966 = vmatpush.msrb.mxu3 %v5499_v52  ;;  %5991 = vmatpush.msrb.mxu2 %v10136_v35  ;;  %v5790_v35 = vld [vmem:[#allocation3 + $0xb8] sm:$0xff] }
 0xb20   : > { %5947 = vmatpush.msrb.mxu1 %v10121_v22  ;;  %v5796_v22 = vld [vmem:[#allocation3 + $0xe8] sm:$0xff] }
 0xb21   : > { %5967 = vmatpush.msrb.mxu3 %v5497_v60  ;;  %5992 = vmatpush.msrb.mxu2 %v10157_v37  ;;  %v5778_v37 = vld [vmem:[#allocation3 + $0x58] sm:$0xff] }
 0xb22   : > { %5948 = vmatpush.msrb.mxu1 %v10145_v40  ;;  %v5850_v40 = vld [vmem:[#allocation3 + $0x298] sm:$0xff] }
 0xb23   : > { %v5411_v54 = vpop.permute.xlu0 %5410  ;;  %5968 = vmatpush.msrb.mxu3 %v10141_v1  ;;  %5993 = vmatpush.msrb.mxu2 %v10049_v11  ;;  %v5811_v11 = vld [vmem:[#allocation3 + $0x160] sm:$0xff]  ;;  %v5874_v36 = vld [vmem:[#allocation3 + $0x358] sm:$0xff]  ;;  %v5853_v1 = vld [vmem:[#allocation3 + $0x2b0] sm:$0xff] }
 0xb24   : > { %v5419_v59 = vsel %vm699_vm14, %v10071_v24, %v5411_v54  ;;  %5443 = vst.msk [vmem:[#allocation3 + $0x1d8] sm:$0xff] %vm397_vm0, %v5411_v54  ;;  %v5395_v5 = vpop.permute.xlu1 %5394  ;;  %5949 = vmatpush.msrb.mxu1 %v10064_v32  ;;  %6297 = vmatmul.msk.f32.vlgmr.msrb.gmra.mxu2 %vm397_vm0, %v10190_v3  ;;  %v10372_v24 = vld [vmem:[#allocation10_spill] sm:$0xff]  ;;  %v10373_v32 = vld [vmem:[#allocation9_spill] sm:$0xff] }
 0xb25   : > { %5998 = vmatpush.msra.mxu2 %v5814_v6  ;;  %v5414_v21 = vsel %vm699_vm14, %v5395_v5, %v5397_v19  ;;  %5969 = vmatpush.msrb.mxu3 %v10032_v8 }
 0xb26   : > { %5912 = vmatpush.msrb.mxu0 %v5414_v21  ;;  %5950 = vmatpush.msrb.mxu1 %v9655_v51 }
 0xb27   : > { %5970 = vmatpush.msrb.mxu3 %v5419_v59  ;;  %5999 = vmatpush.msra.mxu2 %v5811_v11 }
 0xb28   : > { %5951 = vmatpush.msrb.mxu1 %v10372_v24 }
 0xb29   : > { %5971 = vmatpush.msrb.mxu3 %v10182_v0  ;;  %6000 = vmatpush.msra.mxu2 %v5808_v57  ;;  %v5823_v0 = vld [vmem:[#allocation3 + $0x1c0] sm:$0xff] }
 0xb2a   : > { %5952 = vmatpush.msrb.mxu1 %v10373_v32 }
 0xb2b   : > { %v5393_v8 = vpop.permute.xlu0 %5392  ;;  %5972 = vmatpush.msrb.mxu3 %v5415_v43  ;;  %6001 = vmatpush.msra.mxu2 %v5805_v44  ;;  %v5826_v52 = vld [vmem:[#allocation3 + $0x1d8] sm:$0xff] }
 0xb2c   : > { %v5413_v53 = vsel %vm699_vm14, %v5391_v30, %v5393_v8  ;;  %5434 = vst.msk [vmem:[#allocation3 + $0x190] sm:$0xff] %vm397_vm0, %v5393_v8  ;;  %v5389_v51 = vpop.permute.xlu1 %5388  ;;  %5953 = vmatpush.msrb.mxu1 %v10374_v17 }
 0xb2d   : > { %v5412_v15 = vsel %vm699_vm14, %v5389_v51, %v5391_v30  ;;  %6002 = vmatpush.msra.mxu2 %v5802_v58  ;;  %5973 = vmatpush.msrb.mxu3 %v5413_v53 }
 0xb2e   : > { %6050 = vmatpush.msra.mxu1 %v5874_v36  ;;  %5913 = vmatpush.msrb.mxu0 %v5412_v15 }
 0xb2f   : > { %5914 = vmatmul.f32.vlgmr.msrb.gmra.mxu0 %v10243_v20  ;;  %5974 = vmatmul.f32.vlgmr.msrb.gmra.mxu3 %v10243_v20 }
 0xb30   : > { %6003 = vmatpush.msra.mxu2 %v5799_v18  ;;  %6018 = vmatpush.msra.mxu0 %v5862_v26 }
 0xb31   : > { %6051 = vmatpush.msra.mxu1 %v5871_v23 }
 0xb32   : > { %6004 = vmatpush.msra.mxu2 %v5796_v22  ;;  %6019 = vmatpush.msra.mxu0 %v5859_v14 }
 0xb33   : > { %6052 = vmatpush.msra.mxu1 %v5868_v9  ;;  %v5817_v60 = vld [vmem:[#allocation3 + $0x190] sm:$0xff] }
 0xb34   : > { %6005 = vmatpush.msra.mxu2 %v5793_v38  ;;  %6020 = vmatpush.msra.mxu0 %v5856_v27  ;;  %v6062_v63 = vpop.permute.xlu1 %6061 }
 0xb35   : > { %6053 = vmatpush.msra.mxu1 %v5865_v34  ;;  %v6064_v33 = vperm.slane %v6062_v63, 0 }
 0xb36   : > { %5954 = vmatmul.f32.vlgmr.msrb.gmra.mxu1 %v10171_v10  ;;  %6006 = vmatpush.msra.mxu2 %v5790_v35 }
 0xb37   : > { %6021 = vmatpush.msra.mxu0 %v5853_v1 }
 0xb38   : > { %6007 = vmatpush.msra.mxu2 %v5787_v28 }
 0xb39   : > { %6022 = vmatpush.msra.mxu0 %v5850_v40 }
 0xb3a   : > { %6008 = vmatpush.msra.mxu2 %v5784_v55 }
 0xb3b   : > { %6023 = vmatpush.msra.mxu0 %v5847_v4 }
 0xb3c   : > { %6009 = vmatpush.msra.mxu2 %v5781_v41 }
 0xb3d   : > { %6024 = vmatpush.msra.mxu0 %v5844_v56 }
 0xb3e   : > { %6010 = vmatpush.msra.mxu2 %v5778_v37  ;;  %6298 = vmatmul.msk.f32.vlgmr.msra.gmra.mxu1 %vm397_vm0, %v10190_v3 }
 0xb3f   : > { %6025 = vmatpush.msra.mxu0 %v5841_v2 }
 0xb40   : > { %6011 = vmatpush.msra.mxu2 %v5775_v7 }
 0xb41   : > { %6026 = vmatpush.msra.mxu0 %v5838_v46  ;;  %v6135_v46 = vlaneseq }
 0xb42   : > { %6012 = vmatpush.msra.mxu2 %v5772_v16 }
 0xb43   : > { %6027 = vmatpush.msra.mxu0 %v5835_v12  ;;  %vm6137_vm4 = vcmp.lt.s32.totalorder %v6135_v46, 288 }
 0xb44   : > { %6013 = vmatpush.msra.mxu2 %v5769_v47 }
 0xb45   : > { %6028 = vmatpush.msra.mxu0 %v5832_v49  ;;  %6014 = vmatmul.f32.vlgmr.msra.gmra.mxu2 %v10171_v10 }
 0xb47   : > { %6029 = vmatpush.msra.mxu0 %v5829_v61 }
 0xb49   : > { %6030 = vmatpush.msra.mxu0 %v5826_v52 }
 0xb4b   : > { %6031 = vmatpush.msra.mxu0 %v5823_v0 }
 0xb4d   : > { %6032 = vmatpush.msra.mxu0 %v5820_v13 }
 0xb4f   : > { %6033 = vmatpush.msra.mxu0 %v5817_v60 }
 0xb50   : > { %6034 = vmatmul.f32.vlgmr.msra.gmra.mxu0 %v10243_v20 }
 0xb79   : > { %v5895_v3 = vpop.f32.mrf.mxu2 }
 0xb81   : > { %v5935_v19 = vpop.f32.mrf.mxu2 }
 0xba7   : > { %v5995_v45 = vpop.f32.mrf.mxu2 }
 0xbac   : > { %v5915_v48 = vpop.f32.mrf.mxu0 }
 0xbad   : > { %v5916_v42 = vadd.f32 %v5915_v48, %v5895_v3 }
 0xbaf   : > { %v5936_v25 = vadd.f32 %v5935_v19, %v5916_v42 }
 0xbb1   : > { %v6065_v39 = vadd.f32 %v6064_v33, %v5936_v25 }
 0xbb2   : > { %v5975_v62 = vpop.f32.mrf.mxu3 }
 0xbb3   : > { %v5955_v43 = vpop.f32.mrf.mxu1  ;;  %v6299_v54 = vmul.f32 -1.442695, %v6065_v39 }
 0xbb4   : > { %v5976_v10 = vadd.f32 %v5975_v62, %v5955_v43 }
 0xbb6   : > { %v5996_v29 = vadd.f32 %v5995_v45, %v5976_v10 }
 0xbb8   : > { %v6066_v50 = vadd.f32 %v6064_v33, %v5996_v29 }
 0xbba   : > { %v6300_v31 = vmul.f32 -1.442695, %v6066_v50 }
 0xbbb   : > { %v6055_v24 = vpop.f32.mrf.mxu1 }
 0xbbc   : > { %6503 = vpow2.f32 %v6300_v31 }
 0xbbd   : > { %6505 = vpow2.f32 %v6299_v54 }
 0xbc2   : > { %v6504_v6 = vpop.eup %6503 }
 0xbc3   : > { %v6078_v59 = vadd.f32 1.0, %v6504_v6  ;;  %v6506_v21 = vpop.eup %6505 }
 0xbc4   : > { %v6077_v32 = vadd.f32 1.0, %v6506_v21 }
 0xbc5   : > { %6507 = vrcp.f32 %v6078_v59  ;;  %v6106_v22 = vand.u32 2147483648, %v6078_v59  ;;  %vm6100_vm1 = vweird.f32 %v6078_v59  ;;  %v6104_v38 = vand.u32 2147483647, %v6078_v59 }
 0xbc6   : > { %6509 = vrcp.f32 %v6077_v32  ;;  %v6091_v35 = vand.u32 2147483648, %v6077_v32  ;;  %vm6085_vm7 = vweird.f32 %v6077_v32  ;;  %v6089_v37 = vand.u32 2147483647, %v6077_v32 }
 0xbc7   : > { %v6107_v1 = vor.u32 1.1754944e-38, %v6106_v22  ;;  %vm6105_vm15 = vcmp.eq.f32.partialorder %v6104_v38, 8.507059e+37 }
 0xbc8   : > { %v6015_v5 = vpop.f32.mrf.mxu2  ;;  %v6092_v49 = vor.u32 1.1754944e-38, %v6091_v35  ;;  %vm6090_vm14 = vcmp.eq.f32.partialorder %v6089_v37, 8.507059e+37 }
 0xbcb   : > { %v6508_v8 = vpop.eup %6507 }
 0xbcc   : > { %v6096_v51 = vmul.f32 %v6508_v8, %v6078_v59  ;;  %v6510_v17 = vpop.eup %6509  ;;  %vm6101_vm0 = vweird.f32 %v6508_v8 }
 0xbcd   : > { %v6035_v11 = vpop.f32.mrf.mxu0  ;;  %v6081_v20 = vmul.f32 %v6510_v17, %v6077_v32  ;;  %vm6102_vm2 = vmor %vm6100_vm1, %vm6101_vm0  ;;  %vm6086_vm13 = vweird.f32 %v6510_v17 }
 0xbce   : > { %v6036_v57 = vadd.f32 %v6035_v11, %v6015_v5  ;;  %v6097_v58 = vsub.f32 1.0, %v6096_v51  ;;  %vm10253_vm8 = vmor %vm6085_vm7, %vm6086_vm13 }
 0xbcf   : > { %v6082_v26 = vsub.f32 1.0, %v6081_v20 }
 0xbd0   : > { %v6056_v44 = vadd.f32 %v6055_v24, %v6036_v57  ;;  %v6098_v18 = vmul.f32 %v6508_v8, %v6097_v58 }
 0xbd1   : > { %v6083_v9 = vmul.f32 %v6510_v17, %v6082_v26 }
 0xbd2   : > { %v6067_v30 = vadd.f32 %v6064_v33, %v6056_v44  ;;  %v6099_v23 = vadd.f32 %v6508_v8, %v6098_v18 }
 0xbd3   : > { %v6084_v40 = vadd.f32 %v6510_v17, %v6083_v9 }
 0xbd4   : > { %v6301_v53 = vmul.f32 -1.442695, %v6067_v30  ;;  %v6103_v34 = vsel %vm6102_vm2, %v6508_v8, %v6099_v23 }
 0xbd5   : > { %v6108_v4 = vsel %vm6105_vm15, %v6107_v1, %v6103_v34  ;;  %v6088_v16 = vsel %vm10253_vm8, %v6510_v17, %v6084_v40 }
 0xbd6   : > { %6511 = vpow2.f32 %v6301_v53  ;;  %v6128_v12 = vrot.slane %v6108_v4, 7  ;;  %v6093_v0 = vsel %vm6090_vm14, %v6092_v49, %v6088_v16 }
 0xbd8   : > { %v6131_v60 = vsel %vm6130_vm11, %v6093_v0, %v6128_v12 }
 0xbdc   : > { %v6512_v36 = vpop.eup %6511 }
 0xbdd   : > { %v6079_v15 = vadd.f32 1.0, %v6512_v36 }
 0xbdf   : > { %6513 = vrcp.f32 %v6079_v15  ;;  %v6121_v55 = vand.u32 2147483648, %v6079_v15  ;;  %v6119_v56 = vand.u32 2147483647, %v6079_v15  ;;  %vm6115_vm9 = vweird.f32 %v6079_v15 }
 0xbe1   : > { %v6122_v47 = vor.u32 1.1754944e-38, %v6121_v55  ;;  %vm6120_vm12 = vcmp.eq.f32.partialorder %v6119_v56, 8.507059e+37 }
 0xbe5   : > { %v6514_v14 = vpop.eup %6513 }
 0xbe6   : > { %v6111_v27 = vmul.f32 %v6514_v14, %v6079_v15  ;;  %vm6116_vm6 = vweird.f32 %v6514_v14 }
 0xbe7   : > { %vm6117_vm10 = vmor %vm6115_vm9, %vm6116_vm6 }
 0xbe8   : > { %v6112_v28 = vsub.f32 1.0, %v6111_v27 }
 0xbea   : > { %v6113_v41 = vmul.f32 %v6514_v14, %v6112_v28 }
 0xbec   : > { %v6114_v7 = vadd.f32 %v6514_v14, %v6113_v41 }
 0xbee   : > { %v6118_v61 = vsel %vm6117_vm10, %v6514_v14, %v6114_v7 }
 0xbef   : > { %v6123_v52 = vsel %vm6120_vm12, %v6122_v47, %v6118_v61 }
 0xbf0   : > { %v6129_v13 = vrot.slane %v6123_v52, 6 }
 0xbf2   : > { %v6133_v3 = vsel %vm6132_vm3, %v6131_v60, %v6129_v13 }
 0xbf3   : > { %6139 = vst.msk [vmem:[%s251_s24] sm:$0x7] %vm6137_vm4, %v6133_v3 }
 0xbf4 PF: > { %s18_s23 = sadd.s32 1, %s6521_s23  }
 0xbf5   : > { %p15_p4 = scmp.ge.s32.totalorder %s18_s23, 4  }
 0xbf7   :  { %17 = sbr.rel (!%p15_p4) target bundleno = 3 (0x3), region = 80 }

</bundles_post_ra>
